<compile_context>
chip_gen: v7x
topology: tpu7x:2x2x1
jax: 0.10.0
libtpu: 0.0.40
codegen_flags: <defaults>
</compile_context>

<pallas_src>
import functools
import math

import jax
import jax.numpy as jnp
from jax import lax
from jax.experimental import pallas as pl
from jax.experimental.pallas import tpu as pltpu


# ----------------------------- Pallas kernels -----------------------------

def _make_tap_accumulator(KH, KW, TH, WO, CIN):
    """Returns f(x_band, w_taps) -> (TH*WO, Cout) f32 conv of one row band.

    x_band : (TH+KH-1, WO+KW-1, CIN)  padded input rows for this band (stride 1)
    w_taps : (KH*KW, CIN, Cout)       conv weight, tap-major (kh outer, kw inner)
    KH*KW small matmuls accumulated in f32 -- no im2col patch matrix in HBM.
    """
    def accumulate(x_band, w_taps):
        acc = None
        for kh in range(KH):
            for kw in range(KW):
                win = x_band[kh:kh + TH, kw:kw + WO, :]            # (TH, WO, CIN)
                win2d = win.reshape(TH * WO, CIN)
                part = jnp.dot(win2d, w_taps[kh * KW + kw],
                               preferred_element_type=jnp.float32)
                acc = part if acc is None else acc + part
        return acc                                                  # (TH*WO, Cout) f32
    return accumulate


def _conv_stats_kernel(x_ref, w_ref, stats_ref, *, accumulate, inv_rows):
    """Phase 1 (per tile): recompute-free BN partials only, no y written to HBM.

    stats_ref : (2, Cout)  row 0 = per-channel sum(y), row 1 = sum((y - tile_mean)^2)
    """
    y = accumulate(x_ref[...], w_ref[...])                 # (rows, Cout) f32
    s = jnp.sum(y, axis=0, keepdims=True)                  # (1, Cout)
    mu = s * inv_rows
    d = y - mu
    m2 = jnp.sum(d * d, axis=0, keepdims=True)             # (1, Cout)
    stats_ref[...] = jnp.concatenate([s, m2], axis=0)      # only 2 rows, no zero-pad


def _conv_bn_apply_kernel(x_ref, w_ref, scale_ref, shift_ref, o_ref,
                          *, accumulate, TH, WO, COUT):
    """Phase 2 (per tile): recompute conv (cheap at small Cin) + fused BN affine,
    writing the final compact (th, Wo, Cout) output tile directly."""
    y = accumulate(x_ref[...], w_ref[...])                 # (rows, Cout) f32
    y = y * scale_ref[...] + shift_ref[...]                # folded BN affine
    o_ref[...] = y.reshape(TH, WO, COUT).astype(o_ref.dtype)


# ------------------------------- wrapper ----------------------------------

def conv_bn_forward(x_nchw, weight_oihw, bias, gamma, beta, *,
                    stride=1, padding=1, eps=1e-5,
                    compute_dtype=jnp.float32, target_band_rows=1024):
    # Conv bias is algebraically canceled by training-mode BN's mean subtraction,
    # so it is never fed to the kernels (one fewer operand / DMA).  NOTE: if this
    # is ever reused with running stats / eval-mode BN, the bias must be restored.
    del bias
    assert stride == 1, "kernel specialized to stride=1 (module instance uses s=1)"
    # TODO(synk): general stride / dilation / groups need strided window slices.

    N, Cin, H, W = x_nchw.shape
    Cout, Cin_w, KH, KW = weight_oihw.shape
    assert Cin_w == Cin
    Hp, Wp = H + 2 * padding, W + 2 * padding
    Ho, Wo = Hp - KH + 1, Wp - KW + 1

    # ---- glue (pure data movement): NCHW -> NHWC + spatial zero pad ----
    x = jnp.transpose(x_nchw, (0, 2, 3, 1)).astype(compute_dtype)
    xp = jnp.pad(x, ((0, 0), (padding, padding), (padding, padding), (0, 0)))

    # Row-band tiling of the output rows: th output rows per grid step (th | Ho).
    th = Ho
    for cand in range(Ho, 0, -1):
        if Ho % cand == 0 and cand * Wo <= target_band_rows:
            th = cand
            break
    nb = Ho // th
    # Keep >= 2 grid steps so v7x's two TensorCores both get work.
    if N * nb < 2:
        for cand in range(th, 0, -1):
            if Ho % cand == 0 and (Ho // cand) * N >= 2:
                th = cand
                break
        nb = Ho // th

    # Banded input: band b holds padded rows [b*th, b*th + th + KH - 1).
    # ~(1 + (KH-1)/th)x the raw input bytes -- vs 9x for the old HBM im2col.
    xb = jnp.stack([xp[:, b * th: b * th + th + KH - 1] for b in range(nb)],
                   axis=1)                                  # (N, nb, th+KH-1, Wp, Cin)

    # OIHW -> tap-major (KH*KW, Cin, Cout); no 128-lane padding anywhere in HBM.
    wtap = jnp.transpose(weight_oihw, (2, 3, 1, 0)).reshape(KH * KW, Cin, Cout)
    wtap = wtap.astype(compute_dtype)

    accumulate = _make_tap_accumulator(KH, KW, th, Wo, Cin)
    band_rows = th * Wo
    M = N * Ho * Wo

    grid = (N, nb)                                          # fully parallel grid
    x_spec = pl.BlockSpec((None, None, th + KH - 1, Wp, Cin),
                          lambda n, b: (n, b, 0, 0, 0))
    # Weight block index is constant; pipeline_mode=pl.Buffered(1) would
    # single-buffer it (worth it for large Cin*Cout); negligible here, left default.
    w_spec = pl.BlockSpec((KH * KW, Cin, Cout), lambda n, b: (0, 0, 0))

    # Explicit VMEM budget: 2x double-buffered blocks + accumulator + headroom.
    # Raises v5e's 16 MiB scoped default; stays well inside v7x's 64 MiB physical.
    def _nbytes(shape, dtype):
        return math.prod(shape) * jnp.dtype(dtype).itemsize
    blk_bytes = (_nbytes((th + KH - 1, Wp, Cin), compute_dtype)
                 + _nbytes((KH * KW, Cin, Cout), compute_dtype)
                 + _nbytes((th, Wo, Cout), jnp.float32)
                 + _nbytes((2, Cout), jnp.float32)
                 + 2 * _nbytes((1, Cout), jnp.float32))
    acc_bytes = band_rows * max(Cout, 128) * 4              # f32 accumulator (lane-padded)
    vmem_limit = int(max(2 * (2 * blk_bytes + acc_bytes), 16 * 1024 * 1024))

    cparams = pltpu.CompilerParams(
        dimension_semantics=("parallel", "parallel"),
        vmem_limit_bytes=vmem_limit)

    # ---- phase 1: per-tile BN partials (sum, centered sum-of-squares) ----
    stats = pl.pallas_call(
        functools.partial(_conv_stats_kernel, accumulate=accumulate,
                          inv_rows=1.0 / float(band_rows)),
        grid=grid,
        in_specs=[x_spec, w_spec],
        out_specs=pl.BlockSpec((None, None, 2, Cout), lambda n, b: (n, b, 0, 0)),
        out_shape=jax.ShapeDtypeStruct((N, nb, 2, Cout), jnp.float32),
        compiler_params=cparams,
    )(xb, wtap)

    # ---- tiny reduction + folded BN affine (XLA work on (Cout,) vectors only) ----
    s_t = stats[:, :, 0, :]                                 # (N, nb, Cout) per-tile sums
    m2_t = stats[:, :, 1, :]                                # (N, nb, Cout) per-tile M2
    mean = jnp.sum(s_t, axis=(0, 1)) / M
    mu_t = s_t / band_rows
    # Chan's parallel-variance combine (equal tile counts), biased by M (BN training).
    m2 = jnp.sum(m2_t, axis=(0, 1)) + band_rows * jnp.sum((mu_t - mean) ** 2, axis=(0, 1))
    var = m2 / M
    scale_v = gamma.astype(jnp.float32) * lax.rsqrt(var + eps)
    shift_v = beta.astype(jnp.float32) - mean * scale_v
    scale = scale_v.reshape(1, Cout)
    shift = shift_v.reshape(1, Cout)

    # ---- phase 2: recompute conv + fused BN affine, write compact NHWC output ----
    out_nhwc = pl.pallas_call(
        functools.partial(_conv_bn_apply_kernel, accumulate=accumulate,
                          TH=th, WO=Wo, COUT=Cout),
        grid=grid,
        in_specs=[x_spec, w_spec,
                  pl.BlockSpec((1, Cout), lambda n, b: (0, 0)),
                  pl.BlockSpec((1, Cout), lambda n, b: (0, 0))],
        out_specs=pl.BlockSpec((None, th, Wo, Cout), lambda n, b: (n, b, 0, 0)),
        out_shape=jax.ShapeDtypeStruct((N, Ho, Wo, Cout), jnp.float32),
        compiler_params=cparams,
    )(xb, wtap, scale, shift)

    # Single small XLA pass over the real-sized (unpadded) output.
    return jnp.transpose(out_nhwc, (0, 3, 1, 2))            # NCHW


# ------------------------------ reference ----------------------------------

def conv_bn_reference(x_nchw, weight_oihw, bias, gamma, beta,
                      *, stride=1, padding=1, eps=1e-5):
    y = lax.conv_general_dilated(
        x_nchw, weight_oihw,
        window_strides=(stride, stride),
        padding=[(padding, padding), (padding, padding)],
        dimension_numbers=("NCHW", "OIHW", "NCHW"),
    ) + bias[None, :, None, None]
    mean = jnp.mean(y, axis=(0, 2, 3), keepdims=True)
    var = jnp.mean((y - mean) ** 2, axis=(0, 2, 3), keepdims=True)
    return (y - mean) * lax.rsqrt(var + eps) * gamma[None, :, None, None] \
        + beta[None, :, None, None]


if __name__ == "__main__":
    # Small shapes consistent with ConvBN(4, 8, k=3, s=1, p=1)
    N, Cin, H, W = 2, 4, 16, 16
    Cout, KH, KW = 8, 3, 3

    key = jax.random.PRNGKey(0)
    kx, kw, kb = jax.random.split(key, 3)
    x = jax.random.normal(kx, (N, Cin, H, W), dtype=jnp.float32)
    # PyTorch parameter shapes: OIHW weight, (Cout,) conv bias, BN gamma/beta.
    weight = jax.random.normal(kw, (Cout, Cin, KH, KW), dtype=jnp.float32) * 0.1
    bias = jax.random.normal(kb, (Cout,), dtype=jnp.float32) * 0.1
    gamma = jnp.ones((Cout,), dtype=jnp.float32)   # BatchNorm2d default weight init
    beta = jnp.zeros((Cout,), dtype=jnp.float32)   # BatchNorm2d default bias init

    fwd = jax.jit(lambda a, b, c, d, e: conv_bn_forward(a, b, c, d, e,
                                                        stride=1, padding=1))
    out = jax.block_until_ready(fwd(x, weight, bias, gamma, beta))

    ref = conv_bn_reference(x, weight, bias, gamma, beta, stride=1, padding=1)
    assert out.shape == (N, Cout, H, W), out.shape
    assert jnp.allclose(out, ref, rtol=1e-4, atol=1e-4), \
        float(jnp.max(jnp.abs(out - ref)))

    print("KERNEL_OK")
</pallas_src>

<mosaic_0001>
module attributes {stable_mosaic.version = 11 : i64} {
  func.func @_conv_stats_kernel(%arg0: i32, %arg1: i32, %arg2: memref<1x1x18x18x4xf32, #tpu.memory_space<vmem>>, %arg3: memref<9x4x8xf32, #tpu.memory_space<vmem>>, %arg4: memref<1x1x2x8xf32, #tpu.memory_space<vmem>>) attributes {dimension_semantics = [#tpu.dimension_semantics<parallel>, #tpu.dimension_semantics<parallel>], iteration_bounds = array<i64: 2, 1>, scalar_prefetch = 0 : i64, scratch_operands = 0 : i64, tpu.core_type = #tpu.core_type<tc>, window_params = [{transform_indices = @transform_0, window_bounds = array<i64: 1, 1, 18, 18, 4>}, {pipeline_mode = #tpu.pipeline_mode<synchronous>, transform_indices = @transform_1, window_bounds = array<i64: 9, 4, 8>}, {transform_indices = @transform_2, window_bounds = array<i64: 1, 1, 2, 8>}]} {
    %c0 = arith.constant 0 : index
    %c0_0 = arith.constant 0 : index
    %c0_1 = arith.constant 0 : index
    %c0_2 = arith.constant 0 : index
    %c0_3 = arith.constant 0 : index
    %0 = vector.load %arg2[%c0, %c0_0, %c0_1, %c0_2, %c0_3] : memref<1x1x18x18x4xf32, #tpu.memory_space<vmem>>, vector<1x1x18x18x4xf32>
    %1 = vector.shape_cast %0 : vector<1x1x18x18x4xf32> to vector<18x18x4xf32>
    %c0_4 = arith.constant 0 : index
    %c0_5 = arith.constant 0 : index
    %c0_6 = arith.constant 0 : index
    %2 = vector.load %arg3[%c0_4, %c0_5, %c0_6] : memref<9x4x8xf32, #tpu.memory_space<vmem>>, vector<9x4x8xf32>
    %3 = vector.extract_strided_slice %1 {offsets = [0, 0, 0], sizes = [16, 16, 4], strides = [1, 1, 1]} : vector<18x18x4xf32> to vector<16x16x4xf32>
    %4 = vector.shape_cast %3 : vector<16x16x4xf32> to vector<256x4xf32>
    %5 = vector.extract_strided_slice %2 {offsets = [0, 0, 0], sizes = [1, 4, 8], strides = [1, 1, 1]} : vector<9x4x8xf32> to vector<1x4x8xf32>
    %6 = vector.shape_cast %5 : vector<1x4x8xf32> to vector<4x8xf32>
    %cst = arith.constant dense<0.000000e+00> : vector<256x8xf32>
    %7 = tpu.matmul %4, %6, %cst {dimension_numbers = #tpu.dot_dimension_numbers<[1], [0], [0], [1], [0, 0, 1, 1], [], []>} : vector<256x4xf32>, vector<4x8xf32>, vector<256x8xf32> -> vector<256x8xf32>
    %8 = vector.extract_strided_slice %1 {offsets = [0, 1, 0], sizes = [16, 16, 4], strides = [1, 1, 1]} : vector<18x18x4xf32> to vector<16x16x4xf32>
    %9 = vector.shape_cast %8 : vector<16x16x4xf32> to vector<256x4xf32>
    %10 = vector.extract_strided_slice %2 {offsets = [1, 0, 0], sizes = [1, 4, 8], strides = [1, 1, 1]} : vector<9x4x8xf32> to vector<1x4x8xf32>
    %11 = vector.shape_cast %10 : vector<1x4x8xf32> to vector<4x8xf32>
    %cst_7 = arith.constant dense<0.000000e+00> : vector<256x8xf32>
    %12 = tpu.matmul %9, %11, %cst_7 {dimension_numbers = #tpu.dot_dimension_numbers<[1], [0], [0], [1], [0, 0, 1, 1], [], []>} : vector<256x4xf32>, vector<4x8xf32>, vector<256x8xf32> -> vector<256x8xf32>
    %13 = arith.addf %7, %12 : vector<256x8xf32>
    %14 = vector.extract_strided_slice %1 {offsets = [0, 2, 0], sizes = [16, 16, 4], strides = [1, 1, 1]} : vector<18x18x4xf32> to vector<16x16x4xf32>
    %15 = vector.shape_cast %14 : vector<16x16x4xf32> to vector<256x4xf32>
    %16 = vector.extract_strided_slice %2 {offsets = [2, 0, 0], sizes = [1, 4, 8], strides = [1, 1, 1]} : vector<9x4x8xf32> to vector<1x4x8xf32>
    %17 = vector.shape_cast %16 : vector<1x4x8xf32> to vector<4x8xf32>
    %cst_8 = arith.constant dense<0.000000e+00> : vector<256x8xf32>
    %18 = tpu.matmul %15, %17, %cst_8 {dimension_numbers = #tpu.dot_dimension_numbers<[1], [0], [0], [1], [0, 0, 1, 1], [], []>} : vector<256x4xf32>, vector<4x8xf32>, vector<256x8xf32> -> vector<256x8xf32>
    %19 = arith.addf %13, %18 : vector<256x8xf32>
    %20 = vector.extract_strided_slice %1 {offsets = [1, 0, 0], sizes = [16, 16, 4], strides = [1, 1, 1]} : vector<18x18x4xf32> to vector<16x16x4xf32>
    %21 = vector.shape_cast %20 : vector<16x16x4xf32> to vector<256x4xf32>
    %22 = vector.extract_strided_slice %2 {offsets = [3, 0, 0], sizes = [1, 4, 8], strides = [1, 1, 1]} : vector<9x4x8xf32> to vector<1x4x8xf32>
    %23 = vector.shape_cast %22 : vector<1x4x8xf32> to vector<4x8xf32>
    %cst_9 = arith.constant dense<0.000000e+00> : vector<256x8xf32>
    %24 = tpu.matmul %21, %23, %cst_9 {dimension_numbers = #tpu.dot_dimension_numbers<[1], [0], [0], [1], [0, 0, 1, 1], [], []>} : vector<256x4xf32>, vector<4x8xf32>, vector<256x8xf32> -> vector<256x8xf32>
    %25 = arith.addf %19, %24 : vector<256x8xf32>
    %26 = vector.extract_strided_slice %1 {offsets = [1, 1, 0], sizes = [16, 16, 4], strides = [1, 1, 1]} : vector<18x18x4xf32> to vector<16x16x4xf32>
    %27 = vector.shape_cast %26 : vector<16x16x4xf32> to vector<256x4xf32>
    %28 = vector.extract_strided_slice %2 {offsets = [4, 0, 0], sizes = [1, 4, 8], strides = [1, 1, 1]} : vector<9x4x8xf32> to vector<1x4x8xf32>
    %29 = vector.shape_cast %28 : vector<1x4x8xf32> to vector<4x8xf32>
    %cst_10 = arith.constant dense<0.000000e+00> : vector<256x8xf32>
    %30 = tpu.matmul %27, %29, %cst_10 {dimension_numbers = #tpu.dot_dimension_numbers<[1], [0], [0], [1], [0, 0, 1, 1], [], []>} : vector<256x4xf32>, vector<4x8xf32>, vector<256x8xf32> -> vector<256x8xf32>
    %31 = arith.addf %25, %30 : vector<256x8xf32>
    %32 = vector.extract_strided_slice %1 {offsets = [1, 2, 0], sizes = [16, 16, 4], strides = [1, 1, 1]} : vector<18x18x4xf32> to vector<16x16x4xf32>
    %33 = vector.shape_cast %32 : vector<16x16x4xf32> to vector<256x4xf32>
    %34 = vector.extract_strided_slice %2 {offsets = [5, 0, 0], sizes = [1, 4, 8], strides = [1, 1, 1]} : vector<9x4x8xf32> to vector<1x4x8xf32>
    %35 = vector.shape_cast %34 : vector<1x4x8xf32> to vector<4x8xf32>
    %cst_11 = arith.constant dense<0.000000e+00> : vector<256x8xf32>
    %36 = tpu.matmul %33, %35, %cst_11 {dimension_numbers = #tpu.dot_dimension_numbers<[1], [0], [0], [1], [0, 0, 1, 1], [], []>} : vector<256x4xf32>, vector<4x8xf32>, vector<256x8xf32> -> vector<256x8xf32>
    %37 = arith.addf %31, %36 : vector<256x8xf32>
    %38 = vector.extract_strided_slice %1 {offsets = [2, 0, 0], sizes = [16, 16, 4], strides = [1, 1, 1]} : vector<18x18x4xf32> to vector<16x16x4xf32>
    %39 = vector.shape_cast %38 : vector<16x16x4xf32> to vector<256x4xf32>
    %40 = vector.extract_strided_slice %2 {offsets = [6, 0, 0], sizes = [1, 4, 8], strides = [1, 1, 1]} : vector<9x4x8xf32> to vector<1x4x8xf32>
    %41 = vector.shape_cast %40 : vector<1x4x8xf32> to vector<4x8xf32>
    %cst_12 = arith.constant dense<0.000000e+00> : vector<256x8xf32>
    %42 = tpu.matmul %39, %41, %cst_12 {dimension_numbers = #tpu.dot_dimension_numbers<[1], [0], [0], [1], [0, 0, 1, 1], [], []>} : vector<256x4xf32>, vector<4x8xf32>, vector<256x8xf32> -> vector<256x8xf32>
    %43 = arith.addf %37, %42 : vector<256x8xf32>
    %44 = vector.extract_strided_slice %1 {offsets = [2, 1, 0], sizes = [16, 16, 4], strides = [1, 1, 1]} : vector<18x18x4xf32> to vector<16x16x4xf32>
    %45 = vector.shape_cast %44 : vector<16x16x4xf32> to vector<256x4xf32>
    %46 = vector.extract_strided_slice %2 {offsets = [7, 0, 0], sizes = [1, 4, 8], strides = [1, 1, 1]} : vector<9x4x8xf32> to vector<1x4x8xf32>
    %47 = vector.shape_cast %46 : vector<1x4x8xf32> to vector<4x8xf32>
    %cst_13 = arith.constant dense<0.000000e+00> : vector<256x8xf32>
    %48 = tpu.matmul %45, %47, %cst_13 {dimension_numbers = #tpu.dot_dimension_numbers<[1], [0], [0], [1], [0, 0, 1, 1], [], []>} : vector<256x4xf32>, vector<4x8xf32>, vector<256x8xf32> -> vector<256x8xf32>
    %49 = arith.addf %43, %48 : vector<256x8xf32>
    %50 = vector.extract_strided_slice %1 {offsets = [2, 2, 0], sizes = [16, 16, 4], strides = [1, 1, 1]} : vector<18x18x4xf32> to vector<16x16x4xf32>
    %51 = vector.shape_cast %50 : vector<16x16x4xf32> to vector<256x4xf32>
    %52 = vector.extract_strided_slice %2 {offsets = [8, 0, 0], sizes = [1, 4, 8], strides = [1, 1, 1]} : vector<9x4x8xf32> to vector<1x4x8xf32>
    %53 = vector.shape_cast %52 : vector<1x4x8xf32> to vector<4x8xf32>
    %cst_14 = arith.constant dense<0.000000e+00> : vector<256x8xf32>
    %54 = tpu.matmul %51, %53, %cst_14 {dimension_numbers = #tpu.dot_dimension_numbers<[1], [0], [0], [1], [0, 0, 1, 1], [], []>} : vector<256x4xf32>, vector<4x8xf32>, vector<256x8xf32> -> vector<256x8xf32>
    %55 = arith.addf %49, %54 : vector<256x8xf32>
    %cst_15 = arith.constant dense<0.000000e+00> : vector<8xf32>
    %56 = vector.multi_reduction <add>, %55, %cst_15 [0] : vector<256x8xf32> to vector<8xf32>
    %57 = vector.shape_cast %56 : vector<8xf32> to vector<1x8xf32>
    %cst_16 = arith.constant 3.906250e-03 : f32
    %58 = vector.broadcast %cst_16 : f32 to vector<1x8xf32>
    %59 = arith.mulf %57, %58 : vector<1x8xf32>
    %60 = vector.broadcast %59 : vector<1x8xf32> to vector<256x8xf32>
    %61 = arith.subf %55, %60 : vector<256x8xf32>
    %62 = arith.mulf %61, %61 : vector<256x8xf32>
    %cst_17 = arith.constant dense<0.000000e+00> : vector<8xf32>
    %63 = vector.multi_reduction <add>, %62, %cst_17 [0] : vector<256x8xf32> to vector<8xf32>
    %64 = vector.shape_cast %63 : vector<8xf32> to vector<1x8xf32>
    %65 = tpu.concatenate %57, %64 in 0 : vector<1x8xf32>, vector<1x8xf32> -> vector<2x8xf32>
    %c0_18 = arith.constant 0 : index
    %c0_19 = arith.constant 0 : index
    %c0_20 = arith.constant 0 : index
    %c0_21 = arith.constant 0 : index
    %66 = vector.load %arg4[%c0_18, %c0_19, %c0_20, %c0_21] : memref<1x1x2x8xf32, #tpu.memory_space<vmem>>, vector<1x1x2x8xf32>
    %67 = vector.shape_cast %66 : vector<1x1x2x8xf32> to vector<2x8xf32>
    %68 = vector.shape_cast %65 : vector<2x8xf32> to vector<1x1x2x8xf32>
    tpu.vector_store %arg4[%c0_18, %c0_19, %c0_20, %c0_21], %68 {strides = array<i32>} : memref<1x1x2x8xf32, #tpu.memory_space<vmem>>, vector<1x1x2x8xf32>,
    return
  }
  func.func @transform_0(%arg0: i32, %arg1: i32) -> (i32, i32, i32, i32, i32) {
    %c0_i32 = arith.constant 0 : i32
    %c0_i32_0 = arith.constant 0 : i32
    %c0_i32_1 = arith.constant 0 : i32
    %c0_i32_2 = arith.constant 0 : i32
    return %arg0, %arg1, %c0_i32, %c0_i32_0, %c0_i32_1 : i32, i32, i32, i32, i32
  }
  func.func @transform_1(%arg0: i32, %arg1: i32) -> (i32, i32, i32) {
    %c0_i32 = arith.constant 0 : i32
    %c0_i32_0 = arith.constant 0 : i32
    %c0_i32_1 = arith.constant 0 : i32
    %c0_i32_2 = arith.constant 0 : i32
    return %c0_i32, %c0_i32_0, %c0_i32_1 : i32, i32, i32
  }
  func.func @transform_2(%arg0: i32, %arg1: i32) -> (i32, i32, i32, i32) {
    %c0_i32 = arith.constant 0 : i32
    %c0_i32_0 = arith.constant 0 : i32
    %c0_i32_1 = arith.constant 0 : i32
    return %arg0, %arg1, %c0_i32, %c0_i32_0 : i32, i32, i32, i32
  }
}

module attributes {stable_mosaic.version = 11 : i64} {
  func.func @_conv_bn_apply_kernel(%arg0: i32, %arg1: i32, %arg2: memref<1x1x18x18x4xf32, #tpu.memory_space<vmem>>, %arg3: memref<9x4x8xf32, #tpu.memory_space<vmem>>, %arg4: memref<1x8xf32, #tpu.memory_space<vmem>>, %arg5: memref<1x8xf32, #tpu.memory_space<vmem>>, %arg6: memref<1x16x16x8xf32, #tpu.memory_space<vmem>>) attributes {dimension_semantics = [#tpu.dimension_semantics<parallel>, #tpu.dimension_semantics<parallel>], iteration_bounds = array<i64: 2, 1>, scalar_prefetch = 0 : i64, scratch_operands = 0 : i64, tpu.core_type = #tpu.core_type<tc>, window_params = [{transform_indices = @transform_0, window_bounds = array<i64: 1, 1, 18, 18, 4>}, {pipeline_mode = #tpu.pipeline_mode<synchronous>, transform_indices = @transform_1, window_bounds = array<i64: 9, 4, 8>}, {pipeline_mode = #tpu.pipeline_mode<synchronous>, transform_indices = @transform_2, window_bounds = array<i64: 1, 8>}, {pipeline_mode = #tpu.pipeline_mode<synchronous>, transform_indices = @transform_3, window_bounds = array<i64: 1, 8>}, {transform_indices = @transform_4, window_bounds = array<i64: 1, 16, 16, 8>}]} {
    %c0 = arith.constant 0 : index
    %c0_0 = arith.constant 0 : index
    %c0_1 = arith.constant 0 : index
    %c0_2 = arith.constant 0 : index
    %c0_3 = arith.constant 0 : index
    %0 = vector.load %arg2[%c0, %c0_0, %c0_1, %c0_2, %c0_3] : memref<1x1x18x18x4xf32, #tpu.memory_space<vmem>>, vector<1x1x18x18x4xf32>
    %1 = vector.shape_cast %0 : vector<1x1x18x18x4xf32> to vector<18x18x4xf32>
    %c0_4 = arith.constant 0 : index
    %c0_5 = arith.constant 0 : index
    %c0_6 = arith.constant 0 : index
    %2 = vector.load %arg3[%c0_4, %c0_5, %c0_6] : memref<9x4x8xf32, #tpu.memory_space<vmem>>, vector<9x4x8xf32>
    %3 = vector.extract_strided_slice %1 {offsets = [0, 0, 0], sizes = [16, 16, 4], strides = [1, 1, 1]} : vector<18x18x4xf32> to vector<16x16x4xf32>
    %4 = vector.shape_cast %3 : vector<16x16x4xf32> to vector<256x4xf32>
    %5 = vector.extract_strided_slice %2 {offsets = [0, 0, 0], sizes = [1, 4, 8], strides = [1, 1, 1]} : vector<9x4x8xf32> to vector<1x4x8xf32>
    %6 = vector.shape_cast %5 : vector<1x4x8xf32> to vector<4x8xf32>
    %cst = arith.constant dense<0.000000e+00> : vector<256x8xf32>
    %7 = tpu.matmul %4, %6, %cst {dimension_numbers = #tpu.dot_dimension_numbers<[1], [0], [0], [1], [0, 0, 1, 1], [], []>} : vector<256x4xf32>, vector<4x8xf32>, vector<256x8xf32> -> vector<256x8xf32>
    %8 = vector.extract_strided_slice %1 {offsets = [0, 1, 0], sizes = [16, 16, 4], strides = [1, 1, 1]} : vector<18x18x4xf32> to vector<16x16x4xf32>
    %9 = vector.shape_cast %8 : vector<16x16x4xf32> to vector<256x4xf32>
    %10 = vector.extract_strided_slice %2 {offsets = [1, 0, 0], sizes = [1, 4, 8], strides = [1, 1, 1]} : vector<9x4x8xf32> to vector<1x4x8xf32>
    %11 = vector.shape_cast %10 : vector<1x4x8xf32> to vector<4x8xf32>
    %cst_7 = arith.constant dense<0.000000e+00> : vector<256x8xf32>
    %12 = tpu.matmul %9, %11, %cst_7 {dimension_numbers = #tpu.dot_dimension_numbers<[1], [0], [0], [1], [0, 0, 1, 1], [], []>} : vector<256x4xf32>, vector<4x8xf32>, vector<256x8xf32> -> vector<256x8xf32>
    %13 = arith.addf %7, %12 : vector<256x8xf32>
    %14 = vector.extract_strided_slice %1 {offsets = [0, 2, 0], sizes = [16, 16, 4], strides = [1, 1, 1]} : vector<18x18x4xf32> to vector<16x16x4xf32>
    %15 = vector.shape_cast %14 : vector<16x16x4xf32> to vector<256x4xf32>
    %16 = vector.extract_strided_slice %2 {offsets = [2, 0, 0], sizes = [1, 4, 8], strides = [1, 1, 1]} : vector<9x4x8xf32> to vector<1x4x8xf32>
    %17 = vector.shape_cast %16 : vector<1x4x8xf32> to vector<4x8xf32>
    %cst_8 = arith.constant dense<0.000000e+00> : vector<256x8xf32>
    %18 = tpu.matmul %15, %17, %cst_8 {dimension_numbers = #tpu.dot_dimension_numbers<[1], [0], [0], [1], [0, 0, 1, 1], [], []>} : vector<256x4xf32>, vector<4x8xf32>, vector<256x8xf32> -> vector<256x8xf32>
    %19 = arith.addf %13, %18 : vector<256x8xf32>
    %20 = vector.extract_strided_slice %1 {offsets = [1, 0, 0], sizes = [16, 16, 4], strides = [1, 1, 1]} : vector<18x18x4xf32> to vector<16x16x4xf32>
    %21 = vector.shape_cast %20 : vector<16x16x4xf32> to vector<256x4xf32>
    %22 = vector.extract_strided_slice %2 {offsets = [3, 0, 0], sizes = [1, 4, 8], strides = [1, 1, 1]} : vector<9x4x8xf32> to vector<1x4x8xf32>
    %23 = vector.shape_cast %22 : vector<1x4x8xf32> to vector<4x8xf32>
    %cst_9 = arith.constant dense<0.000000e+00> : vector<256x8xf32>
    %24 = tpu.matmul %21, %23, %cst_9 {dimension_numbers = #tpu.dot_dimension_numbers<[1], [0], [0], [1], [0, 0, 1, 1], [], []>} : vector<256x4xf32>, vector<4x8xf32>, vector<256x8xf32> -> vector<256x8xf32>
    %25 = arith.addf %19, %24 : vector<256x8xf32>
    %26 = vector.extract_strided_slice %1 {offsets = [1, 1, 0], sizes = [16, 16, 4], strides = [1, 1, 1]} : vector<18x18x4xf32> to vector<16x16x4xf32>
    %27 = vector.shape_cast %26 : vector<16x16x4xf32> to vector<256x4xf32>
    %28 = vector.extract_strided_slice %2 {offsets = [4, 0, 0], sizes = [1, 4, 8], strides = [1, 1, 1]} : vector<9x4x8xf32> to vector<1x4x8xf32>
    %29 = vector.shape_cast %28 : vector<1x4x8xf32> to vector<4x8xf32>
    %cst_10 = arith.constant dense<0.000000e+00> : vector<256x8xf32>
    %30 = tpu.matmul %27, %29, %cst_10 {dimension_numbers = #tpu.dot_dimension_numbers<[1], [0], [0], [1], [0, 0, 1, 1], [], []>} : vector<256x4xf32>, vector<4x8xf32>, vector<256x8xf32> -> vector<256x8xf32>
    %31 = arith.addf %25, %30 : vector<256x8xf32>
    %32 = vector.extract_strided_slice %1 {offsets = [1, 2, 0], sizes = [16, 16, 4], strides = [1, 1, 1]} : vector<18x18x4xf32> to vector<16x16x4xf32>
    %33 = vector.shape_cast %32 : vector<16x16x4xf32> to vector<256x4xf32>
    %34 = vector.extract_strided_slice %2 {offsets = [5, 0, 0], sizes = [1, 4, 8], strides = [1, 1, 1]} : vector<9x4x8xf32> to vector<1x4x8xf32>
    %35 = vector.shape_cast %34 : vector<1x4x8xf32> to vector<4x8xf32>
    %cst_11 = arith.constant dense<0.000000e+00> : vector<256x8xf32>
    %36 = tpu.matmul %33, %35, %cst_11 {dimension_numbers = #tpu.dot_dimension_numbers<[1], [0], [0], [1], [0, 0, 1, 1], [], []>} : vector<256x4xf32>, vector<4x8xf32>, vector<256x8xf32> -> vector<256x8xf32>
    %37 = arith.addf %31, %36 : vector<256x8xf32>
    %38 = vector.extract_strided_slice %1 {offsets = [2, 0, 0], sizes = [16, 16, 4], strides = [1, 1, 1]} : vector<18x18x4xf32> to vector<16x16x4xf32>
    %39 = vector.shape_cast %38 : vector<16x16x4xf32> to vector<256x4xf32>
    %40 = vector.extract_strided_slice %2 {offsets = [6, 0, 0], sizes = [1, 4, 8], strides = [1, 1, 1]} : vector<9x4x8xf32> to vector<1x4x8xf32>
    %41 = vector.shape_cast %40 : vector<1x4x8xf32> to vector<4x8xf32>
    %cst_12 = arith.constant dense<0.000000e+00> : vector<256x8xf32>
    %42 = tpu.matmul %39, %41, %cst_12 {dimension_numbers = #tpu.dot_dimension_numbers<[1], [0], [0], [1], [0, 0, 1, 1], [], []>} : vector<256x4xf32>, vector<4x8xf32>, vector<256x8xf32> -> vector<256x8xf32>
    %43 = arith.addf %37, %42 : vector<256x8xf32>
    %44 = vector.extract_strided_slice %1 {offsets = [2, 1, 0], sizes = [16, 16, 4], strides = [1, 1, 1]} : vector<18x18x4xf32> to vector<16x16x4xf32>
    %45 = vector.shape_cast %44 : vector<16x16x4xf32> to vector<256x4xf32>
    %46 = vector.extract_strided_slice %2 {offsets = [7, 0, 0], sizes = [1, 4, 8], strides = [1, 1, 1]} : vector<9x4x8xf32> to vector<1x4x8xf32>
    %47 = vector.shape_cast %46 : vector<1x4x8xf32> to vector<4x8xf32>
    %cst_13 = arith.constant dense<0.000000e+00> : vector<256x8xf32>
    %48 = tpu.matmul %45, %47, %cst_13 {dimension_numbers = #tpu.dot_dimension_numbers<[1], [0], [0], [1], [0, 0, 1, 1], [], []>} : vector<256x4xf32>, vector<4x8xf32>, vector<256x8xf32> -> vector<256x8xf32>
    %49 = arith.addf %43, %48 : vector<256x8xf32>
    %50 = vector.extract_strided_slice %1 {offsets = [2, 2, 0], sizes = [16, 16, 4], strides = [1, 1, 1]} : vector<18x18x4xf32> to vector<16x16x4xf32>
    %51 = vector.shape_cast %50 : vector<16x16x4xf32> to vector<256x4xf32>
    %52 = vector.extract_strided_slice %2 {offsets = [8, 0, 0], sizes = [1, 4, 8], strides = [1, 1, 1]} : vector<9x4x8xf32> to vector<1x4x8xf32>
    %53 = vector.shape_cast %52 : vector<1x4x8xf32> to vector<4x8xf32>
    %cst_14 = arith.constant dense<0.000000e+00> : vector<256x8xf32>
    %54 = tpu.matmul %51, %53, %cst_14 {dimension_numbers = #tpu.dot_dimension_numbers<[1], [0], [0], [1], [0, 0, 1, 1], [], []>} : vector<256x4xf32>, vector<4x8xf32>, vector<256x8xf32> -> vector<256x8xf32>
    %55 = arith.addf %49, %54 : vector<256x8xf32>
    %c0_15 = arith.constant 0 : index
    %c0_16 = arith.constant 0 : index
    %56 = vector.load %arg4[%c0_15, %c0_16] : memref<1x8xf32, #tpu.memory_space<vmem>>, vector<1x8xf32>
    %57 = vector.broadcast %56 : vector<1x8xf32> to vector<256x8xf32>
    %58 = arith.mulf %55, %57 : vector<256x8xf32>
    %c0_17 = arith.constant 0 : index
    %c0_18 = arith.constant 0 : index
    %59 = vector.load %arg5[%c0_17, %c0_18] : memref<1x8xf32, #tpu.memory_space<vmem>>, vector<1x8xf32>
    %60 = vector.broadcast %59 : vector<1x8xf32> to vector<256x8xf32>
    %61 = arith.addf %58, %60 : vector<256x8xf32>
    %62 = vector.shape_cast %61 : vector<256x8xf32> to vector<16x16x8xf32>
    %c0_19 = arith.constant 0 : index
    %c0_20 = arith.constant 0 : index
    %c0_21 = arith.constant 0 : index
    %c0_22 = arith.constant 0 : index
    %63 = vector.load %arg6[%c0_19, %c0_20, %c0_21, %c0_22] : memref<1x16x16x8xf32, #tpu.memory_space<vmem>>, vector<1x16x16x8xf32>
    %64 = vector.shape_cast %63 : vector<1x16x16x8xf32> to vector<16x16x8xf32>
    %65 = vector.shape_cast %62 : vector<16x16x8xf32> to vector<1x16x16x8xf32>
    tpu.vector_store %arg6[%c0_19, %c0_20, %c0_21, %c0_22], %65 {strides = array<i32>} : memref<1x16x16x8xf32, #tpu.memory_space<vmem>>, vector<1x16x16x8xf32>,
    return
  }
  func.func @transform_0(%arg0: i32, %arg1: i32) -> (i32, i32, i32, i32, i32) {
    %c0_i32 = arith.constant 0 : i32
    %c0_i32_0 = arith.constant 0 : i32
    %c0_i32_1 = arith.constant 0 : i32
    %c0_i32_2 = arith.constant 0 : i32
    return %arg0, %arg1, %c0_i32, %c0_i32_0, %c0_i32_1 : i32, i32, i32, i32, i32
  }
  func.func @transform_1(%arg0: i32, %arg1: i32) -> (i32, i32, i32) {
    %c0_i32 = arith.constant 0 : i32
    %c0_i32_0 = arith.constant 0 : i32
    %c0_i32_1 = arith.constant 0 : i32
    %c0_i32_2 = arith.constant 0 : i32
    return %c0_i32, %c0_i32_0, %c0_i32_1 : i32, i32, i32
  }
  func.func @transform_2(%arg0: i32, %arg1: i32) -> (i32, i32) {
    %c0_i32 = arith.constant 0 : i32
    %c0_i32_0 = arith.constant 0 : i32
    %c0_i32_1 = arith.constant 0 : i32
    return %c0_i32, %c0_i32_0 : i32, i32
  }
  func.func @transform_3(%arg0: i32, %arg1: i32) -> (i32, i32) {
    %c0_i32 = arith.constant 0 : i32
    %c0_i32_0 = arith.constant 0 : i32
    %c0_i32_1 = arith.constant 0 : i32
    return %c0_i32, %c0_i32_0 : i32, i32
  }
  func.func @transform_4(%arg0: i32, %arg1: i32) -> (i32, i32, i32, i32) {
    %c0_i32 = arith.constant 0 : i32
    %c0_i32_0 = arith.constant 0 : i32
    %c0_i32_1 = arith.constant 0 : i32
    return %arg0, %arg1, %c0_i32, %c0_i32_0 : i32, i32, i32, i32
  }
}

</mosaic_0001>

<bundles_post_ra>
// kernel: _lambda_.2
= control target key start
LH: loop header
LB: loop body
LE: loop exit
PB: predicated region body
PF: predicated region fallthrough
CT: control target
= control target key end

     0   :  { %s4632_s9 = smov 0   ;;  %s4634_s10 = smov 0   ;;  %s6004_s0 = inlined_call_operand.vmem [shape: f32[2,1,18,18,4], index: 0, kind: input, shape index: {}]   ;;  %s6005_s1 = inlined_call_operand.vmem [shape: f32[9,4,8], index: 1, kind: input, shape index: {}]   ;;  %s6006_s2 = inlined_call_operand.vmem [shape: f32[2,1,2,8], index: 2, kind: output, shape index: {}]  }
   0x1   :  { %s4636_s11 = smov 0  }
   0x2 LB: > { %s24_s12 = sadd.s32 1, %s4611_s10  ;;  %p3261_p0 = scmp.ge.s32.totalorder %s4615_s11, 1  ;;  %s4615_s11 = sphi %s4636_s11, %s12_s11   ;;  %s4611_s10 = sphi %s4634_s10, %s6182_s10   ;;  %s4607_s9 = sphi %s4632_s9, %s6181_s9  }
   0x3   : > { %p26_p1 = scmp.ge.s32.totalorder %s24_s12, 2  ;;  %p132_p2 = scmp.lt.s32.totalorder %s4615_s11, 3 }
   0x5   : > { %s6184_s12 = smov (%p26_p1, %s24_s12), 0  ;;  %p133_p3 = pnand %p3261_p0, %p132_p2 }
   0x7   : > { %136 = sbr.rel (%p133_p3) target bundleno = 625 (0x271), region = 28 }
   0xe   : > { %v231_v0 = vld [vmem:[%s6005_s1 + $0x4] sm:$0xf]  ;;  %vm433_vm0 = vcmask 1043456   ;;  %v4656_v1 = vld [vmem:[%s6005_s1 + $0x10] sm:$0xf]  ;;  %p160_p4 = scmp.lt.s32.totalorder %s4607_s9, 1 }
   0xf   : > { %3860 = vmatprep.subr.msk.mxu1 %vm433_vm0, %v231_v0  ;;  %4060 = vmatprep.subr.msk.mxu0 %vm433_vm0, %v4656_v1  ;;  %v230_v2 = vld [vmem:[%s6005_s1] sm:$0xf]  ;;  %v235_v3 = vld [vmem:[%s6005_s1 + $0x14] sm:$0xf]  ;;  %vm287_vm1 = vcmask 1046528   ;;  %vm368_vm2 = vcmask 31744  }
  0x10   : > { %3861 = vmatpush3.msk.msra.mxu1 %vm433_vm0, %v231_v0  ;;  %4061 = vmatpush3.msk.msra.mxu0 %vm433_vm0, %v4656_v1  ;;  %s6186_s9 = smov (!%p160_p4, %s4607_s9), 1  ;;  %v4743_v33 = vld [vmem:[%s6005_s1 + $0x18] sm:$0xf]  ;;  %v4753_v35 = vld [vmem:[%s6005_s1 + $0x8] sm:$0xf]  ;;  %vm954_vm3 = vcmask 1045504  }
  0x11   : > { %3910 = vmatprep.subr.msk.mxu1 %vm433_vm0, %v230_v2  ;;  %4110 = vmatprep.subr.msk.mxu0 %vm433_vm0, %v235_v3  ;;  %s4568_s21 = smul.u32 432, %s6186_s9  ;;  %vm2969_vm4 = vcmask 64512   ;;  %s3263_s7 = sshll.u32 %s6186_s9, 1  ;;  %vm3173_vm5 = vcmask 1040384   ;;  %vm3175_vm6 = vcmask 58368  }
  0x12   : > { %s175_s14 = scalar_lea.vmem %s6006_s2, %s3263_s7 }
  0x13   : > { %s4678_s24 = scalar_lea.vmem %s6004_s0, %s4568_s21 }
  0x14   : > { %v4681_v4 = vld [vmem:[%s4678_s24] sm:$0xff]  ;;  %v4684_v5 = vld [vmem:[%s4678_s24 + $0x8] sm:$0xff]  ;;  %v4687_v6 = vld [vmem:[%s4678_s24 + $0x18] sm:$0xff] }
  0x15   : > { %6080 = vst [vmem:[#allocation2_spill] sm:$0xff] %v4687_v6  ;;  %v288_v7 = vrot.slane %v4681_v4, 1  ;;  %v289_v8 = vrot.slane %v4684_v5, 1  ;;  %v4692_v9 = vld [vmem:[%s4678_s24 + $0x20] sm:$0xff]  ;;  %v293_v10 = vrot.slane %v4687_v6, 1  ;;  %v4704_v15 = vld [vmem:[%s4678_s24 + $0x30] sm:$0xff] }
  0x16   : > { %6081 = vst [vmem:[#allocation3_spill] sm:$0xff] %v4692_v9  ;;  %v4696_v11 = vld [vmem:[%s4678_s24 + $0x10] sm:$0x3]  ;;  %v294_v12 = vrot.slane %v4692_v9, 1  ;;  %v4701_v14 = vld [vmem:[%s4678_s24 + $0x28] sm:$0x3] }
  0x17   : > { %v291_v13 = vrot.slane %v4696_v11, 1  ;;  %v290_v16 = vsel %vm287_vm1, %v288_v7, %v289_v8  ;;  %v296_v17 = vrot.slane %v4701_v14, 1  ;;  %v4709_v18 = vld [vmem:[%s4678_s24 + $0x38] sm:$0xff]  ;;  %v298_v19 = vrot.slane %v4704_v15, 1  ;;  %v4713_v20 = vld [vmem:[%s4678_s24 + $0x40] sm:$0x3] }
  0x18   : > { %3862 = vmatprep.mubr.msk.f32.mxu1 %vm368_vm2, %v290_v16  ;;  %v295_v21 = vsel %vm287_vm1, %v293_v10, %v294_v12  ;;  %v299_v23 = vrot.slane %v4709_v18, 1  ;;  %v301_v24 = vrot.slane %v4713_v20, 1  ;;  %v4721_v25 = vld [vmem:[%s4678_s24 + $0x48] sm:$0xff]  ;;  %v4724_v26 = vld [vmem:[%s4678_s24 + $0x50] sm:$0xff]  ;;  %v4727_v27 = vld [vmem:[%s4678_s24 + $0x58] sm:$0x3] }
  0x19   : > { %v292_v22 = vsel %vm287_vm1, %v289_v8, %v291_v13  ;;  %4062 = vmatprep.mubr.msk.f32.mxu0 %vm368_vm2, %v295_v21  ;;  %v297_v28 = vsel %vm287_vm1, %v294_v12, %v296_v17  ;;  %v303_v29 = vrot.slane %v4721_v25, 1  ;;  %v304_v30 = vrot.slane %v4724_v26, 1  ;;  %v4735_v31 = vld [vmem:[%s4678_s24 + $0x60] sm:$0xff]  ;;  %v4738_v32 = vld [vmem:[%s4678_s24 + $0x68] sm:$0xff]  ;;  %v4769_v41 = vld [vmem:[%s4678_s24 + $0x70] sm:$0x3] }
  0x1a   : > { %3863 = vmatmul.mubr.msk.f32.vlgmr.msra.gmra.mrb[0].mxu1 %vm368_vm2, %v292_v22  ;;  %4063 = vmatmul.mubr.msk.f32.vlgmr.msra.gmra.mrb[0].mxu0 %vm368_vm2, %v297_v28  ;;  %v4748_v34 = vsel %vm287_vm1, %v298_v19, %v299_v23  ;;  %v4758_v36 = vsel %vm287_vm1, %v299_v23, %v301_v24  ;;  %v306_v37 = vrot.slane %v4727_v27, 1  ;;  %v308_v39 = vrot.slane %v4735_v31, 1  ;;  %v4775_v42 = vld [vmem:[%s4678_s24 + $0x78] sm:$0xff]  ;;  %v4778_v43 = vld [vmem:[%s4678_s24 + $0x80] sm:$0xff]  ;;  %v4798_v49 = vld [vmem:[%s4678_s24 + $0x88] sm:$0x3] }
  0x1b   : > { %3911 = vmatpush3.msk.msra.mxu1 %vm433_vm0, %v230_v2  ;;  %6082 = vst [vmem:[#allocation4_spill] sm:$0xff] %v4748_v34  ;;  %4111 = vmatpush3.msk.msra.mxu0 %vm433_vm0, %v235_v3  ;;  %6083 = vst [vmem:[#allocation5_spill] sm:$0xff] %v4758_v36  ;;  %v4764_v38 = vsel %vm287_vm1, %v303_v29, %v304_v30  ;;  %v309_v40 = vrot.slane %v4738_v32, 1  ;;  %v311_v45 = vrot.slane %v4769_v41, 1  ;;  %v313_v47 = vrot.slane %v4775_v42, 1  ;;  %v4803_v50 = vld [vmem:[%s4678_s24 + $0x90] sm:$0xff] }
  0x1c   : > { %3865 = vmatprep.mubr.msk.f32.mxu1 %vm368_vm2, %v295_v21  ;;  %4065 = vmatprep.mubr.msk.f32.mxu0 %vm368_vm2, %v4748_v34  ;;  %6084 = vst [vmem:[#allocation6_spill] sm:$0xff] %v4764_v38  ;;  %v4789_v44 = vsel %vm287_vm1, %v304_v30, %v306_v37  ;;  %v314_v48 = vrot.slane %v4778_v43, 1  ;;  %v4806_v51 = vld [vmem:[%s4678_s24 + $0x98] sm:$0xff]  ;;  %v316_v53 = vrot.slane %v4798_v49, 1  ;;  %v318_v55 = vrot.slane %v4803_v50, 1  ;;  %v4829_v58 = vld [vmem:[%s4678_s24 + $0xa8] sm:$0xff] }
  0x1d   : > { %4160 = vmatprep.subr.msk.mxu0 %vm433_vm0, %v4743_v33  ;;  %3960 = vmatprep.subr.msk.mxu1 %vm433_vm0, %v4753_v35  ;;  %6085 = vst [vmem:[#allocation7_spill] sm:$0xff] %v4789_v44  ;;  %v4793_v46 = vsel %vm287_vm1, %v308_v39, %v309_v40  ;;  %v4815_v52 = vsel %vm287_vm1, %v309_v40, %v311_v45  ;;  %v319_v56 = vrot.slane %v4806_v51, 1  ;;  %v4824_v57 = vld [vmem:[%s4678_s24 + $0xa0] sm:$0x3]  ;;  %v4832_v59 = vld [vmem:[%s4678_s24 + $0xb0] sm:$0xff]  ;;  %v323_v63 = vrot.slane %v4829_v58, 1 }
  0x1e   : > { %3866 = vmatmul.mubr.msk.f32.gmra.mrb[2].mxu1 %vm368_vm2, %v297_v28  ;;  %4066 = vmatmul.mubr.msk.f32.gmra.mrb[2].mxu0 %vm368_vm2, %v4758_v36  ;;  %6086 = vst [vmem:[#allocation8_spill] sm:$0xff] %v4793_v46  ;;  %6087 = vst [vmem:[#allocation9_spill] sm:$0xff] %v4815_v52  ;;  %v4819_v54 = vsel %vm287_vm1, %v313_v47, %v314_v48  ;;  %v4841_v60 = vsel %vm287_vm1, %v314_v48, %v316_v53  ;;  %v321_v61 = vrot.slane %v4824_v57, 1  ;;  %v4850_v2 = vld [vmem:[%s4678_s24 + $0xb8] sm:$0x3]  ;;  %v4855_v3 = vld [vmem:[%s4678_s24 + $0xc0] sm:$0xff] }
  0x1f   : > { %3868 = vmatprep.mubr.msk.f32.mxu1 %vm368_vm2, %v4748_v34  ;;  %4068 = vmatprep.mubr.msk.f32.mxu0 %vm368_vm2, %v4764_v38  ;;  %6088 = vst [vmem:[#allocation10_spill] sm:$0xff] %v4819_v54  ;;  %6089 = vst [vmem:[#allocation11_spill] sm:$0xff] %v4841_v60  ;;  %v4845_v62 = vsel %vm287_vm1, %v318_v55, %v319_v56  ;;  %v324_v0 = vrot.slane %v4832_v59, 1  ;;  %v4858_v7 = vld [vmem:[%s4678_s24 + $0xc8] sm:$0xff]  ;;  %v326_v10 = vrot.slane %v4850_v2, 1  ;;  %v328_v13 = vrot.slane %v4855_v3, 1 }
  0x20   : > { %6090 = vst [vmem:[#allocation12_spill] sm:$0xff] %v4845_v62  ;;  %v4867_v8 = vsel %vm287_vm1, %v319_v56, %v321_v61  ;;  %v329_v16 = vrot.slane %v4858_v7, 1  ;;  %v4876_v17 = vld [vmem:[%s4678_s24 + $0xd0] sm:$0x3]  ;;  %v960_v23 = vrot.slane %v4687_v6, 2  ;;  %v961_v24 = vrot.slane %v4692_v9, 2 }
  0x21   : > { %6091 = vst [vmem:[#allocation13_spill] sm:$0xff] %v4867_v8  ;;  %v4871_v12 = vsel %vm287_vm1, %v323_v63, %v324_v0  ;;  %v4887_v19 = vsel %vm287_vm1, %v324_v0, %v326_v10  ;;  %v331_v21 = vrot.slane %v4876_v17, 1  ;;  %v4896_v28 = vld [vmem:[%s4678_s24 + $0xd8] sm:$0xff]  ;;  %v4899_v29 = vld [vmem:[%s4678_s24 + $0xe0] sm:$0xff]  ;;  %v963_v30 = vrot.slane %v4701_v14, 2  ;;  %v4924_v53 = vld [vmem:[%s4678_s24 + $0xf0] sm:$0xff] }
  0x22   : > { %3869 = vmatmul.mubr.msk.f32.gmra.mrb[4].mxu1 %vm368_vm2, %v4758_v36  ;;  %4069 = vmatmul.mubr.msk.f32.gmra.mrb[4].mxu0 %vm368_vm2, %v4789_v44  ;;  %6092 = vst [vmem:[#allocation14_spill] sm:$0xff] %v4871_v12  ;;  %6093 = vst [vmem:[#allocation15_spill] sm:$0xff] %v4887_v19  ;;  %v4891_v22 = vsel %vm287_vm1, %v328_v13, %v329_v16  ;;  %v333_v39 = vrot.slane %v4896_v28, 1  ;;  %v334_v40 = vrot.slane %v4899_v29, 1  ;;  %v4916_v45 = vld [vmem:[%s4678_s24 + $0xe8] sm:$0x3] }
  0x23   : > { %3871 = vmatprep.mubr.msk.f32.mxu1 %vm368_vm2, %v4764_v38  ;;  %4071 = vmatprep.mubr.msk.f32.mxu0 %vm368_vm2, %v4793_v46  ;;  %6094 = vst [vmem:[#allocation16_spill] sm:$0xff] %v4891_v22  ;;  %v4911_v37 = vsel %vm287_vm1, %v329_v16, %v331_v21  ;;  %v4919_v47 = vsel %vm954_vm3, %v960_v23, %v961_v24  ;;  %v965_v48 = vrot.slane %v4704_v15, 2  ;;  %v966_v14 = vrot.slane %v4709_v18, 2  ;;  %v4927_v55 = vld [vmem:[%s4678_s24 + $0xf8] sm:$0xff]  ;;  %v4948_v16 = vld [vmem:[%s4678_s24 + $0x100] sm:$0x3] }
  0x24   : > { %6095 = vst [vmem:[#allocation17_spill] sm:$0xff] %v4911_v37  ;;  %v336_v56 = vrot.slane %v4916_v45, 1  ;;  %v968_v61 = vrot.slane %v4713_v20, 2  ;;  %v4940_v63 = vsel %vm954_vm3, %v961_v24, %v963_v30  ;;  %v4943_v0 = vsel %vm287_vm1, %v333_v39, %v334_v40  ;;  %v4959_v24 = vld [vmem:[%s4678_s24 + $0x110] sm:$0xff]  ;;  %v4966_v30 = vld [vmem:[%s6005_s1 + $0x1c] sm:$0xf] }
  0x25   : > { %6096 = vst [vmem:[#allocation18_spill] sm:$0xff] %v4943_v0  ;;  %v338_v10 = vrot.slane %v4924_v53, 1  ;;  %v339_v13 = vrot.slane %v4927_v55, 1  ;;  %v4951_v21 = vsel %vm954_vm3, %v965_v48, %v966_v14  ;;  %v970_v20 = vrot.slane %v4721_v25, 2  ;;  %v5062_v36 = vld [vmem:[%s4678_s24 + $0x148] sm:$0x3] }
  0x26   : > { %3872 = vmatmul.mubr.msk.f32.gmra.mrb[6].mxu1 %vm368_vm2, %v4789_v44  ;;  %4072 = vmatmul.mubr.msk.f32.gmra.mrb[6].mxu0 %vm368_vm2, %v4815_v52  ;;  %v971_v23 = vrot.slane %v4724_v26, 2  ;;  %v4973_v39 = vsel %vm287_vm1, %v334_v40, %v336_v56  ;;  %v4976_v48 = vsel %vm954_vm3, %v966_v14, %v968_v61  ;;  %v344_v40 = vrot.slane %v4959_v24, 1  ;;  %v4990_v56 = vld [vmem:[%s4678_s24 + $0x118] sm:$0x3] }
  0x27   : > { %3874 = vmatprep.mubr.msk.f32.mxu1 %vm368_vm2, %v4793_v46  ;;  %4074 = vmatprep.mubr.msk.f32.mxu0 %vm368_vm2, %v4819_v54  ;;  %6097 = vst [vmem:[#allocation19_spill] sm:$0xff] %v4973_v39  ;;  %6098 = vst [vmem:[#allocation20_spill] sm:$0xff] %v4976_v48  ;;  %v975_v61 = vrot.slane %v4735_v31, 2  ;;  %v5035_v46 = vld [vmem:[%s4678_s24 + $0x138] sm:$0xff]  ;;  %v983_v44 = vrot.slane %v4798_v49, 2  ;;  %v988_v34 = vrot.slane %v4824_v57, 2 }
  0x28   : > { %v4993_v14 = vsel %vm954_vm3, %v970_v20, %v971_v23  ;;  %v346_v20 = vrot.slane %v4990_v56, 1  ;;  %v353_v38 = vrot.slane %v5035_v46, 1  ;;  %v990_v57 = vrot.slane %v4829_v58, 2 }
  0x29   : > { %6100 = vst [vmem:[#allocation22_spill] sm:$0xff] %v4993_v14 }
  0x2a   : > { %3875 = vmatmul.mubr.msk.f32.gmra.mrb[8].mxu1 %vm368_vm2, %v4815_v52  ;;  %4075 = vmatmul.mubr.msk.f32.gmra.mrb[8].mxu0 %vm368_vm2, %v4841_v60  ;;  %v5027_v52 = vld [vmem:[%s4678_s24 + $0x130] sm:$0x3] }
  0x2b   : > { %3877 = vmatprep.mubr.msk.f32.mxu1 %vm368_vm2, %v4819_v54  ;;  %4077 = vmatprep.mubr.msk.f32.mxu0 %vm368_vm2, %v4845_v62 }
  0x2e   : > { %3878 = vmatmul.mubr.msk.f32.gmra.mrb[10].mxu1 %vm368_vm2, %v4841_v60  ;;  %4078 = vmatmul.mubr.msk.f32.gmra.mrb[10].mxu0 %vm368_vm2, %v4867_v8 }
  0x2f   : > { %3880 = vmatprep.mubr.msk.f32.mxu1 %vm368_vm2, %v4845_v62  ;;  %4080 = vmatprep.mubr.msk.f32.mxu0 %vm368_vm2, %v4871_v12  ;;  %v978_v62 = vrot.slane %v4769_v41, 2  ;;  %v980_v41 = vrot.slane %v4775_v42, 2 }
  0x32   : > { %3881 = vmatmul.mubr.msk.f32.gmra.mrb[12].mxu1 %vm368_vm2, %v4867_v8  ;;  %4081 = vmatmul.mubr.msk.f32.gmra.mrb[12].mxu0 %vm368_vm2, %v4887_v19  ;;  %v4998_v8 = vld [vmem:[%s4678_s24 + $0x120] sm:$0xff] }
  0x33   : > { %3883 = vmatprep.mubr.msk.f32.mxu1 %vm368_vm2, %v4871_v12  ;;  %4083 = vmatprep.mubr.msk.f32.mxu0 %vm368_vm2, %v4891_v22  ;;  %v973_v12 = vrot.slane %v4727_v27, 2  ;;  %v348_v54 = vrot.slane %v4998_v8, 1 }
  0x35   : > { %v5019_v60 = vsel %vm954_vm3, %v971_v23, %v973_v12  ;;  %v5038_v12 = vld [vmem:[%s4678_s24 + $0x140] sm:$0xff] }
  0x36   : > { %3884 = vmatmul.mubr.msk.f32.gmra.mrb[14].mxu1 %vm368_vm2, %v4887_v19  ;;  %4084 = vmatmul.mubr.msk.f32.gmra.mrb[14].mxu0 %vm368_vm2, %v4911_v37  ;;  %v4984_v19 = vsel %vm287_vm1, %v338_v10, %v339_v13  ;;  %v5001_v10 = vld [vmem:[%s4678_s24 + $0x128] sm:$0xff]  ;;  %6102 = vst [vmem:[#allocation24_spill] sm:$0xff] %v5019_v60 }
  0x37   : > { %3886 = vmatprep.mubr.msk.f32.mxu1 %vm368_vm2, %v4891_v22  ;;  %4112 = vmatprep.mubr.msk.f32.mxu0 %vm368_vm2, %v4919_v47  ;;  %v4956_v22 = vld [vmem:[%s4678_s24 + $0x108] sm:$0xff]  ;;  %6099 = vst [vmem:[#allocation21_spill] sm:$0xff] %v4984_v19 }
  0x3a   : > { %3887 = vmatmul.mubr.msk.f32.gmra.mrb[16].mxu1 %vm368_vm2, %v4911_v37  ;;  %4113 = vmatmul.mubr.msk.f32.vlgmr.msra.gmra.mrb[0].mxu0 %vm368_vm2, %v4940_v63  ;;  %v341_v37 = vrot.slane %v4948_v16, 1 }
  0x3b   : > { %3889 = vmatprep.mubr.msk.f32.mxu1 %vm368_vm2, %v4943_v0  ;;  %4161 = vmatpush3.msk.msra.mxu0 %vm433_vm0, %v4743_v33  ;;  %v343_v0 = vrot.slane %v4956_v22, 1  ;;  %v976_v33 = vrot.slane %v4738_v32, 2 }
  0x3c   : > { %4115 = vmatprep.mubr.msk.f32.mxu0 %vm368_vm2, %v4951_v21  ;;  %4210 = vmatprep.subr.msk.mxu0 %vm433_vm0, %v4966_v30  ;;  %v5012_v27 = vsel %vm287_vm1, %v339_v13, %v341_v37  ;;  %v981_v13 = vrot.slane %v4778_v43, 2 }
  0x3d   : > { %6101 = vst [vmem:[#allocation23_spill] sm:$0xff] %v5012_v27  ;;  %v5030_v37 = vsel %vm954_vm3, %v975_v61, %v976_v33  ;;  %v5050_v23 = vsel %vm954_vm3, %v976_v33, %v978_v62  ;;  %v351_v61 = vrot.slane %v5027_v52, 1  ;;  %v985_v62 = vrot.slane %v4803_v50, 2 }
  0x3e   : > { %3890 = vmatmul.mubr.msk.f32.gmra.mrb[18].mxu1 %vm368_vm2, %v4973_v39  ;;  %4116 = vmatmul.mubr.msk.f32.gmra.mrb[2].mxu0 %vm368_vm2, %v4976_v48  ;;  %v5022_v39 = vsel %vm287_vm1, %v343_v0, %v344_v40  ;;  %6104 = vst [vmem:[#allocation26_spill] sm:$0xff] %v5030_v37  ;;  %v5047_v0 = vsel %vm287_vm1, %v344_v40, %v346_v20  ;;  %6106 = vst [vmem:[#allocation28_spill] sm:$0xff] %v5050_v23  ;;  %v986_v33 = vrot.slane %v4806_v51, 2  ;;  %v5070_v20 = vld [vmem:[%s4678_s24 + $0x150] sm:$0xff]  ;;  %v5132_v48 = vld [vmem:[%s4678_s24 + $0x178] sm:$0x3] }
  0x3f   : > { %3892 = vmatprep.mubr.msk.f32.mxu1 %vm368_vm2, %v4984_v19  ;;  %4118 = vmatprep.mubr.msk.f32.mxu0 %vm368_vm2, %v4993_v14  ;;  %6103 = vst [vmem:[#allocation25_spill] sm:$0xff] %v5022_v39  ;;  %v349_v19 = vrot.slane %v5001_v10, 1  ;;  %6105 = vst [vmem:[#allocation27_spill] sm:$0xff] %v5047_v0  ;;  %v5065_v40 = vsel %vm954_vm3, %v980_v41, %v981_v13  ;;  %v356_v41 = vrot.slane %v5062_v36, 1 }
  0x40   : > { %6108 = vst [vmem:[#allocation30_spill] sm:$0xff] %v5065_v40 }
  0x41   : > { %v5082_v49 = vsel %vm287_vm1, %v349_v19, %v351_v61  ;;  %v991_v61 = vrot.slane %v4832_v59, 2 }
  0x42   : > { %3893 = vmatmul.mubr.msk.f32.gmra.mrb[20].mxu1 %vm368_vm2, %v5012_v27  ;;  %4119 = vmatmul.mubr.msk.f32.gmra.mrb[4].mxu0 %vm368_vm2, %v5019_v60  ;;  %v5056_v27 = vsel %vm287_vm1, %v348_v54, %v349_v19  ;;  %v5073_v54 = vld [vmem:[%s4678_s24 + $0x158] sm:$0xff]  ;;  %6109 = vst [vmem:[#allocation31_spill] sm:$0xff] %v5082_v49  ;;  %v5097_v60 = vld [vmem:[%s4678_s24 + $0x160] sm:$0x3]  ;;  %v5100_v19 = vsel %vm954_vm3, %v985_v62, %v986_v33 }
  0x43   : > { %3895 = vmatprep.mubr.msk.f32.mxu1 %vm368_vm2, %v5022_v39  ;;  %4121 = vmatprep.mubr.msk.f32.mxu0 %vm368_vm2, %v5030_v37  ;;  %6107 = vst [vmem:[#allocation29_spill] sm:$0xff] %v5056_v27  ;;  %v354_v39 = vrot.slane %v5038_v12, 1  ;;  %v5089_v37 = vsel %vm954_vm3, %v981_v13, %v983_v44  ;;  %v5108_v44 = vld [vmem:[%s4678_s24 + $0x170] sm:$0xff]  ;;  %v5120_v13 = vsel %vm954_vm3, %v986_v33, %v988_v34  ;;  %v361_v62 = vrot.slane %v5097_v60, 1 }
  0x44   : > { %6110 = vst [vmem:[#allocation32_spill] sm:$0xff] %v5089_v37  ;;  %6112 = vst [vmem:[#allocation34_spill] sm:$0xff] %v5108_v44  ;;  %v995_v34 = vrot.slane %v4855_v3, 2  ;;  %v996_v33 = vrot.slane %v4858_v7, 2 }
  0x45   : > { %6114 = vst [vmem:[#allocation36_spill] sm:$0xff] %v5120_v13 }
  0x46   : > { %3896 = vmatmul.mubr.msk.f32.gmra.mrb[22].mxu1 %vm368_vm2, %v5047_v0  ;;  %4122 = vmatmul.mubr.msk.f32.gmra.mrb[6].mxu0 %vm368_vm2, %v5050_v23  ;;  %v5092_v0 = vsel %vm287_vm1, %v353_v38, %v354_v39  ;;  %v358_v23 = vrot.slane %v5070_v20, 1  ;;  %v5117_v38 = vsel %vm287_vm1, %v354_v39, %v356_v41  ;;  %v5135_v39 = vsel %vm954_vm3, %v990_v57, %v991_v61 }
  0x47   : > { %3898 = vmatprep.mubr.msk.f32.mxu1 %vm368_vm2, %v5056_v27  ;;  %4124 = vmatprep.mubr.msk.f32.mxu0 %vm368_vm2, %v5065_v40  ;;  %6111 = vst [vmem:[#allocation33_spill] sm:$0xff] %v5092_v0  ;;  %v359_v27 = vrot.slane %v5073_v54, 1  ;;  %v5105_v40 = vld [vmem:[%s4678_s24 + $0x168] sm:$0xff]  ;;  %6113 = vst [vmem:[#allocation35_spill] sm:$0xff] %v5117_v38 }
  0x49   : > { %v5126_v14 = vsel %vm287_vm1, %v358_v23, %v359_v27  ;;  %v366_v23 = vrot.slane %v5132_v48, 1 }
  0x4a   : > { %3899 = vmatmul.mubr.msk.f32.gmra.mrb[24].mxu1 %vm368_vm2, %v5082_v49  ;;  %4125 = vmatmul.mubr.msk.f32.gmra.mrb[8].mxu0 %vm368_vm2, %v5089_v37  ;;  %6115 = vst [vmem:[#allocation37_spill] sm:$0xff] %v5126_v14  ;;  %v993_v49 = vrot.slane %v4850_v2, 2  ;;  %v363_v37 = vrot.slane %v5105_v40, 1  ;;  %v5146_v2 = vsel %vm287_vm1, %v359_v27, %v361_v62  ;;  %v1001_v27 = vrot.slane %v4899_v29, 2 }
  0x4b   : > { %3901 = vmatprep.mubr.msk.f32.mxu1 %vm368_vm2, %v5092_v0  ;;  %4127 = vmatprep.mubr.msk.f32.mxu0 %vm368_vm2, %v5100_v19  ;;  %v364_v0 = vrot.slane %v5108_v44, 1  ;;  %6116 = vst [vmem:[#allocation38_spill] sm:$0xff] %v5146_v2  ;;  %v1005_v62 = vrot.slane %v4924_v53, 2 }
  0x4c   : > { %v5152_v41 = vsel %vm954_vm3, %v991_v61, %v993_v49  ;;  %v1003_v49 = vrot.slane %v4916_v45, 2 }
  0x4d   : > { %v5155_v57 = vsel %vm287_vm1, %v363_v37, %v364_v0  ;;  %v5170_v37 = vsel %vm287_vm1, %v364_v0, %v366_v23  ;;  %v5205_v23 = vld [vmem:[%s6005_s1 + $0xc] sm:$0xf] }
  0x4e   : > { %3902 = vmatmul.mubr.msk.f32.gmra.mrb[26].mxu1 %vm368_vm2, %v5117_v38  ;;  %4128 = vmatmul.mubr.msk.f32.gmra.mrb[10].mxu0 %vm368_vm2, %v5120_v13  ;;  %6117 = vst [vmem:[#allocation39_spill] sm:$0xff] %v5155_v57  ;;  %v998_v38 = vrot.slane %v4876_v17, 2  ;;  %v5159_v13 = vsel %vm954_vm3, %v995_v34, %v996_v33  ;;  %6118 = vst [vmem:[#allocation40_spill] sm:$0xff] %v5170_v37  ;;  %v1006_v34 = vrot.slane %v4927_v55, 2 }
  0x4f   : > { %3904 = vmatprep.mubr.msk.f32.mxu1 %vm368_vm2, %v5126_v14  ;;  %4130 = vmatprep.mubr.msk.f32.mxu0 %vm368_vm2, %v5135_v39  ;;  %v1000_v14 = vrot.slane %v4896_v28, 2  ;;  %v5192_v45 = vsel %vm954_vm3, %v1001_v27, %v1003_v49 }
  0x50   : > { %v5175_v17 = vsel %vm954_vm3, %v996_v33, %v998_v38  ;;  %v5196_v0 = vsel %vm954_vm3, %v1005_v62, %v1006_v34  ;;  %v1010_v38 = vrot.slane %v4956_v22, 2  ;;  %v1011_v33 = vrot.slane %v4959_v24, 2 }
  0x51   : > { %v5179_v61 = vsel %vm954_vm3, %v1000_v14, %v1001_v27  ;;  %v1008_v14 = vrot.slane %v4948_v16, 2  ;;  %v1013_v27 = vrot.slane %v4990_v56, 2  ;;  %v1015_v62 = vrot.slane %v4998_v8, 2 }
  0x52   : > { %3905 = vmatmul.mubr.msk.f32.gmra.mrb[28].mxu1 %vm368_vm2, %v5146_v2  ;;  %4131 = vmatmul.mubr.msk.f32.gmra.mrb[12].mxu0 %vm368_vm2, %v5152_v41  ;;  %v5220_v49 = vsel %vm954_vm3, %v1010_v38, %v1011_v33  ;;  %v1020_v38 = vrot.slane %v5035_v46, 2  ;;  %v1031_v2 = vrot.slane %v5108_v44, 2 }
  0x53   : > { %3907 = vmatprep.mubr.msk.f32.mxu1 %vm368_vm2, %v5155_v57  ;;  %4133 = vmatprep.mubr.msk.f32.mxu0 %vm368_vm2, %v5159_v13  ;;  %v5216_v16 = vsel %vm954_vm3, %v1006_v34, %v1008_v14  ;;  %6119 = vst [vmem:[#allocation41_spill] sm:$0xff] %v5220_v49  ;;  %v5235_v56 = vsel %vm954_vm3, %v1011_v33, %v1013_v27  ;;  %v1018_v34 = vrot.slane %v5027_v52, 2  ;;  %v1023_v33 = vrot.slane %v5062_v36, 2 }
  0x54   : > { %v1026_v57 = vrot.slane %v5073_v54, 2 }
  0x56   : > { %3908 = vmatmul.mubr.msk.f32.gmra.mrb[30].mxu1 %vm368_vm2, %v5170_v37  ;;  %4134 = vmatmul.mubr.msk.f32.gmra.mrb[14].mxu0 %vm368_vm2, %v5175_v17  ;;  %v1021_v37 = vrot.slane %v5038_v12, 2 }
  0x57   : > { %3912 = vmatprep.mubr.msk.f32.mxu1 %vm368_vm2, %v4681_v4  ;;  %4136 = vmatprep.mubr.msk.f32.mxu0 %vm368_vm2, %v5179_v61 }
  0x58   : > { %v5256_v27 = vsel %vm954_vm3, %v1020_v38, %v1021_v37  ;;  %v5269_v36 = vsel %vm954_vm3, %v1021_v37, %v1023_v33  ;;  %v1030_v38 = vrot.slane %v5105_v40, 2  ;;  %v1033_v37 = vrot.slane %v5132_v48, 2 }
  0x59   : > { %6121 = vst [vmem:[#allocation43_spill] sm:$0xff] %v5256_v27  ;;  %6122 = vst [vmem:[#allocation44_spill] sm:$0xff] %v5269_v36 }
  0x5a   : > { %3913 = vmatmul.mubr.msk.f32.vlgmr.msra.gmra.mrb[0].mxu1 %vm368_vm2, %v4684_v5  ;;  %4137 = vmatmul.mubr.msk.f32.gmra.mrb[16].mxu0 %vm368_vm2, %v5192_v45  ;;  %v5296_v33 = vsel %vm954_vm3, %v1030_v38, %v1031_v2  ;;  %v5312_v48 = vsel %vm954_vm3, %v1031_v2, %v1033_v37  ;;  %v956_v38 = vrot.slane %v4684_v5, 2  ;;  %v958_v37 = vrot.slane %v4696_v11, 2  ;;  %v6129_v5 = vld [vmem:[#allocation20_spill] sm:$0xff]  ;;  %v6130_v11 = vld [vmem:[#allocation22_spill] sm:$0xff] }
  0x5b   : > { %3961 = vmatpush3.msk.msra.mxu1 %vm433_vm0, %v4753_v35  ;;  %3915 = vmatprep.mubr.msk.f32.mxu1 %vm368_vm2, %v4687_v6  ;;  %v1016_v35 = vrot.slane %v5001_v10, 2  ;;  %v5283_v6 = vld [vmem:[%s4678_s24 + $0x188] sm:$0xff]  ;;  %6125 = vst [vmem:[#allocation47_spill] sm:$0xff] %v5296_v33  ;;  %6126 = vst [vmem:[#allocation48_spill] sm:$0xff] %v5312_v48 }
  0x5c   : > { %4139 = vmatprep.mubr.msk.f32.mxu0 %vm368_vm2, %v5196_v0  ;;  %4010 = vmatprep.subr.msk.mxu1 %vm433_vm0, %v5205_v23 }
  0x5d   : > { %v5239_v14 = vsel %vm954_vm3, %v1015_v62, %v1016_v35  ;;  %v5252_v52 = vsel %vm954_vm3, %v1016_v35, %v1018_v34  ;;  %v1025_v62 = vrot.slane %v5070_v20, 2  ;;  %v1028_v35 = vrot.slane %v5097_v60, 2 }
  0x5e   : > { %3916 = vmatmul.mubr.msk.f32.gmra.mrb[2].mxu1 %vm368_vm2, %v4692_v9  ;;  %4140 = vmatmul.mubr.msk.f32.gmra.mrb[18].mxu0 %vm368_vm2, %v5216_v16  ;;  %6120 = vst [vmem:[#allocation42_spill] sm:$0xff] %v5252_v52  ;;  %v5280_v9 = vld [vmem:[%s4678_s24 + $0x180] sm:$0xff] }
  0x5f   : > { %3918 = vmatprep.mubr.msk.f32.mxu1 %vm368_vm2, %v4704_v15  ;;  %4142 = vmatprep.mubr.msk.f32.mxu0 %vm368_vm2, %v5220_v49  ;;  %v5273_v34 = vsel %vm954_vm3, %v1025_v62, %v1026_v57  ;;  %v5292_v60 = vsel %vm954_vm3, %v1026_v57, %v1028_v35  ;;  %v1895_v62 = vrot.slane %v5280_v9, 2 }
  0x60   : > { %6123 = vst [vmem:[#allocation45_spill] sm:$0xff] %v5273_v34  ;;  %6124 = vst [vmem:[#allocation46_spill] sm:$0xff] %v5292_v60 }
  0x62   : > { %3919 = vmatmul.mubr.msk.f32.gmra.mrb[4].mxu1 %vm368_vm2, %v4709_v18  ;;  %4143 = vmatmul.mubr.msk.f32.gmra.mrb[20].mxu0 %vm368_vm2, %v5235_v56 }
  0x63   : > { %3921 = vmatprep.mubr.msk.f32.mxu1 %vm368_vm2, %v4721_v25  ;;  %4145 = vmatprep.mubr.msk.f32.mxu0 %vm368_vm2, %v5239_v14 }
  0x66   : > { %3922 = vmatmul.mubr.msk.f32.gmra.mrb[6].mxu1 %vm368_vm2, %v4724_v26  ;;  %4146 = vmatmul.mubr.msk.f32.gmra.mrb[22].mxu0 %vm368_vm2, %v5252_v52  ;;  %v5301_v52 = vld [vmem:[%s4678_s24 + $0x190] sm:$0x3] }
  0x67   : > { %3924 = vmatprep.mubr.msk.f32.mxu1 %vm368_vm2, %v4735_v31  ;;  %4148 = vmatprep.mubr.msk.f32.mxu0 %vm368_vm2, %v5256_v27  ;;  %v1896_v27 = vrot.slane %v5283_v6, 2  ;;  %v1898_v57 = vrot.slane %v5301_v52, 2 }
  0x69   : > { %v5316_v35 = vsel %vm954_vm3, %v1895_v62, %v1896_v27  ;;  %v5327_v2 = vsel %vm954_vm3, %v1896_v27, %v1898_v57  ;;  %v5342_v27 = vld [vmem:[%s6005_s1 + $0x20] sm:$0xf] }
  0x6a   : > { %3925 = vmatmul.mubr.msk.f32.gmra.mrb[8].mxu1 %vm368_vm2, %v4738_v32  ;;  %4149 = vmatmul.mubr.msk.f32.gmra.mrb[24].mxu0 %vm368_vm2, %v5269_v36  ;;  %6127 = vst [vmem:[#allocation49_spill] sm:$0xff] %v5316_v35  ;;  %6128 = vst [vmem:[#allocation50_spill] sm:$0xff] %v5327_v2  ;;  %v6134_v57 = vld [vmem:[#allocation30_spill] sm:$0xff] }
  0x6b   : > { %3927 = vmatprep.mubr.msk.f32.mxu1 %vm368_vm2, %v4775_v42  ;;  %4151 = vmatprep.mubr.msk.f32.mxu0 %vm368_vm2, %v5273_v34 }
  0x6e   : > { %3928 = vmatmul.mubr.msk.f32.gmra.mrb[10].mxu1 %vm368_vm2, %v4778_v43  ;;  %4152 = vmatmul.mubr.msk.f32.gmra.mrb[26].mxu0 %vm368_vm2, %v5292_v60 }
  0x6f   : > { %3930 = vmatprep.mubr.msk.f32.mxu1 %vm368_vm2, %v4803_v50  ;;  %4154 = vmatprep.mubr.msk.f32.mxu0 %vm368_vm2, %v5296_v33 }
  0x72   : > { %3931 = vmatmul.mubr.msk.f32.gmra.mrb[12].mxu1 %vm368_vm2, %v4806_v51  ;;  %4155 = vmatmul.mubr.msk.f32.gmra.mrb[28].mxu0 %vm368_vm2, %v5312_v48 }
  0x73   : > { %3933 = vmatprep.mubr.msk.f32.mxu1 %vm368_vm2, %v4829_v58  ;;  %4157 = vmatprep.mubr.msk.f32.mxu0 %vm368_vm2, %v5316_v35  ;;  %v6139_v35 = vld [vmem:[#allocation6_spill] sm:$0xff] }
  0x76   : > { %3934 = vmatmul.mubr.msk.f32.gmra.mrb[14].mxu1 %vm368_vm2, %v4832_v59  ;;  %4158 = vmatmul.mubr.msk.f32.gmra.mrb[30].mxu0 %vm368_vm2, %v5327_v2  ;;  %v6138_v2 = vld [vmem:[#allocation5_spill] sm:$0xff] }
  0x77   : > { %3936 = vmatprep.mubr.msk.f32.mxu1 %vm368_vm2, %v4855_v3  ;;  %4162 = vmatprep.mubr.msk.f32.mxu0 %vm368_vm2, %v4704_v15 }
  0x7a   : > { %3937 = vmatmul.mubr.msk.f32.gmra.mrb[16].mxu1 %vm368_vm2, %v4858_v7  ;;  %4163 = vmatmul.mubr.msk.f32.vlgmr.msra.gmra.mrb[0].mxu0 %vm368_vm2, %v4709_v18 }
  0x7b   : > { %3939 = vmatprep.mubr.msk.f32.mxu1 %vm368_vm2, %v4896_v28  ;;  %4211 = vmatpush3.msk.msra.mxu0 %vm433_vm0, %v4966_v30  ;;  %v955_v30 = vrot.slane %v4681_v4, 2  ;;  %v959_v4 = vsel %vm954_vm3, %v956_v38, %v958_v37  ;;  %v6136_v37 = vld [vmem:[#allocation36_spill] sm:$0xff] }
  0x7c   : > { %4165 = vmatprep.mubr.msk.f32.mxu0 %vm368_vm2, %v4721_v25  ;;  %4260 = vmatprep.subr.msk.mxu0 %vm433_vm0, %v5342_v27 }
  0x7d   : > { %v957_v62 = vsel %vm954_vm3, %v955_v30, %v956_v38  ;;  %v6135_v30 = vld [vmem:[#allocation32_spill] sm:$0xff]  ;;  %v5466_v38 = vld [vmem:[%s4678_s24 + $0x198] sm:$0xff] }
  0x7e   : > { %3940 = vmatmul.mubr.msk.f32.gmra.mrb[18].mxu1 %vm368_vm2, %v4899_v29  ;;  %4166 = vmatmul.mubr.msk.f32.gmra.mrb[2].mxu0 %vm368_vm2, %v4724_v26 }
  0x7f   : > { %3942 = vmatprep.mubr.msk.f32.mxu1 %vm368_vm2, %v4924_v53  ;;  %4168 = vmatprep.mubr.msk.f32.mxu0 %vm368_vm2, %v4735_v31 }
  0x82   : > { %3943 = vmatmul.mubr.msk.f32.gmra.mrb[20].mxu1 %vm368_vm2, %v4927_v55  ;;  %4169 = vmatmul.mubr.msk.f32.gmra.mrb[4].mxu0 %vm368_vm2, %v4738_v32 }
  0x83   : > { %3945 = vmatprep.mubr.msk.f32.mxu1 %vm368_vm2, %v4956_v22  ;;  %4171 = vmatprep.mubr.msk.f32.mxu0 %vm368_vm2, %v4775_v42 }
  0x86   : > { %3946 = vmatmul.mubr.msk.f32.gmra.mrb[22].mxu1 %vm368_vm2, %v4959_v24  ;;  %4172 = vmatmul.mubr.msk.f32.gmra.mrb[6].mxu0 %vm368_vm2, %v4778_v43 }
  0x87   : > { %3948 = vmatprep.mubr.msk.f32.mxu1 %vm368_vm2, %v4998_v8  ;;  %4174 = vmatprep.mubr.msk.f32.mxu0 %vm368_vm2, %v4803_v50 }
  0x8a   : > { %3949 = vmatmul.mubr.msk.f32.gmra.mrb[24].mxu1 %vm368_vm2, %v5001_v10  ;;  %4175 = vmatmul.mubr.msk.f32.gmra.mrb[8].mxu0 %vm368_vm2, %v4806_v51 }
  0x8b   : > { %3951 = vmatprep.mubr.msk.f32.mxu1 %vm368_vm2, %v5035_v46  ;;  %4177 = vmatprep.mubr.msk.f32.mxu0 %vm368_vm2, %v4829_v58 }
  0x8e   : > { %3952 = vmatmul.mubr.msk.f32.gmra.mrb[26].mxu1 %vm368_vm2, %v5038_v12  ;;  %4178 = vmatmul.mubr.msk.f32.gmra.mrb[10].mxu0 %vm368_vm2, %v4832_v59 }
  0x8f   : > { %3954 = vmatprep.mubr.msk.f32.mxu1 %vm368_vm2, %v5070_v20  ;;  %4180 = vmatprep.mubr.msk.f32.mxu0 %vm368_vm2, %v4855_v3 }
  0x92   : > { %3955 = vmatmul.mubr.msk.f32.gmra.mrb[28].mxu1 %vm368_vm2, %v5073_v54  ;;  %4181 = vmatmul.mubr.msk.f32.gmra.mrb[12].mxu0 %vm368_vm2, %v4858_v7 }
  0x93   : > { %3957 = vmatprep.mubr.msk.f32.mxu1 %vm368_vm2, %v5105_v40  ;;  %4183 = vmatprep.mubr.msk.f32.mxu0 %vm368_vm2, %v4896_v28 }
  0x96   : > { %3958 = vmatmul.mubr.msk.f32.gmra.mrb[30].mxu1 %vm368_vm2, %v5108_v44  ;;  %4184 = vmatmul.mubr.msk.f32.gmra.mrb[14].mxu0 %vm368_vm2, %v4899_v29 }
  0x97   : > { %3962 = vmatprep.mubr.msk.f32.mxu1 %vm368_vm2, %v957_v62  ;;  %4186 = vmatprep.mubr.msk.f32.mxu0 %vm368_vm2, %v4924_v53  ;;  %v5477_v62 = vld [vmem:[%s4678_s24 + $0x1a0] sm:$0xff] }
  0x9a   : > { %3963 = vmatmul.mubr.msk.f32.vlgmr.msra.gmra.mrb[0].mxu1 %vm368_vm2, %v959_v4  ;;  %4187 = vmatmul.mubr.msk.f32.gmra.mrb[16].mxu0 %vm368_vm2, %v4927_v55  ;;  %v6137_v4 = vld [vmem:[#allocation4_spill] sm:$0xff] }
  0x9b   : > { %4011 = vmatpush3.msk.msra.mxu1 %vm433_vm0, %v5205_v23  ;;  %3965 = vmatprep.mubr.msk.f32.mxu1 %vm368_vm2, %v4919_v47  ;;  %v6131_v47 = vld [vmem:[#allocation24_spill] sm:$0xff] }
  0x9c   : > { %4189 = vmatprep.mubr.msk.f32.mxu0 %vm368_vm2, %v4956_v22  ;;  %4310 = vmatprep.subr.msk.mxu1 %vm433_vm0, %v4656_v1  ;;  %v6133_v23 = vld [vmem:[#allocation28_spill] sm:$0xff] }
  0x9e   : > { %3966 = vmatmul.mubr.msk.f32.gmra.mrb[2].mxu1 %vm368_vm2, %v4940_v63  ;;  %4190 = vmatmul.mubr.msk.f32.gmra.mrb[18].mxu0 %vm368_vm2, %v4959_v24  ;;  %v6132_v63 = vld [vmem:[#allocation26_spill] sm:$0xff] }
  0x9f   : > { %3968 = vmatprep.mubr.msk.f32.mxu1 %vm368_vm2, %v4951_v21  ;;  %4192 = vmatprep.mubr.msk.f32.mxu0 %vm368_vm2, %v4998_v8 }
  0xa2   : > { %3969 = vmatmul.mubr.msk.f32.gmra.mrb[4].mxu1 %vm368_vm2, %v6129_v5  ;;  %4193 = vmatmul.mubr.msk.f32.gmra.mrb[20].mxu0 %vm368_vm2, %v5001_v10 }
  0xa3   : > { %3971 = vmatprep.mubr.msk.f32.mxu1 %vm368_vm2, %v6130_v11  ;;  %4195 = vmatprep.mubr.msk.f32.mxu0 %vm368_vm2, %v5035_v46 }
  0xa6   : > { %3972 = vmatmul.mubr.msk.f32.gmra.mrb[6].mxu1 %vm368_vm2, %v6131_v47  ;;  %4196 = vmatmul.mubr.msk.f32.gmra.mrb[22].mxu0 %vm368_vm2, %v5038_v12 }
  0xa7   : > { %3974 = vmatprep.mubr.msk.f32.mxu1 %vm368_vm2, %v6132_v63  ;;  %4198 = vmatprep.mubr.msk.f32.mxu0 %vm368_vm2, %v5070_v20 }
  0xaa   : > { %3975 = vmatmul.mubr.msk.f32.gmra.mrb[8].mxu1 %vm368_vm2, %v6133_v23  ;;  %4199 = vmatmul.mubr.msk.f32.gmra.mrb[24].mxu0 %vm368_vm2, %v5073_v54 }
  0xab   : > { %3977 = vmatprep.mubr.msk.f32.mxu1 %vm368_vm2, %v6134_v57  ;;  %4201 = vmatprep.mubr.msk.f32.mxu0 %vm368_vm2, %v5105_v40 }
  0xae   : > { %3978 = vmatmul.mubr.msk.f32.gmra.mrb[10].mxu1 %vm368_vm2, %v6135_v30  ;;  %4202 = vmatmul.mubr.msk.f32.gmra.mrb[26].mxu0 %vm368_vm2, %v5108_v44  ;;  %v6140_v44 = vld [vmem:[#allocation7_spill] sm:$0xff] }
  0xaf   : > { %3980 = vmatprep.mubr.msk.f32.mxu1 %vm368_vm2, %v5100_v19  ;;  %4204 = vmatprep.mubr.msk.f32.mxu0 %vm368_vm2, %v5280_v9 }
  0xb2   : > { %3981 = vmatmul.mubr.msk.f32.gmra.mrb[12].mxu1 %vm368_vm2, %v6136_v37  ;;  %4205 = vmatmul.mubr.msk.f32.gmra.mrb[28].mxu0 %vm368_vm2, %v5283_v6 }
  0xb3   : > { %3983 = vmatprep.mubr.msk.f32.mxu1 %vm368_vm2, %v5135_v39  ;;  %4207 = vmatprep.mubr.msk.f32.mxu0 %vm368_vm2, %v5466_v38 }
  0xb6   : > { %3984 = vmatmul.mubr.msk.f32.gmra.mrb[14].mxu1 %vm368_vm2, %v5152_v41  ;;  %4208 = vmatmul.mubr.msk.f32.gmra.mrb[30].mxu0 %vm368_vm2, %v5477_v62 }
  0xb7   : > { %3986 = vmatprep.mubr.msk.f32.mxu1 %vm368_vm2, %v5159_v13  ;;  %4212 = vmatprep.mubr.msk.f32.mxu0 %vm368_vm2, %v6137_v4  ;;  %v6141_v4 = vld [vmem:[#allocation8_spill] sm:$0xff] }
  0xba   : > { %3987 = vmatmul.mubr.msk.f32.gmra.mrb[16].mxu1 %vm368_vm2, %v5175_v17  ;;  %4213 = vmatmul.mubr.msk.f32.vlgmr.msra.gmra.mrb[0].mxu0 %vm368_vm2, %v6138_v2  ;;  %v6142_v2 = vld [vmem:[#allocation9_spill] sm:$0xff] }
  0xbb   : > { %3989 = vmatprep.mubr.msk.f32.mxu1 %vm368_vm2, %v5179_v61  ;;  %4261 = vmatpush3.msk.msra.mxu0 %vm433_vm0, %v5342_v27  ;;  %v6145_v27 = vld [vmem:[#allocation12_spill] sm:$0xff] }
  0xbc   : > { %4215 = vmatprep.mubr.msk.f32.mxu0 %vm368_vm2, %v6139_v35  ;;  %v6143_v35 = vld [vmem:[#allocation10_spill] sm:$0xff] }
  0xbe   : > { %3990 = vmatmul.mubr.msk.f32.gmra.mrb[18].mxu1 %vm368_vm2, %v5192_v45  ;;  %4216 = vmatmul.mubr.msk.f32.gmra.mrb[2].mxu0 %vm368_vm2, %v6140_v44  ;;  %v6144_v44 = vld [vmem:[#allocation11_spill] sm:$0xff] }
  0xbf   : > { %3992 = vmatprep.mubr.msk.f32.mxu1 %vm368_vm2, %v5196_v0  ;;  %4218 = vmatprep.mubr.msk.f32.mxu0 %vm368_vm2, %v6141_v4  ;;  %v6146_v4 = vld [vmem:[#allocation42_spill] sm:$0xff] }
  0xc2   : > { %3993 = vmatmul.mubr.msk.f32.gmra.mrb[20].mxu1 %vm368_vm2, %v5216_v16  ;;  %4219 = vmatmul.mubr.msk.f32.gmra.mrb[4].mxu0 %vm368_vm2, %v6142_v2  ;;  %v6147_v2 = vld [vmem:[#allocation13_spill] sm:$0xff] }
  0xc3   : > { %3995 = vmatprep.mubr.msk.f32.mxu1 %vm368_vm2, %v5220_v49  ;;  %4221 = vmatprep.mubr.msk.f32.mxu0 %vm368_vm2, %v6143_v35  ;;  %v6148_v49 = vld [vmem:[#allocation43_spill] sm:$0xff]  ;;  %v6149_v35 = vld [vmem:[#allocation14_spill] sm:$0xff] }
  0xc6   : > { %3996 = vmatmul.mubr.msk.f32.gmra.mrb[22].mxu1 %vm368_vm2, %v5235_v56  ;;  %4222 = vmatmul.mubr.msk.f32.gmra.mrb[6].mxu0 %vm368_vm2, %v6144_v44  ;;  %v6150_v44 = vld [vmem:[#allocation15_spill] sm:$0xff] }
  0xc7   : > { %3998 = vmatprep.mubr.msk.f32.mxu1 %vm368_vm2, %v5239_v14  ;;  %4224 = vmatprep.mubr.msk.f32.mxu0 %vm368_vm2, %v6145_v27  ;;  %v6151_v27 = vld [vmem:[#allocation16_spill] sm:$0xff] }
  0xca   : > { %3999 = vmatmul.mubr.msk.f32.gmra.mrb[24].mxu1 %vm368_vm2, %v6146_v4  ;;  %4225 = vmatmul.mubr.msk.f32.gmra.mrb[8].mxu0 %vm368_vm2, %v6147_v2  ;;  %v6152_v2 = vld [vmem:[#allocation17_spill] sm:$0xff] }
  0xcb   : > { %4001 = vmatprep.mubr.msk.f32.mxu1 %vm368_vm2, %v6148_v49  ;;  %4227 = vmatprep.mubr.msk.f32.mxu0 %vm368_vm2, %v6149_v35  ;;  %v6153_v35 = vld [vmem:[#allocation18_spill] sm:$0xff] }
  0xce   : > { %4002 = vmatmul.mubr.msk.f32.gmra.mrb[26].mxu1 %vm368_vm2, %v5269_v36  ;;  %4228 = vmatmul.mubr.msk.f32.gmra.mrb[10].mxu0 %vm368_vm2, %v6150_v44  ;;  %v6154_v44 = vld [vmem:[#allocation19_spill] sm:$0xff] }
  0xcf   : > { %4004 = vmatprep.mubr.msk.f32.mxu1 %vm368_vm2, %v5273_v34  ;;  %4230 = vmatprep.mubr.msk.f32.mxu0 %vm368_vm2, %v6151_v27  ;;  %v6155_v34 = vld [vmem:[#allocation2_spill] sm:$0xff]  ;;  %v6156_v27 = vld [vmem:[#allocation21_spill] sm:$0xff]  ;;  %v5604_v36 = vld [vmem:[%s4678_s24 + $0x1a8] sm:$0x3] }
  0xd2   : > { %4005 = vmatmul.mubr.msk.f32.gmra.mrb[28].mxu1 %vm368_vm2, %v5292_v60  ;;  %4231 = vmatmul.mubr.msk.f32.gmra.mrb[12].mxu0 %vm368_vm2, %v6152_v2  ;;  %v6157_v60 = vld [vmem:[#allocation3_spill] sm:$0xff] }
  0xd3   : > { %4007 = vmatprep.mubr.msk.f32.mxu1 %vm368_vm2, %v5296_v33  ;;  %4233 = vmatprep.mubr.msk.f32.mxu0 %vm368_vm2, %v6153_v35  ;;  %v6158_v2 = vld [vmem:[#allocation23_spill] sm:$0xff]  ;;  %v6166_v33 = vld [vmem:[#allocation38_spill] sm:$0xff] }
  0xd6   : > { %4008 = vmatmul.mubr.msk.f32.gmra.mrb[30].mxu1 %vm368_vm2, %v5312_v48  ;;  %4234 = vmatmul.mubr.msk.f32.gmra.mrb[14].mxu0 %vm368_vm2, %v6154_v44  ;;  %v6159_v48 = vld [vmem:[#allocation25_spill] sm:$0xff] }
  0xd7   : > { %4012 = vmatprep.mubr.msk.f32.mxu1 %vm368_vm2, %v6155_v34  ;;  %4236 = vmatprep.mubr.msk.f32.mxu0 %vm368_vm2, %v6156_v27  ;;  %v6160_v34 = vld [vmem:[#allocation27_spill] sm:$0xff] }
  0xda   : > { %4013 = vmatmul.mubr.msk.f32.vlgmr.msra.gmra.mrb[0].mxu1 %vm368_vm2, %v6157_v60  ;;  %4237 = vmatmul.mubr.msk.f32.gmra.mrb[16].mxu0 %vm368_vm2, %v6158_v2  ;;  %v6161_v60 = vld [vmem:[#allocation29_spill] sm:$0xff] }
  0xdb   : > { %4311 = vmatpush3.msk.msra.mxu1 %vm433_vm0, %v4656_v1  ;;  %4015 = vmatprep.mubr.msk.f32.mxu1 %vm368_vm2, %v4704_v15  ;;  %v6162_v1 = vld [vmem:[#allocation31_spill] sm:$0xff]  ;;  %v6163_v15 = vld [vmem:[#allocation33_spill] sm:$0xff] }
  0xdc   : > { %4239 = vmatprep.mubr.msk.f32.mxu0 %vm368_vm2, %v6159_v48 }
  0xde   : > { %4016 = vmatmul.mubr.msk.f32.gmra.mrb[2].mxu1 %vm368_vm2, %v4709_v18  ;;  %4240 = vmatmul.mubr.msk.f32.gmra.mrb[18].mxu0 %vm368_vm2, %v6160_v34  ;;  %v6164_v18 = vld [vmem:[#allocation35_spill] sm:$0xff] }
  0xdf   : > { %4018 = vmatprep.mubr.msk.f32.mxu1 %vm368_vm2, %v4721_v25  ;;  %4242 = vmatprep.mubr.msk.f32.mxu0 %vm368_vm2, %v6161_v60  ;;  %v6165_v25 = vld [vmem:[#allocation37_spill] sm:$0xff] }
  0xe2   : > { %4019 = vmatmul.mubr.msk.f32.gmra.mrb[4].mxu1 %vm368_vm2, %v4724_v26  ;;  %4243 = vmatmul.mubr.msk.f32.gmra.mrb[20].mxu0 %vm368_vm2, %v6162_v1  ;;  %v1626_v26 = vrot.slane %v5280_v9, 1 }
  0xe3   : > { %4021 = vmatprep.mubr.msk.f32.mxu1 %vm368_vm2, %v4735_v31  ;;  %4245 = vmatprep.mubr.msk.f32.mxu0 %vm368_vm2, %v6163_v15  ;;  %v1627_v31 = vrot.slane %v5283_v6, 1 }
  0xe5   : > { %v5601_v15 = vsel %vm287_vm1, %v1626_v26, %v1627_v31 }
  0xe6   : > { %4022 = vmatmul.mubr.msk.f32.gmra.mrb[6].mxu1 %vm368_vm2, %v4738_v32  ;;  %4246 = vmatmul.mubr.msk.f32.gmra.mrb[22].mxu0 %vm368_vm2, %v6164_v18  ;;  %v6167_v32 = vld [vmem:[#allocation39_spill] sm:$0xff]  ;;  %v2432_v18 = vrot.slane %v5477_v62, 1 }
  0xe7   : > { %4024 = vmatprep.mubr.msk.f32.mxu1 %vm368_vm2, %v4775_v42  ;;  %4248 = vmatprep.mubr.msk.f32.mxu0 %vm368_vm2, %v6165_v25  ;;  %v1629_v42 = vrot.slane %v5301_v52, 1  ;;  %v2431_v25 = vrot.slane %v5466_v38, 1  ;;  %v2434_v52 = vrot.slane %v5604_v36, 1 }
  0xe9   : > { %v2433_v26 = vsel %vm287_vm1, %v2431_v25, %v2432_v18 }
  0xea   : > { %4025 = vmatmul.mubr.msk.f32.gmra.mrb[8].mxu1 %vm368_vm2, %v4778_v43  ;;  %4249 = vmatmul.mubr.msk.f32.gmra.mrb[24].mxu0 %vm368_vm2, %v6166_v33  ;;  %v6168_v43 = vld [vmem:[#allocation40_spill] sm:$0xff] }
  0xeb   : > { %4027 = vmatprep.mubr.msk.f32.mxu1 %vm368_vm2, %v4803_v50  ;;  %4251 = vmatprep.mubr.msk.f32.mxu0 %vm368_vm2, %v6167_v32  ;;  %v5615_v50 = vsel %vm287_vm1, %v1627_v31, %v1629_v42 }
  0xee   : > { %4028 = vmatmul.mubr.msk.f32.gmra.mrb[10].mxu1 %vm368_vm2, %v4806_v51  ;;  %4252 = vmatmul.mubr.msk.f32.gmra.mrb[26].mxu0 %vm368_vm2, %v6168_v43  ;;  %v2435_v51 = vsel %vm287_vm1, %v2432_v18, %v2434_v52 }
  0xef   : > { %4030 = vmatprep.mubr.msk.f32.mxu1 %vm368_vm2, %v4829_v58  ;;  %4254 = vmatprep.mubr.msk.f32.mxu0 %vm368_vm2, %v5601_v15  ;;  %v6172_v58 = vld [vmem:[#allocation33_spill] sm:$0xff] }
  0xf2   : > { %4031 = vmatmul.mubr.msk.f32.gmra.mrb[12].mxu1 %vm368_vm2, %v4832_v59  ;;  %4255 = vmatmul.mubr.msk.f32.gmra.mrb[28].mxu0 %vm368_vm2, %v5615_v50  ;;  %v6173_v59 = vld [vmem:[#allocation45_spill] sm:$0xff] }
  0xf3   : > { %4033 = vmatprep.mubr.msk.f32.mxu1 %vm368_vm2, %v4855_v3  ;;  %4257 = vmatprep.mubr.msk.f32.mxu0 %vm368_vm2, %v2433_v26  ;;  %v6174_v3 = vld [vmem:[#allocation35_spill] sm:$0xff] }
  0xf6   : > { %4034 = vmatmul.mubr.msk.f32.gmra.mrb[14].mxu1 %vm368_vm2, %v4858_v7  ;;  %4258 = vmatmul.mubr.msk.f32.gmra.mrb[30].mxu0 %vm368_vm2, %v2435_v51  ;;  %v6175_v7 = vld [vmem:[#allocation46_spill] sm:$0xff] }
  0xf7   : > { %4036 = vmatprep.mubr.msk.f32.mxu1 %vm368_vm2, %v4896_v28  ;;  %4262 = vmatprep.mubr.msk.f32.mxu0 %vm368_vm2, %v4951_v21  ;;  %v2700_v28 = vrot.slane %v5466_v38, 2  ;;  %v2703_v21 = vrot.slane %v5604_v36, 2 }
  0xfa   : > { %4037 = vmatmul.mubr.msk.f32.gmra.mrb[16].mxu1 %vm368_vm2, %v4899_v29  ;;  %4263 = vmatmul.mubr.msk.f32.vlgmr.msra.gmra.mrb[0].mxu0 %vm368_vm2, %v6129_v5  ;;  %v2701_v29 = vrot.slane %v5477_v62, 2 }
  0xfb   : > { %4039 = vmatprep.mubr.msk.f32.mxu1 %vm368_vm2, %v4924_v53  ;;  %4265 = vmatprep.mubr.msk.f32.mxu0 %vm368_vm2, %v6130_v11  ;;  %v6178_v53 = vld [vmem:[#allocation48_spill] sm:$0xff] }
  0xfe   : > { %4040 = vmatmul.mubr.msk.f32.gmra.mrb[18].mxu1 %vm368_vm2, %v4927_v55  ;;  %4266 = vmatmul.mubr.msk.f32.gmra.mrb[2].mxu0 %vm368_vm2, %v6131_v47  ;;  %v6179_v55 = vld [vmem:[#allocation49_spill] sm:$0xff] }
  0xff   : > { %4042 = vmatprep.mubr.msk.f32.mxu1 %vm368_vm2, %v4956_v22  ;;  %4268 = vmatprep.mubr.msk.f32.mxu0 %vm368_vm2, %v6132_v63  ;;  %v6177_v22 = vld [vmem:[#allocation47_spill] sm:$0xff] }
 0x102   : > { %4043 = vmatmul.mubr.msk.f32.gmra.mrb[20].mxu1 %vm368_vm2, %v4959_v24  ;;  %4269 = vmatmul.mubr.msk.f32.gmra.mrb[4].mxu0 %vm368_vm2, %v6133_v23  ;;  %v2702_v24 = vsel %vm954_vm3, %v2700_v28, %v2701_v29 }
 0x103   : > { %4045 = vmatprep.mubr.msk.f32.mxu1 %vm368_vm2, %v4998_v8  ;;  %4271 = vmatprep.mubr.msk.f32.mxu0 %vm368_vm2, %v6134_v57  ;;  %v6176_v8 = vld [vmem:[#allocation37_spill] sm:$0xff] }
 0x106   : > { %4046 = vmatmul.mubr.msk.f32.gmra.mrb[22].mxu1 %vm368_vm2, %v5001_v10  ;;  %4272 = vmatmul.mubr.msk.f32.gmra.mrb[6].mxu0 %vm368_vm2, %v6135_v30  ;;  %v6180_v10 = vld [vmem:[#allocation50_spill] sm:$0xff] }
 0x107   : > { %4048 = vmatprep.mubr.msk.f32.mxu1 %vm368_vm2, %v5035_v46  ;;  %4274 = vmatprep.mubr.msk.f32.mxu0 %vm368_vm2, %v5100_v19  ;;  %v6169_v46 = vld [vmem:[#allocation34_spill] sm:$0xff] }
 0x10a   : > { %4049 = vmatmul.mubr.msk.f32.gmra.mrb[24].mxu1 %vm368_vm2, %v5038_v12  ;;  %4275 = vmatmul.mubr.msk.f32.gmra.mrb[8].mxu0 %vm368_vm2, %v6136_v37  ;;  %v2704_v12 = vsel %vm954_vm3, %v2701_v29, %v2703_v21 }
 0x10b   : > { %4051 = vmatprep.mubr.msk.f32.mxu1 %vm368_vm2, %v5070_v20  ;;  %4277 = vmatprep.mubr.msk.f32.mxu0 %vm368_vm2, %v5135_v39 }
 0x10e   : > { %4052 = vmatmul.mubr.msk.f32.gmra.mrb[26].mxu1 %vm368_vm2, %v5073_v54  ;;  %4278 = vmatmul.mubr.msk.f32.gmra.mrb[10].mxu0 %vm368_vm2, %v5152_v41 }
 0x10f   : > { %4054 = vmatprep.mubr.msk.f32.mxu1 %vm368_vm2, %v5105_v40  ;;  %4280 = vmatprep.mubr.msk.f32.mxu0 %vm368_vm2, %v5159_v13 }
 0x112   : > { %4055 = vmatmul.mubr.msk.f32.gmra.mrb[28].mxu1 %vm368_vm2, %v6169_v46  ;;  %4281 = vmatmul.mubr.msk.f32.gmra.mrb[12].mxu0 %vm368_vm2, %v5175_v17 }
 0x113   : > { %4057 = vmatprep.mubr.msk.f32.mxu1 %vm368_vm2, %v5280_v9  ;;  %4283 = vmatprep.mubr.msk.f32.mxu0 %vm368_vm2, %v5179_v61  ;;  %v6170_v9 = vld [vmem:[#allocation41_spill] sm:$0xff] }
 0x116   : > { %4058 = vmatmul.mubr.msk.f32.gmra.mrb[30].mxu1 %vm368_vm2, %v5283_v6  ;;  %4284 = vmatmul.mubr.msk.f32.gmra.mrb[14].mxu0 %vm368_vm2, %v5192_v45  ;;  %v6171_v6 = vld [vmem:[#allocation44_spill] sm:$0xff] }
 0x117   : > { %4086 = vmatprep.mubr.msk.f32.mxu1 %vm368_vm2, %v6153_v35  ;;  %4286 = vmatprep.mubr.msk.f32.mxu0 %vm368_vm2, %v5196_v0 }
 0x11a   : > { %4087 = vmatmul.mubr.msk.f32.vlgmr.msra.gmra.mrb[16].mxu1 %vm368_vm2, %v6154_v44  ;;  %4287 = vmatmul.mubr.msk.f32.gmra.mrb[16].mxu0 %vm368_vm2, %v5216_v16 }
 0x11b   : > { %4089 = vmatprep.mubr.msk.f32.mxu1 %vm368_vm2, %v6156_v27  ;;  %4289 = vmatprep.mubr.msk.f32.mxu0 %vm368_vm2, %v6170_v9 }
 0x11e   : > { %4090 = vmatmul.mubr.msk.f32.gmra.mrb[18].mxu1 %vm368_vm2, %v6158_v2  ;;  %4290 = vmatmul.mubr.msk.f32.gmra.mrb[18].mxu0 %vm368_vm2, %v5235_v56 }
 0x11f   : > { %4092 = vmatprep.mubr.msk.f32.mxu1 %vm368_vm2, %v6159_v48  ;;  %4292 = vmatprep.mubr.msk.f32.mxu0 %vm368_vm2, %v5239_v14 }
 0x122   : > { %4093 = vmatmul.mubr.msk.f32.gmra.mrb[20].mxu1 %vm368_vm2, %v6160_v34  ;;  %4293 = vmatmul.mubr.msk.f32.gmra.mrb[20].mxu0 %vm368_vm2, %v6146_v4 }
 0x123   : > { %4095 = vmatprep.mubr.msk.f32.mxu1 %vm368_vm2, %v6161_v60  ;;  %4295 = vmatprep.mubr.msk.f32.mxu0 %vm368_vm2, %v6148_v49 }
 0x126   : > { %4096 = vmatmul.mubr.msk.f32.gmra.mrb[22].mxu1 %vm368_vm2, %v6162_v1  ;;  %4296 = vmatmul.mubr.msk.f32.gmra.mrb[22].mxu0 %vm368_vm2, %v6171_v6 }
 0x127   : > { %4098 = vmatprep.mubr.msk.f32.mxu1 %vm368_vm2, %v6172_v58  ;;  %4298 = vmatprep.mubr.msk.f32.mxu0 %vm368_vm2, %v6173_v59 }
 0x12a   : > { %4099 = vmatmul.mubr.msk.f32.gmra.mrb[24].mxu1 %vm368_vm2, %v6174_v3  ;;  %4299 = vmatmul.mubr.msk.f32.gmra.mrb[24].mxu0 %vm368_vm2, %v6175_v7 }
 0x12b   : > { %4101 = vmatprep.mubr.msk.f32.mxu1 %vm368_vm2, %v6176_v8  ;;  %4301 = vmatprep.mubr.msk.f32.mxu0 %vm368_vm2, %v6177_v22 }
 0x12e   : > { %4102 = vmatmul.mubr.msk.f32.gmra.mrb[26].mxu1 %vm368_vm2, %v6166_v33  ;;  %4302 = vmatmul.mubr.msk.f32.gmra.mrb[26].mxu0 %vm368_vm2, %v6178_v53 }
 0x12f   : > { %4104 = vmatprep.mubr.msk.f32.mxu1 %vm368_vm2, %v6167_v32  ;;  %4304 = vmatprep.mubr.msk.f32.mxu0 %vm368_vm2, %v6179_v55 }
 0x132   : > { %4105 = vmatmul.mubr.msk.f32.gmra.mrb[28].mxu1 %vm368_vm2, %v6168_v43  ;;  %4305 = vmatmul.mubr.msk.f32.gmra.mrb[28].mxu0 %vm368_vm2, %v6180_v10 }
 0x133   : > { %4107 = vmatprep.mubr.msk.f32.mxu1 %vm368_vm2, %v5601_v15  ;;  %4307 = vmatprep.mubr.msk.f32.mxu0 %vm368_vm2, %v2702_v24 }
 0x136   : > { %4108 = vmatmul.mubr.msk.f32.gmra.mrb[30].mxu1 %vm368_vm2, %v5615_v50  ;;  %4308 = vmatmul.mubr.msk.f32.gmra.mrb[30].mxu0 %vm368_vm2, %v2704_v12 }
 0x1ad   : > { %v4014_v40 = vpop.f32.mrb[0].mxu1 }
 0x1ae   : > { %v1434_v20 = vpop.f32.mrb[1].mxu1 }
 0x1b1   : > { %v4017_v54 = vpop.f32.mrb[2].mxu1 }
 0x1b2   : > { %v1444_v19 = vpop.f32.mrb[3].mxu1 }
 0x1b5   : > { %v4020_v13 = vpop.f32.mrb[4].mxu1 }
 0x1b6   : > { %v1454_v39 = vpop.f32.mrb[5].mxu1 }
 0x1b9   : > { %v4023_v41 = vpop.f32.mrb[6].mxu1 }
 0x1ba   : > { %v1464_v17 = vpop.f32.mrb[7].mxu1 }
 0x1bd   : > { %v4026_v61 = vpop.f32.mrb[8].mxu1 }
 0x1be   : > { %v1474_v45 = vpop.f32.mrb[9].mxu1 }
 0x1c1   : > { %v4029_v0 = vpop.f32.mrb[10].mxu1 }
 0x1c2   : > { %v1484_v16 = vpop.f32.mrb[11].mxu1 }
 0x1c5   : > { %v4032_v49 = vpop.f32.mrb[12].mxu1 }
 0x1c6   : > { %v1494_v56 = vpop.f32.mrb[13].mxu1 }
 0x1c9   : > { %v4035_v14 = vpop.f32.mrb[14].mxu1 }
 0x1ca   : > { %v1504_v36 = vpop.f32.mrb[15].mxu1 }
 0x1cd   : > { %v4264_v33 = vpop.f32.mrb[0].mxu0 }
 0x1ce   : > { %v5761_v48 = vadd.f32 %v4264_v33, %v4014_v40  ;;  %v2778_v5 = vpop.f32.mrb[1].mxu0 }
 0x1cf   : > { %v5763_v11 = vadd.f32 %v2778_v5, %v1434_v20 }
 0x1d0   : > { %v2971_v47 = vsel %vm2969_vm4, %v5761_v48, 0.0 }
 0x1d1   : > { %v2970_v63 = vsel %vm2969_vm4, %v5763_v11, 0.0  ;;  %v4267_v23 = vpop.f32.mrb[2].mxu0 }
 0x1d2   : > { %v5769_v57 = vadd.f32 %v4267_v23, %v4017_v54  ;;  %v2788_v30 = vpop.f32.mrb[3].mxu0  ;;  %v2972_v37 = vadd.f32 %v2971_v47, %v2970_v63 }
 0x1d3   : > { %v5771_v38 = vadd.f32 %v2788_v30, %v1444_v19 }
 0x1d4   : > { %v2975_v2 = vsel %vm2969_vm4, %v5769_v57, 0.0 }
 0x1d5   : > { %v2973_v62 = vsel %vm2969_vm4, %v5771_v38, 0.0  ;;  %v4270_v4 = vpop.f32.mrb[4].mxu0 }
 0x1d6   : > { %v2974_v35 = vadd.f32 %v2973_v62, %v2972_v37  ;;  %v5775_v44 = vadd.f32 %v4270_v4, %v4020_v13  ;;  %v2798_v27 = vpop.f32.mrb[5].mxu0 }
 0x1d7   : > { %v5779_v34 = vadd.f32 %v2798_v27, %v1454_v39 }
 0x1d8   : > { %v2976_v60 = vadd.f32 %v2975_v2, %v2974_v35  ;;  %v2979_v32 = vsel %vm2969_vm4, %v5775_v44, 0.0 }
 0x1d9   : > { %v2977_v1 = vsel %vm2969_vm4, %v5779_v34, 0.0  ;;  %v4273_v15 = vpop.f32.mrb[6].mxu0 }
 0x1da   : > { %v2978_v18 = vadd.f32 %v2977_v1, %v2976_v60  ;;  %v5783_v25 = vadd.f32 %v4273_v15, %v4023_v41  ;;  %v2808_v31 = vpop.f32.mrb[7].mxu0 }
 0x1db   : > { %v5787_v42 = vadd.f32 %v2808_v31, %v1464_v17 }
 0x1dc   : > { %v2980_v43 = vadd.f32 %v2979_v32, %v2978_v18  ;;  %v2983_v9 = vsel %vm2969_vm4, %v5783_v25, 0.0 }
 0x1dd   : > { %v2981_v50 = vsel %vm2969_vm4, %v5787_v42, 0.0  ;;  %v4276_v52 = vpop.f32.mrb[8].mxu0 }
 0x1de   : > { %v2982_v26 = vadd.f32 %v2981_v50, %v2980_v43  ;;  %v5791_v51 = vadd.f32 %v4276_v52, %v4026_v61  ;;  %v2818_v46 = vpop.f32.mrb[9].mxu0 }
 0x1df   : > { %v5795_v6 = vadd.f32 %v2818_v46, %v1474_v45 }
 0x1e0   : > { %v2984_v58 = vadd.f32 %v2983_v9, %v2982_v26  ;;  %v2987_v28 = vsel %vm2969_vm4, %v5791_v51, 0.0 }
 0x1e1   : > { %v2985_v59 = vsel %vm2969_vm4, %v5795_v6, 0.0  ;;  %v4279_v3 = vpop.f32.mrb[10].mxu0 }
 0x1e2   : > { %v2986_v7 = vadd.f32 %v2985_v59, %v2984_v58  ;;  %v5799_v8 = vadd.f32 %v4279_v3, %v4029_v0  ;;  %v2828_v22 = vpop.f32.mrb[11].mxu0 }
 0x1e3   : > { %v5803_v29 = vadd.f32 %v2828_v22, %v1484_v16 }
 0x1e4   : > { %v2988_v53 = vadd.f32 %v2987_v28, %v2986_v7  ;;  %v2991_v40 = vsel %vm2969_vm4, %v5799_v8, 0.0 }
 0x1e5   : > { %v2989_v55 = vsel %vm2969_vm4, %v5803_v29, 0.0  ;;  %v4282_v21 = vpop.f32.mrb[12].mxu0 }
 0x1e6   : > { %v2990_v24 = vadd.f32 %v2989_v55, %v2988_v53  ;;  %v5807_v10 = vadd.f32 %v4282_v21, %v4032_v49  ;;  %v2838_v12 = vpop.f32.mrb[13].mxu0 }
 0x1e7   : > { %v5811_v20 = vadd.f32 %v2838_v12, %v1494_v56 }
 0x1e8   : > { %v2992_v54 = vadd.f32 %v2991_v40, %v2990_v24  ;;  %v2995_v61 = vsel %vm2969_vm4, %v5807_v10, 0.0 }
 0x1e9   : > { %v2993_v19 = vsel %vm2969_vm4, %v5811_v20, 0.0  ;;  %v4285_v13 = vpop.f32.mrb[14].mxu0 }
 0x1ea   : > { %v2994_v39 = vadd.f32 %v2993_v19, %v2992_v54  ;;  %v5815_v41 = vadd.f32 %v4285_v13, %v4035_v14  ;;  %v2848_v17 = vpop.f32.mrb[15].mxu0 }
 0x1eb   : > { %v5819_v45 = vadd.f32 %v2848_v17, %v1504_v36 }
 0x1ec   : > { %v2996_v0 = vadd.f32 %v2995_v61, %v2994_v39  ;;  %v2999_v14 = vsel %vm2969_vm4, %v5815_v41, 0.0 }
 0x1ed   : > { %v4088_v16 = vpop.f32.mrb[16].mxu1  ;;  %v2997_v49 = vsel %vm2969_vm4, %v5819_v45, 0.0  ;;  %v4288_v56 = vpop.f32.mrb[16].mxu0 }
 0x1ee   : > { %v1784_v33 = vpop.f32.mrb[17].mxu1  ;;  %v2998_v5 = vadd.f32 %v2997_v49, %v2996_v0  ;;  %v5823_v47 = vadd.f32 %v4288_v56, %v4088_v16  ;;  %v2858_v63 = vpop.f32.mrb[17].mxu0 }
 0x1ef   : > { %v5827_v23 = vadd.f32 %v2858_v63, %v1784_v33 }
 0x1f0   : > { %v3000_v30 = vadd.f32 %v2999_v14, %v2998_v5  ;;  %v3003_v60 = vsel %vm2969_vm4, %v5823_v47, 0.0 }
 0x1f1   : > { %v4091_v37 = vpop.f32.mrb[18].mxu1  ;;  %v3001_v36 = vsel %vm2969_vm4, %v5827_v23, 0.0  ;;  %v4291_v62 = vpop.f32.mrb[18].mxu0 }
 0x1f2   : > { %v1794_v4 = vpop.f32.mrb[19].mxu1  ;;  %v3002_v35 = vadd.f32 %v3001_v36, %v3000_v30  ;;  %v5831_v27 = vadd.f32 %v4291_v62, %v4091_v37  ;;  %v2868_v2 = vpop.f32.mrb[19].mxu0 }
 0x1f3   : > { %v5835_v1 = vadd.f32 %v2868_v2, %v1794_v4 }
 0x1f4   : > { %v3004_v15 = vadd.f32 %v3003_v60, %v3002_v35  ;;  %v3007_v46 = vsel %vm2969_vm4, %v5831_v27, 0.0 }
 0x1f5   : > { %v4094_v18 = vpop.f32.mrb[20].mxu1  ;;  %v3005_v31 = vsel %vm2969_vm4, %v5835_v1, 0.0  ;;  %v4294_v32 = vpop.f32.mrb[20].mxu0 }
 0x1f6   : > { %v1804_v43 = vpop.f32.mrb[21].mxu1  ;;  %v3006_v50 = vadd.f32 %v3005_v31, %v3004_v15  ;;  %v5839_v52 = vadd.f32 %v4294_v32, %v4094_v18  ;;  %v2878_v26 = vpop.f32.mrb[21].mxu0 }
 0x1f7   : > { %v5843_v9 = vadd.f32 %v2878_v26, %v1804_v43 }
 0x1f8   : > { %v3008_v58 = vadd.f32 %v3007_v46, %v3006_v50  ;;  %v3011_v21 = vsel %vm2969_vm4, %v5839_v52, 0.0 }
 0x1f9   : > { %v4097_v59 = vpop.f32.mrb[22].mxu1  ;;  %v3009_v3 = vsel %vm2969_vm4, %v5843_v9, 0.0  ;;  %v4297_v7 = vpop.f32.mrb[22].mxu0 }
 0x1fa   : > { %v1814_v22 = vpop.f32.mrb[23].mxu1  ;;  %v3010_v28 = vadd.f32 %v3009_v3, %v3008_v58  ;;  %v5847_v53 = vadd.f32 %v4297_v7, %v4097_v59  ;;  %v2888_v55 = vpop.f32.mrb[23].mxu0 }
 0x1fb   : > { %v5851_v24 = vadd.f32 %v2888_v55, %v1814_v22 }
 0x1fc   : > { %v3012_v12 = vadd.f32 %v3011_v21, %v3010_v28  ;;  %v3015_v0 = vsel %vm2969_vm4, %v5847_v53, 0.0 }
 0x1fd   : > { %v4100_v40 = vpop.f32.mrb[24].mxu1  ;;  %v3013_v54 = vsel %vm2969_vm4, %v5851_v24, 0.0  ;;  %v4300_v19 = vpop.f32.mrb[24].mxu0 }
 0x1fe   : > { %v1824_v13 = vpop.f32.mrb[25].mxu1  ;;  %v3014_v39 = vadd.f32 %v3013_v54, %v3012_v12  ;;  %v5855_v17 = vadd.f32 %v4300_v19, %v4100_v40  ;;  %v2898_v61 = vpop.f32.mrb[25].mxu0 }
 0x1ff   : > { %v5859_v16 = vadd.f32 %v2898_v61, %v1824_v13 }
 0x200   : > { %v3016_v49 = vadd.f32 %v3015_v0, %v3014_v39  ;;  %v3019_v36 = vsel %vm2969_vm4, %v5855_v17, 0.0 }
 0x201   : > { %v4103_v56 = vpop.f32.mrb[26].mxu1  ;;  %v3017_v33 = vsel %vm2969_vm4, %v5859_v16, 0.0  ;;  %v4303_v5 = vpop.f32.mrb[26].mxu0 }
 0x202   : > { %v1834_v63 = vpop.f32.mrb[27].mxu1  ;;  %v3018_v14 = vadd.f32 %v3017_v33, %v3016_v49  ;;  %v5863_v30 = vadd.f32 %v4303_v5, %v4103_v56  ;;  %v2908_v37 = vpop.f32.mrb[27].mxu0 }
 0x203   : > { %v5867_v62 = vadd.f32 %v2908_v37, %v1834_v63 }
 0x204   : > { %v3020_v4 = vadd.f32 %v3019_v36, %v3018_v14  ;;  %v3023_v43 = vsel %vm2969_vm4, %v5863_v30, 0.0 }
 0x205   : > { %v4106_v35 = vpop.f32.mrb[28].mxu1  ;;  %v3021_v2 = vsel %vm2969_vm4, %v5867_v62, 0.0  ;;  %v4306_v60 = vpop.f32.mrb[28].mxu0 }
 0x206   : > { %v1844_v15 = vpop.f32.mrb[29].mxu1  ;;  %v3022_v18 = vadd.f32 %v3021_v2, %v3020_v4  ;;  %v5871_v31 = vadd.f32 %v4306_v60, %v4106_v35  ;;  %v2918_v32 = vpop.f32.mrb[29].mxu0 }
 0x207   : > { %v5875_v50 = vadd.f32 %v2918_v32, %v1844_v15 }
 0x208   : > { %v3024_v26 = vadd.f32 %v3023_v43, %v3022_v18  ;;  %v3027_v55 = vsel %vm2969_vm4, %v5871_v31, 0.0 }
 0x209   : > { %v4109_v46 = vpop.f32.mrb[30].mxu1  ;;  %v3025_v58 = vsel %vm2969_vm4, %v5875_v50, 0.0  ;;  %v4309_v59 = vpop.f32.mrb[30].mxu0 }
 0x20a   : > { %v1854_v3 = vpop.f32.mrb[31].mxu1  ;;  %v3026_v7 = vadd.f32 %v3025_v58, %v3024_v26  ;;  %v5879_v22 = vadd.f32 %v4309_v59, %v4109_v46  ;;  %v2928_v28 = vpop.f32.mrb[31].mxu0 }
 0x20b   : > { %v5883_v21 = vadd.f32 %v2928_v28, %v1854_v3 }
 0x20c   : > { %v3028_v12 = vadd.f32 %v3027_v55, %v3026_v7  ;;  %v3031_v19 = vsel %vm2969_vm4, %v5879_v22, 0.0 }
 0x20d   : > { %v3029_v40 = vsel %vm2969_vm4, %v5883_v21, 0.0 }
 0x20e   : > { %v3030_v54 = vadd.f32 %v3029_v40, %v3028_v12 }
 0x210   : > { %v3032_v13 = vadd.f32 %v3031_v19, %v3030_v54 }
 0x212   : > { %v3033_v39 = vrot.slane %v3032_v13, 4 }
 0x214   : > { %v3034_v61 = vadd.f32 %v3033_v39, %v3032_v13 }
 0x216   : > { %v3035_v0 = vrot.slane %v3034_v61, 2 }
 0x218   : > { %v3036_v49 = vadd.f32 %v3035_v0, %v3034_v61 }
 0x21a   : > { %v3037_v56 = vrot.slane %v3036_v49, 1 }
 0x21c   : > { %v5889_v33 = vadd.f32 %v3037_v56, %v3036_v49 }
 0x21e   : > { %v5892_v5 = vmul.f32 0.00390625, %v5889_v33 }
 0x220   : > { %v3040_v63 = vsub.f32 %v5763_v11, %v5892_v5  ;;  %v3041_v14 = vsub.f32 %v5761_v48, %v5892_v5  ;;  %v3042_v37 = vsub.f32 %v5771_v38, %v5892_v5  ;;  %v3043_v36 = vsub.f32 %v5769_v57, %v5892_v5 }
 0x221   : > { %v3044_v2 = vsub.f32 %v5779_v34, %v5892_v5  ;;  %v3045_v15 = vsub.f32 %v5775_v44, %v5892_v5  ;;  %v3046_v38 = vsub.f32 %v5787_v42, %v5892_v5  ;;  %v3047_v34 = vsub.f32 %v5783_v25, %v5892_v5 }
 0x222   : > { %v3072_v4 = vmul.f32 %v3040_v63, %v3040_v63  ;;  %v3073_v35 = vmul.f32 %v3041_v14, %v3041_v14  ;;  %v3074_v60 = vmul.f32 %v3042_v37, %v3042_v37  ;;  %v3075_v18 = vmul.f32 %v3043_v36, %v3043_v36 }
 0x223   : > { %v3076_v43 = vmul.f32 %v3044_v2, %v3044_v2  ;;  %v3077_v46 = vmul.f32 %v3045_v15, %v3045_v15  ;;  %v3048_v59 = vsub.f32 %v5795_v6, %v5892_v5  ;;  %v3078_v3 = vmul.f32 %v3046_v38, %v3046_v38 }
 0x224   : > { %v3104_v11 = vsel %vm2969_vm4, %v3072_v4, 0.0  ;;  %v3105_v48 = vsel %vm2969_vm4, %v3073_v35, 0.0  ;;  %v3107_v57 = vsel %vm2969_vm4, %v3074_v60, 0.0  ;;  %v3109_v58 = vsel %vm2969_vm4, %v3075_v18, 0.0 }
 0x225   : > { %v3106_v32 = vadd.f32 %v3105_v48, %v3104_v11  ;;  %v3111_v7 = vsel %vm2969_vm4, %v3076_v43, 0.0  ;;  %v3049_v42 = vsub.f32 %v5791_v51, %v5892_v5  ;;  %v3079_v55 = vmul.f32 %v3047_v34, %v3047_v34 }
 0x226   : > { %v3113_v12 = vsel %vm2969_vm4, %v3077_v46, 0.0  ;;  %v3050_v25 = vsub.f32 %v5803_v29, %v5892_v5  ;;  %v3080_v54 = vmul.f32 %v3048_v59, %v3048_v59  ;;  %v3115_v19 = vsel %vm2969_vm4, %v3078_v3, 0.0 }
 0x227   : > { %v3108_v26 = vadd.f32 %v3107_v57, %v3106_v32  ;;  %v3051_v6 = vsub.f32 %v5799_v8, %v5892_v5  ;;  %v3081_v39 = vmul.f32 %v3049_v42, %v3049_v42  ;;  %v3117_v61 = vsel %vm2969_vm4, %v3079_v55, 0.0 }
 0x228   : > { %v3052_v51 = vsub.f32 %v5811_v20, %v5892_v5  ;;  %v3082_v49 = vmul.f32 %v3050_v25, %v3050_v25  ;;  %v3119_v56 = vsel %vm2969_vm4, %v3080_v54, 0.0  ;;  %v3053_v29 = vsub.f32 %v5807_v10, %v5892_v5 }
 0x229   : > { %v3110_v44 = vadd.f32 %v3109_v58, %v3108_v26  ;;  %v3083_v14 = vmul.f32 %v3051_v6, %v3051_v6  ;;  %v3121_v37 = vsel %vm2969_vm4, %v3081_v39, 0.0  ;;  %v3054_v8 = vsub.f32 %v5819_v45, %v5892_v5 }
 0x22a   : > { %v3084_v4 = vmul.f32 %v3052_v51, %v3052_v51  ;;  %v3123_v35 = vsel %vm2969_vm4, %v3082_v49, 0.0  ;;  %v3055_v20 = vsub.f32 %v5815_v41, %v5892_v5  ;;  %v3085_v60 = vmul.f32 %v3053_v29, %v3053_v29 }
 0x22b   : > { %v3112_v28 = vadd.f32 %v3111_v7, %v3110_v44  ;;  %v3125_v15 = vsel %vm2969_vm4, %v3083_v14, 0.0  ;;  %v3056_v10 = vsub.f32 %v5827_v23, %v5892_v5  ;;  %v3086_v11 = vmul.f32 %v3054_v8, %v3054_v8 }
 0x22c   : > { %v3127_v48 = vsel %vm2969_vm4, %v3084_v4, 0.0  ;;  %v3057_v45 = vsub.f32 %v5823_v47, %v5892_v5  ;;  %v3087_v38 = vmul.f32 %v3055_v20, %v3055_v20  ;;  %v3129_v43 = vsel %vm2969_vm4, %v3085_v60, 0.0 }
 0x22d   : > { %v3114_v40 = vadd.f32 %v3113_v12, %v3112_v28  ;;  %v3058_v41 = vsub.f32 %v5835_v1, %v5892_v5  ;;  %v3088_v26 = vmul.f32 %v3056_v10, %v3056_v10  ;;  %v3131_v34 = vsel %vm2969_vm4, %v3086_v11, 0.0 }
 0x22e   : > { %v3059_v23 = vsub.f32 %v5831_v27, %v5892_v5  ;;  %v3089_v58 = vmul.f32 %v3057_v45, %v3057_v45  ;;  %v3133_v44 = vsel %vm2969_vm4, %v3087_v38, 0.0  ;;  %v3060_v47 = vsub.f32 %v5843_v9, %v5892_v5 }
 0x22f   : > { %v3116_v13 = vadd.f32 %v3115_v19, %v3114_v40  ;;  %v3090_v3 = vmul.f32 %v3058_v41, %v3058_v41  ;;  %v3135_v7 = vsel %vm2969_vm4, %v3088_v26, 0.0  ;;  %v3061_v1 = vsub.f32 %v5839_v52, %v5892_v5 }
 0x230   : > { %v3091_v42 = vmul.f32 %v3059_v23, %v3059_v23  ;;  %v3137_v55 = vsel %vm2969_vm4, %v3089_v58, 0.0  ;;  %v3062_v27 = vsub.f32 %v5851_v24, %v5892_v5  ;;  %v3092_v40 = vmul.f32 %v3060_v47, %v3060_v47 }
 0x231   : > { %v3118_v0 = vadd.f32 %v3117_v61, %v3116_v13  ;;  %v3139_v25 = vsel %vm2969_vm4, %v3090_v3, 0.0  ;;  %v3063_v9 = vsub.f32 %v5847_v53, %v5892_v5  ;;  %v3093_v19 = vmul.f32 %v3061_v1, %v3061_v1 }
 0x232   : > { %v3141_v13 = vsel %vm2969_vm4, %v3091_v42, 0.0  ;;  %v3064_v52 = vsub.f32 %v5859_v16, %v5892_v5  ;;  %v3094_v39 = vmul.f32 %v3062_v27, %v3062_v27  ;;  %v3143_v61 = vsel %vm2969_vm4, %v3092_v40, 0.0 }
 0x233   : > { %v3120_v63 = vadd.f32 %v3119_v56, %v3118_v0  ;;  %v3065_v24 = vsub.f32 %v5855_v17, %v5892_v5  ;;  %v3095_v51 = vmul.f32 %v3063_v9, %v3063_v9  ;;  %v3145_v49 = vsel %vm2969_vm4, %v3093_v19, 0.0 }
 0x234   : > { %v3066_v53 = vsub.f32 %v5867_v62, %v5892_v5  ;;  %v3147_v29 = vsel %vm2969_vm4, %v3094_v39, 0.0  ;;  %v3067_v16 = vsub.f32 %v5863_v30, %v5892_v5  ;;  %v3068_v17 = vsub.f32 %v5875_v50, %v5892_v5 }
 0x235   : > { %v3122_v36 = vadd.f32 %v3121_v37, %v3120_v63  ;;  %v3096_v63 = vmul.f32 %v3064_v52, %v3064_v52  ;;  %v3097_v37 = vmul.f32 %v3065_v24, %v3065_v24  ;;  %v3069_v62 = vsub.f32 %v5871_v31, %v5892_v5 }
 0x236   : > { %v3098_v4 = vmul.f32 %v3066_v53, %v3066_v53  ;;  %v3099_v20 = vmul.f32 %v3067_v16, %v3067_v16  ;;  %v3070_v30 = vsub.f32 %v5883_v21, %v5892_v5  ;;  %v3071_v50 = vsub.f32 %v5879_v22, %v5892_v5 }
 0x237   : > { %v3124_v2 = vadd.f32 %v3123_v35, %v3122_v36  ;;  %v3149_v36 = vsel %vm2969_vm4, %v3095_v51, 0.0  ;;  %v3151_v35 = vsel %vm2969_vm4, %v3096_v63, 0.0  ;;  %v3153_v60 = vsel %vm2969_vm4, %v3097_v37, 0.0 }
 0x238   : > { %v3155_v10 = vsel %vm2969_vm4, %v3098_v4, 0.0  ;;  %v3102_v31 = vmul.f32 %v3070_v30, %v3070_v30 }
 0x239   : > { %v3126_v18 = vadd.f32 %v3125_v15, %v3124_v2 }
 0x23a   : > { %v3163_v26 = vsel %vm2969_vm4, %v3102_v31, 0.0 }
 0x23b   : > { %v3128_v32 = vadd.f32 %v3127_v48, %v3126_v18  ;;  %v3100_v18 = vmul.f32 %v3068_v17, %v3068_v17  ;;  %v3101_v48 = vmul.f32 %v3069_v62, %v3069_v62 }
 0x23d   : > { %v3130_v57 = vadd.f32 %v3129_v43, %v3128_v32  ;;  %v3157_v32 = vsel %vm2969_vm4, %v3099_v20, 0.0  ;;  %v3159_v38 = vsel %vm2969_vm4, %v3100_v18, 0.0  ;;  %v3161_v41 = vsel %vm2969_vm4, %v3101_v48, 0.0 }
 0x23f   : > { %v3132_v46 = vadd.f32 %v3131_v34, %v3130_v57  ;;  %v3103_v57 = vmul.f32 %v3071_v50, %v3071_v50 }
 0x241   : > { %v3134_v59 = vadd.f32 %v3133_v44, %v3132_v46  ;;  %v3165_v46 = vsel %vm2969_vm4, %v3103_v57, 0.0 }
 0x243   : > { %v3136_v28 = vadd.f32 %v3135_v7, %v3134_v59 }
 0x245   : > { %v3138_v12 = vadd.f32 %v3137_v55, %v3136_v28 }
 0x247   : > { %v3140_v54 = vadd.f32 %v3139_v25, %v3138_v12 }
 0x249   : > { %v3142_v6 = vadd.f32 %v3141_v13, %v3140_v54 }
 0x24b   : > { %v3144_v0 = vadd.f32 %v3143_v61, %v3142_v6 }
 0x24d   : > { %v3146_v56 = vadd.f32 %v3145_v49, %v3144_v0 }
 0x24f   : > { %v3148_v14 = vadd.f32 %v3147_v29, %v3146_v56 }
 0x251   : > { %v3150_v8 = vadd.f32 %v3149_v36, %v3148_v14 }
 0x253   : > { %v3152_v2 = vadd.f32 %v3151_v35, %v3150_v8 }
 0x255   : > { %v3154_v15 = vadd.f32 %v3153_v60, %v3152_v2 }
 0x257   : > { %v3156_v11 = vadd.f32 %v3155_v10, %v3154_v15 }
 0x259   : > { %v3158_v45 = vadd.f32 %v3157_v32, %v3156_v11 }
 0x25b   : > { %v3160_v43 = vadd.f32 %v3159_v38, %v3158_v45 }
 0x25d   : > { %v3162_v21 = vadd.f32 %v3161_v41, %v3160_v43 }
 0x25f   : > { %v3164_v34 = vadd.f32 %v3163_v26, %v3162_v21 }
 0x261   : > { %v3166_v23 = vadd.f32 %v3165_v46, %v3164_v34 }
 0x263   : > { %v3167_v22 = vrot.slane %v3166_v23, 4 }
 0x265   : > { %v3168_v5 = vadd.f32 %v3167_v22, %v3166_v23 }
 0x267   : > { %v3169_v58 = vrot.slane %v3168_v5, 2 }
 0x269   : > { %v3170_v44 = vadd.f32 %v3169_v58, %v3168_v5 }
 0x26b   : > { %v3171_v59 = vrot.slane %v3170_v44, 1 }
 0x26d   : > { %v3172_v47 = vadd.f32 %v3171_v59, %v3170_v44 }
 0x26f   : > { %v3174_v3 = vsel %vm3173_vm5, %v5889_v33, %v3172_v47 }
 0x270   : > { %3176 = vst.msk [vmem:[%s175_s14] sm:$0x3] %vm3175_vm6, %v3174_v3 }
 0x271 PF: > { %s12_s11 = sadd.s32 1, %s4615_s11   ;;  %s6181_s9 = smov %s4611_s10 }
 0x272   : > { %p9_p5 = scmp.ge.s32.totalorder %s12_s11, 4   ;;  %s6182_s10 = smov %s6184_s12 }
 0x274   :  { %11 = sbr.rel (!%p9_p5) target bundleno = 2 (0x2), region = 58 }

// kernel: _lambda_.3
= control target key start
LH: loop header
LB: loop body
LE: loop exit
PB: predicated region body
PF: predicated region fallthrough
CT: control target
= control target key end

     0   :  { %s4626_s15 = smov 0   ;;  %s4628_s16 = smov 0   ;;  %s5920_s0 = inlined_call_operand.vmem [shape: f32[2,1,18,18,4], index: 0, kind: input, shape index: {}]   ;;  %s5921_s1 = inlined_call_operand.vmem [shape: f32[9,4,8], index: 1, kind: input, shape index: {}]   ;;  %s5922_s2 = inlined_call_operand.vmem [shape: f32[1,8], index: 2, kind: input, shape index: {}]   ;;  %s5923_s3 = inlined_call_operand.vmem [shape: f32[1,8], index: 3, kind: input, shape index: {}]   ;;  %s5924_s4 = inlined_call_operand.vmem [shape: f32[2,16,16,8], index: 4, kind: output, shape index: {}]  }
   0x1   :  { %s4630_s17 = smov 0  }
   0x2 LB: > { %s26_s18 = sadd.s32 1, %s4595_s16  ;;  %p3241_p0 = scmp.ge.s32.totalorder %s4599_s17, 1  ;;  %s4599_s17 = sphi %s4630_s17, %s14_s17   ;;  %s4595_s16 = sphi %s4628_s16, %s6100_s16   ;;  %s4591_s15 = sphi %s4626_s15, %s6099_s15  }
   0x3   : > { %p28_p1 = scmp.ge.s32.totalorder %s26_s18, 2  ;;  %p182_p2 = scmp.lt.s32.totalorder %s4599_s17, 3 }
   0x5   : > { %s6102_s18 = smov (%p28_p1, %s26_s18), 0  ;;  %p183_p3 = pnand %p3241_p0, %p182_p2 }
   0x7   : > { %186 = sbr.rel (%p183_p3) target bundleno = 530 (0x212), region = 36 }
   0xe   : > { %v292_v0 = vld [vmem:[%s5921_s1 + $0x4] sm:$0xf]  ;;  %vm494_vm0 = vcmask 1043456   ;;  %v4650_v1 = vld [vmem:[%s5921_s1 + $0x10] sm:$0xf]  ;;  %p217_p4 = scmp.lt.s32.totalorder %s4591_s15, 1 }
   0xf   : > { %3844 = vmatprep.subr.msk.mxu1 %vm494_vm0, %v292_v0  ;;  %4044 = vmatprep.subr.msk.mxu0 %vm494_vm0, %v4650_v1  ;;  %v291_v2 = vld [vmem:[%s5921_s1] sm:$0xf]  ;;  %v296_v3 = vld [vmem:[%s5921_s1 + $0x14] sm:$0xf]  ;;  %vm348_vm1 = vcmask 1046528   ;;  %vm429_vm2 = vcmask 31744  }
  0x10   : > { %3845 = vmatpush3.msk.msra.mxu1 %vm494_vm0, %v292_v0  ;;  %4045 = vmatpush3.msk.msra.mxu0 %vm494_vm0, %v4650_v1  ;;  %s6104_s15 = smov (!%p217_p4, %s4591_s15), 1  ;;  %v4737_v33 = vld [vmem:[%s5921_s1 + $0x18] sm:$0xf]  ;;  %v4747_v35 = vld [vmem:[%s5921_s1 + $0x8] sm:$0xf]  ;;  %vm1015_vm3 = vcmask 1045504  }
  0x11   : > { %3894 = vmatprep.subr.msk.mxu1 %vm494_vm0, %v291_v2  ;;  %4094 = vmatprep.subr.msk.mxu0 %vm494_vm0, %v296_v3  ;;  %s4552_s27 = smul.u32 432, %s6104_s15  ;;  %s3546_s21 = sshll.u32 %s6104_s15, 8  ;;  %vm3108_vm4 = vcmask 64512  }
  0x12   : > { %s5778_s26 = scalar_lea.vmem %s5924_s4, %s3546_s21 }
  0x13   : > { %s4672_s30 = scalar_lea.vmem %s5920_s0, %s4552_s27 }
  0x14   : > { %v4675_v4 = vld [vmem:[%s4672_s30] sm:$0xff]  ;;  %v4678_v5 = vld [vmem:[%s4672_s30 + $0x8] sm:$0xff]  ;;  %v4681_v6 = vld [vmem:[%s4672_s30 + $0x18] sm:$0xff] }
  0x15   : > { %5998 = vst [vmem:[#allocation2_spill] sm:$0xff] %v4681_v6  ;;  %v349_v7 = vrot.slane %v4675_v4, 1  ;;  %v350_v8 = vrot.slane %v4678_v5, 1  ;;  %v4686_v9 = vld [vmem:[%s4672_s30 + $0x20] sm:$0xff]  ;;  %v354_v10 = vrot.slane %v4681_v6, 1  ;;  %v4698_v15 = vld [vmem:[%s4672_s30 + $0x30] sm:$0xff] }
  0x16   : > { %5999 = vst [vmem:[#allocation3_spill] sm:$0xff] %v4686_v9  ;;  %v4690_v11 = vld [vmem:[%s4672_s30 + $0x10] sm:$0x3]  ;;  %v355_v12 = vrot.slane %v4686_v9, 1  ;;  %v4695_v14 = vld [vmem:[%s4672_s30 + $0x28] sm:$0x3] }
  0x17   : > { %v352_v13 = vrot.slane %v4690_v11, 1  ;;  %v351_v16 = vsel %vm348_vm1, %v349_v7, %v350_v8  ;;  %v357_v17 = vrot.slane %v4695_v14, 1  ;;  %v4703_v18 = vld [vmem:[%s4672_s30 + $0x38] sm:$0xff]  ;;  %v359_v19 = vrot.slane %v4698_v15, 1  ;;  %v4707_v20 = vld [vmem:[%s4672_s30 + $0x40] sm:$0x3] }
  0x18   : > { %3846 = vmatprep.mubr.msk.f32.mxu1 %vm429_vm2, %v351_v16  ;;  %v356_v21 = vsel %vm348_vm1, %v354_v10, %v355_v12  ;;  %v360_v23 = vrot.slane %v4703_v18, 1  ;;  %v362_v24 = vrot.slane %v4707_v20, 1  ;;  %v4715_v25 = vld [vmem:[%s4672_s30 + $0x48] sm:$0xff]  ;;  %v4718_v26 = vld [vmem:[%s4672_s30 + $0x50] sm:$0xff]  ;;  %v4721_v27 = vld [vmem:[%s4672_s30 + $0x58] sm:$0x3] }
  0x19   : > { %v353_v22 = vsel %vm348_vm1, %v350_v8, %v352_v13  ;;  %4046 = vmatprep.mubr.msk.f32.mxu0 %vm429_vm2, %v356_v21  ;;  %v358_v28 = vsel %vm348_vm1, %v355_v12, %v357_v17  ;;  %v364_v29 = vrot.slane %v4715_v25, 1  ;;  %v365_v30 = vrot.slane %v4718_v26, 1  ;;  %v4729_v31 = vld [vmem:[%s4672_s30 + $0x60] sm:$0xff]  ;;  %v4732_v32 = vld [vmem:[%s4672_s30 + $0x68] sm:$0xff]  ;;  %v4763_v41 = vld [vmem:[%s4672_s30 + $0x70] sm:$0x3] }
  0x1a   : > { %3847 = vmatmul.mubr.msk.f32.vlgmr.msra.gmra.mrb[0].mxu1 %vm429_vm2, %v353_v22  ;;  %4047 = vmatmul.mubr.msk.f32.vlgmr.msra.gmra.mrb[0].mxu0 %vm429_vm2, %v358_v28  ;;  %v4742_v34 = vsel %vm348_vm1, %v359_v19, %v360_v23  ;;  %v4752_v36 = vsel %vm348_vm1, %v360_v23, %v362_v24  ;;  %v367_v37 = vrot.slane %v4721_v27, 1  ;;  %v369_v39 = vrot.slane %v4729_v31, 1  ;;  %v4769_v42 = vld [vmem:[%s4672_s30 + $0x78] sm:$0xff]  ;;  %v4772_v43 = vld [vmem:[%s4672_s30 + $0x80] sm:$0xff]  ;;  %v4792_v49 = vld [vmem:[%s4672_s30 + $0x88] sm:$0x3] }
  0x1b   : > { %3895 = vmatpush3.msk.msra.mxu1 %vm494_vm0, %v291_v2  ;;  %6000 = vst [vmem:[#allocation4_spill] sm:$0xff] %v4742_v34  ;;  %4095 = vmatpush3.msk.msra.mxu0 %vm494_vm0, %v296_v3  ;;  %6001 = vst [vmem:[#allocation5_spill] sm:$0xff] %v4752_v36  ;;  %v4758_v38 = vsel %vm348_vm1, %v364_v29, %v365_v30  ;;  %v370_v40 = vrot.slane %v4732_v32, 1  ;;  %v372_v45 = vrot.slane %v4763_v41, 1  ;;  %v374_v47 = vrot.slane %v4769_v42, 1  ;;  %v4797_v50 = vld [vmem:[%s4672_s30 + $0x90] sm:$0xff] }
  0x1c   : > { %3849 = vmatprep.mubr.msk.f32.mxu1 %vm429_vm2, %v356_v21  ;;  %4049 = vmatprep.mubr.msk.f32.mxu0 %vm429_vm2, %v4742_v34  ;;  %6002 = vst [vmem:[#allocation6_spill] sm:$0xff] %v4758_v38  ;;  %v4783_v44 = vsel %vm348_vm1, %v365_v30, %v367_v37  ;;  %v375_v48 = vrot.slane %v4772_v43, 1  ;;  %v4800_v51 = vld [vmem:[%s4672_s30 + $0x98] sm:$0xff]  ;;  %v377_v53 = vrot.slane %v4792_v49, 1  ;;  %v379_v55 = vrot.slane %v4797_v50, 1  ;;  %v4823_v58 = vld [vmem:[%s4672_s30 + $0xa8] sm:$0xff] }
  0x1d   : > { %4144 = vmatprep.subr.msk.mxu0 %vm494_vm0, %v4737_v33  ;;  %3944 = vmatprep.subr.msk.mxu1 %vm494_vm0, %v4747_v35  ;;  %6003 = vst [vmem:[#allocation7_spill] sm:$0xff] %v4783_v44  ;;  %v4787_v46 = vsel %vm348_vm1, %v369_v39, %v370_v40  ;;  %v4809_v52 = vsel %vm348_vm1, %v370_v40, %v372_v45  ;;  %v380_v56 = vrot.slane %v4800_v51, 1  ;;  %v4818_v57 = vld [vmem:[%s4672_s30 + $0xa0] sm:$0x3]  ;;  %v4826_v59 = vld [vmem:[%s4672_s30 + $0xb0] sm:$0xff]  ;;  %v384_v63 = vrot.slane %v4823_v58, 1 }
  0x1e   : > { %3850 = vmatmul.mubr.msk.f32.gmra.mrb[2].mxu1 %vm429_vm2, %v358_v28  ;;  %4050 = vmatmul.mubr.msk.f32.gmra.mrb[2].mxu0 %vm429_vm2, %v4752_v36  ;;  %6004 = vst [vmem:[#allocation8_spill] sm:$0xff] %v4787_v46  ;;  %6005 = vst [vmem:[#allocation9_spill] sm:$0xff] %v4809_v52  ;;  %v4813_v54 = vsel %vm348_vm1, %v374_v47, %v375_v48  ;;  %v4835_v60 = vsel %vm348_vm1, %v375_v48, %v377_v53  ;;  %v382_v61 = vrot.slane %v4818_v57, 1  ;;  %v4844_v2 = vld [vmem:[%s4672_s30 + $0xb8] sm:$0x3]  ;;  %v4849_v3 = vld [vmem:[%s4672_s30 + $0xc0] sm:$0xff] }
  0x1f   : > { %3852 = vmatprep.mubr.msk.f32.mxu1 %vm429_vm2, %v4742_v34  ;;  %4052 = vmatprep.mubr.msk.f32.mxu0 %vm429_vm2, %v4758_v38  ;;  %6006 = vst [vmem:[#allocation10_spill] sm:$0xff] %v4813_v54  ;;  %6007 = vst [vmem:[#allocation11_spill] sm:$0xff] %v4835_v60  ;;  %v4839_v62 = vsel %vm348_vm1, %v379_v55, %v380_v56  ;;  %v385_v0 = vrot.slane %v4826_v59, 1  ;;  %v4852_v7 = vld [vmem:[%s4672_s30 + $0xc8] sm:$0xff]  ;;  %v387_v10 = vrot.slane %v4844_v2, 1  ;;  %v389_v13 = vrot.slane %v4849_v3, 1 }
  0x20   : > { %6008 = vst [vmem:[#allocation12_spill] sm:$0xff] %v4839_v62  ;;  %v4861_v8 = vsel %vm348_vm1, %v380_v56, %v382_v61  ;;  %v390_v16 = vrot.slane %v4852_v7, 1  ;;  %v4870_v17 = vld [vmem:[%s4672_s30 + $0xd0] sm:$0x3]  ;;  %v1021_v23 = vrot.slane %v4681_v6, 2  ;;  %v1022_v24 = vrot.slane %v4686_v9, 2 }
  0x21   : > { %6009 = vst [vmem:[#allocation13_spill] sm:$0xff] %v4861_v8  ;;  %v4865_v12 = vsel %vm348_vm1, %v384_v63, %v385_v0  ;;  %v4881_v19 = vsel %vm348_vm1, %v385_v0, %v387_v10  ;;  %v392_v21 = vrot.slane %v4870_v17, 1  ;;  %v4890_v28 = vld [vmem:[%s4672_s30 + $0xd8] sm:$0xff]  ;;  %v4893_v29 = vld [vmem:[%s4672_s30 + $0xe0] sm:$0xff]  ;;  %v1024_v30 = vrot.slane %v4695_v14, 2  ;;  %v4918_v53 = vld [vmem:[%s4672_s30 + $0xf0] sm:$0xff] }
  0x22   : > { %3853 = vmatmul.mubr.msk.f32.gmra.mrb[4].mxu1 %vm429_vm2, %v4752_v36  ;;  %4053 = vmatmul.mubr.msk.f32.gmra.mrb[4].mxu0 %vm429_vm2, %v4783_v44  ;;  %6010 = vst [vmem:[#allocation14_spill] sm:$0xff] %v4865_v12  ;;  %6011 = vst [vmem:[#allocation15_spill] sm:$0xff] %v4881_v19  ;;  %v4885_v22 = vsel %vm348_vm1, %v389_v13, %v390_v16  ;;  %v394_v39 = vrot.slane %v4890_v28, 1  ;;  %v395_v40 = vrot.slane %v4893_v29, 1  ;;  %v4910_v45 = vld [vmem:[%s4672_s30 + $0xe8] sm:$0x3] }
  0x23   : > { %3855 = vmatprep.mubr.msk.f32.mxu1 %vm429_vm2, %v4758_v38  ;;  %4055 = vmatprep.mubr.msk.f32.mxu0 %vm429_vm2, %v4787_v46  ;;  %6012 = vst [vmem:[#allocation16_spill] sm:$0xff] %v4885_v22  ;;  %v4905_v37 = vsel %vm348_vm1, %v390_v16, %v392_v21  ;;  %v4913_v47 = vsel %vm1015_vm3, %v1021_v23, %v1022_v24  ;;  %v1026_v48 = vrot.slane %v4698_v15, 2  ;;  %v1027_v14 = vrot.slane %v4703_v18, 2  ;;  %v4921_v55 = vld [vmem:[%s4672_s30 + $0xf8] sm:$0xff]  ;;  %v4942_v16 = vld [vmem:[%s4672_s30 + $0x100] sm:$0x3] }
  0x24   : > { %6013 = vst [vmem:[#allocation17_spill] sm:$0xff] %v4905_v37  ;;  %v397_v56 = vrot.slane %v4910_v45, 1  ;;  %v1029_v61 = vrot.slane %v4707_v20, 2  ;;  %v4934_v63 = vsel %vm1015_vm3, %v1022_v24, %v1024_v30  ;;  %v4937_v0 = vsel %vm348_vm1, %v394_v39, %v395_v40  ;;  %v4953_v24 = vld [vmem:[%s4672_s30 + $0x110] sm:$0xff]  ;;  %v4960_v30 = vld [vmem:[%s5921_s1 + $0x1c] sm:$0xf] }
  0x25   : > { %6014 = vst [vmem:[#allocation18_spill] sm:$0xff] %v4937_v0  ;;  %v399_v10 = vrot.slane %v4918_v53, 1  ;;  %v400_v13 = vrot.slane %v4921_v55, 1  ;;  %v4945_v21 = vsel %vm1015_vm3, %v1026_v48, %v1027_v14  ;;  %v1031_v20 = vrot.slane %v4715_v25, 2  ;;  %v5056_v36 = vld [vmem:[%s4672_s30 + $0x148] sm:$0x3] }
  0x26   : > { %3856 = vmatmul.mubr.msk.f32.gmra.mrb[6].mxu1 %vm429_vm2, %v4783_v44  ;;  %4056 = vmatmul.mubr.msk.f32.gmra.mrb[6].mxu0 %vm429_vm2, %v4809_v52  ;;  %v1032_v23 = vrot.slane %v4718_v26, 2  ;;  %v4967_v39 = vsel %vm348_vm1, %v395_v40, %v397_v56  ;;  %v4970_v48 = vsel %vm1015_vm3, %v1027_v14, %v1029_v61  ;;  %v405_v40 = vrot.slane %v4953_v24, 1  ;;  %v4984_v56 = vld [vmem:[%s4672_s30 + $0x118] sm:$0x3] }
  0x27   : > { %3858 = vmatprep.mubr.msk.f32.mxu1 %vm429_vm2, %v4787_v46  ;;  %4058 = vmatprep.mubr.msk.f32.mxu0 %vm429_vm2, %v4813_v54  ;;  %6015 = vst [vmem:[#allocation19_spill] sm:$0xff] %v4967_v39  ;;  %6016 = vst [vmem:[#allocation20_spill] sm:$0xff] %v4970_v48  ;;  %v1036_v61 = vrot.slane %v4729_v31, 2  ;;  %v5029_v46 = vld [vmem:[%s4672_s30 + $0x138] sm:$0xff]  ;;  %v1044_v44 = vrot.slane %v4792_v49, 2  ;;  %v1049_v34 = vrot.slane %v4818_v57, 2 }
  0x28   : > { %v4987_v14 = vsel %vm1015_vm3, %v1031_v20, %v1032_v23  ;;  %v407_v20 = vrot.slane %v4984_v56, 1  ;;  %v414_v38 = vrot.slane %v5029_v46, 1  ;;  %v1051_v57 = vrot.slane %v4823_v58, 2 }
  0x29   : > { %6018 = vst [vmem:[#allocation22_spill] sm:$0xff] %v4987_v14 }
  0x2a   : > { %3859 = vmatmul.mubr.msk.f32.gmra.mrb[8].mxu1 %vm429_vm2, %v4809_v52  ;;  %4059 = vmatmul.mubr.msk.f32.gmra.mrb[8].mxu0 %vm429_vm2, %v4835_v60  ;;  %v5021_v52 = vld [vmem:[%s4672_s30 + $0x130] sm:$0x3] }
  0x2b   : > { %3861 = vmatprep.mubr.msk.f32.mxu1 %vm429_vm2, %v4813_v54  ;;  %4061 = vmatprep.mubr.msk.f32.mxu0 %vm429_vm2, %v4839_v62 }
  0x2e   : > { %3862 = vmatmul.mubr.msk.f32.gmra.mrb[10].mxu1 %vm429_vm2, %v4835_v60  ;;  %4062 = vmatmul.mubr.msk.f32.gmra.mrb[10].mxu0 %vm429_vm2, %v4861_v8 }
  0x2f   : > { %3864 = vmatprep.mubr.msk.f32.mxu1 %vm429_vm2, %v4839_v62  ;;  %4064 = vmatprep.mubr.msk.f32.mxu0 %vm429_vm2, %v4865_v12  ;;  %v1039_v62 = vrot.slane %v4763_v41, 2  ;;  %v1041_v41 = vrot.slane %v4769_v42, 2 }
  0x32   : > { %3865 = vmatmul.mubr.msk.f32.gmra.mrb[12].mxu1 %vm429_vm2, %v4861_v8  ;;  %4065 = vmatmul.mubr.msk.f32.gmra.mrb[12].mxu0 %vm429_vm2, %v4881_v19  ;;  %v4992_v8 = vld [vmem:[%s4672_s30 + $0x120] sm:$0xff] }
  0x33   : > { %3867 = vmatprep.mubr.msk.f32.mxu1 %vm429_vm2, %v4865_v12  ;;  %4067 = vmatprep.mubr.msk.f32.mxu0 %vm429_vm2, %v4885_v22  ;;  %v1034_v12 = vrot.slane %v4721_v27, 2  ;;  %v409_v54 = vrot.slane %v4992_v8, 1 }
  0x35   : > { %v5013_v60 = vsel %vm1015_vm3, %v1032_v23, %v1034_v12  ;;  %v5032_v12 = vld [vmem:[%s4672_s30 + $0x140] sm:$0xff] }
  0x36   : > { %3868 = vmatmul.mubr.msk.f32.gmra.mrb[14].mxu1 %vm429_vm2, %v4881_v19  ;;  %4068 = vmatmul.mubr.msk.f32.gmra.mrb[14].mxu0 %vm429_vm2, %v4905_v37  ;;  %v4978_v19 = vsel %vm348_vm1, %v399_v10, %v400_v13  ;;  %v4995_v10 = vld [vmem:[%s4672_s30 + $0x128] sm:$0xff]  ;;  %6020 = vst [vmem:[#allocation24_spill] sm:$0xff] %v5013_v60 }
  0x37   : > { %3870 = vmatprep.mubr.msk.f32.mxu1 %vm429_vm2, %v4885_v22  ;;  %4096 = vmatprep.mubr.msk.f32.mxu0 %vm429_vm2, %v4913_v47  ;;  %v4950_v22 = vld [vmem:[%s4672_s30 + $0x108] sm:$0xff]  ;;  %6017 = vst [vmem:[#allocation21_spill] sm:$0xff] %v4978_v19 }
  0x3a   : > { %3871 = vmatmul.mubr.msk.f32.gmra.mrb[16].mxu1 %vm429_vm2, %v4905_v37  ;;  %4097 = vmatmul.mubr.msk.f32.vlgmr.msra.gmra.mrb[0].mxu0 %vm429_vm2, %v4934_v63  ;;  %v402_v37 = vrot.slane %v4942_v16, 1 }
  0x3b   : > { %3873 = vmatprep.mubr.msk.f32.mxu1 %vm429_vm2, %v4937_v0  ;;  %4145 = vmatpush3.msk.msra.mxu0 %vm494_vm0, %v4737_v33  ;;  %v404_v0 = vrot.slane %v4950_v22, 1  ;;  %v1037_v33 = vrot.slane %v4732_v32, 2 }
  0x3c   : > { %4099 = vmatprep.mubr.msk.f32.mxu0 %vm429_vm2, %v4945_v21  ;;  %4194 = vmatprep.subr.msk.mxu0 %vm494_vm0, %v4960_v30  ;;  %v5006_v27 = vsel %vm348_vm1, %v400_v13, %v402_v37  ;;  %v1042_v13 = vrot.slane %v4772_v43, 2 }
  0x3d   : > { %6019 = vst [vmem:[#allocation23_spill] sm:$0xff] %v5006_v27  ;;  %v5024_v37 = vsel %vm1015_vm3, %v1036_v61, %v1037_v33  ;;  %v5044_v23 = vsel %vm1015_vm3, %v1037_v33, %v1039_v62  ;;  %v412_v61 = vrot.slane %v5021_v52, 1  ;;  %v1046_v62 = vrot.slane %v4797_v50, 2 }
  0x3e   : > { %3874 = vmatmul.mubr.msk.f32.gmra.mrb[18].mxu1 %vm429_vm2, %v4967_v39  ;;  %4100 = vmatmul.mubr.msk.f32.gmra.mrb[2].mxu0 %vm429_vm2, %v4970_v48  ;;  %v5016_v39 = vsel %vm348_vm1, %v404_v0, %v405_v40  ;;  %6022 = vst [vmem:[#allocation26_spill] sm:$0xff] %v5024_v37  ;;  %v5041_v0 = vsel %vm348_vm1, %v405_v40, %v407_v20  ;;  %6024 = vst [vmem:[#allocation28_spill] sm:$0xff] %v5044_v23  ;;  %v1047_v33 = vrot.slane %v4800_v51, 2  ;;  %v5064_v20 = vld [vmem:[%s4672_s30 + $0x150] sm:$0xff]  ;;  %v5126_v48 = vld [vmem:[%s4672_s30 + $0x178] sm:$0x3] }
  0x3f   : > { %3876 = vmatprep.mubr.msk.f32.mxu1 %vm429_vm2, %v4978_v19  ;;  %4102 = vmatprep.mubr.msk.f32.mxu0 %vm429_vm2, %v4987_v14  ;;  %6021 = vst [vmem:[#allocation25_spill] sm:$0xff] %v5016_v39  ;;  %v410_v19 = vrot.slane %v4995_v10, 1  ;;  %6023 = vst [vmem:[#allocation27_spill] sm:$0xff] %v5041_v0  ;;  %v5059_v40 = vsel %vm1015_vm3, %v1041_v41, %v1042_v13  ;;  %v417_v41 = vrot.slane %v5056_v36, 1 }
  0x40   : > { %6026 = vst [vmem:[#allocation30_spill] sm:$0xff] %v5059_v40 }
  0x41   : > { %v5076_v49 = vsel %vm348_vm1, %v410_v19, %v412_v61  ;;  %v1052_v61 = vrot.slane %v4826_v59, 2 }
  0x42   : > { %3877 = vmatmul.mubr.msk.f32.gmra.mrb[20].mxu1 %vm429_vm2, %v5006_v27  ;;  %4103 = vmatmul.mubr.msk.f32.gmra.mrb[4].mxu0 %vm429_vm2, %v5013_v60  ;;  %v5050_v27 = vsel %vm348_vm1, %v409_v54, %v410_v19  ;;  %v5067_v54 = vld [vmem:[%s4672_s30 + $0x158] sm:$0xff]  ;;  %6027 = vst [vmem:[#allocation31_spill] sm:$0xff] %v5076_v49  ;;  %v5091_v60 = vld [vmem:[%s4672_s30 + $0x160] sm:$0x3]  ;;  %v5094_v19 = vsel %vm1015_vm3, %v1046_v62, %v1047_v33 }
  0x43   : > { %3879 = vmatprep.mubr.msk.f32.mxu1 %vm429_vm2, %v5016_v39  ;;  %4105 = vmatprep.mubr.msk.f32.mxu0 %vm429_vm2, %v5024_v37  ;;  %6025 = vst [vmem:[#allocation29_spill] sm:$0xff] %v5050_v27  ;;  %v415_v39 = vrot.slane %v5032_v12, 1  ;;  %v5083_v37 = vsel %vm1015_vm3, %v1042_v13, %v1044_v44  ;;  %v5102_v44 = vld [vmem:[%s4672_s30 + $0x170] sm:$0xff]  ;;  %v5114_v13 = vsel %vm1015_vm3, %v1047_v33, %v1049_v34  ;;  %v422_v62 = vrot.slane %v5091_v60, 1 }
  0x44   : > { %6028 = vst [vmem:[#allocation32_spill] sm:$0xff] %v5083_v37  ;;  %6030 = vst [vmem:[#allocation34_spill] sm:$0xff] %v5102_v44  ;;  %v1056_v34 = vrot.slane %v4849_v3, 2  ;;  %v1057_v33 = vrot.slane %v4852_v7, 2 }
  0x45   : > { %6032 = vst [vmem:[#allocation36_spill] sm:$0xff] %v5114_v13 }
  0x46   : > { %3880 = vmatmul.mubr.msk.f32.gmra.mrb[22].mxu1 %vm429_vm2, %v5041_v0  ;;  %4106 = vmatmul.mubr.msk.f32.gmra.mrb[6].mxu0 %vm429_vm2, %v5044_v23  ;;  %v5086_v0 = vsel %vm348_vm1, %v414_v38, %v415_v39  ;;  %v419_v23 = vrot.slane %v5064_v20, 1  ;;  %v5111_v38 = vsel %vm348_vm1, %v415_v39, %v417_v41  ;;  %v5129_v39 = vsel %vm1015_vm3, %v1051_v57, %v1052_v61 }
  0x47   : > { %3882 = vmatprep.mubr.msk.f32.mxu1 %vm429_vm2, %v5050_v27  ;;  %4108 = vmatprep.mubr.msk.f32.mxu0 %vm429_vm2, %v5059_v40  ;;  %6029 = vst [vmem:[#allocation33_spill] sm:$0xff] %v5086_v0  ;;  %v420_v27 = vrot.slane %v5067_v54, 1  ;;  %v5099_v40 = vld [vmem:[%s4672_s30 + $0x168] sm:$0xff]  ;;  %6031 = vst [vmem:[#allocation35_spill] sm:$0xff] %v5111_v38 }
  0x49   : > { %v5120_v14 = vsel %vm348_vm1, %v419_v23, %v420_v27  ;;  %v427_v23 = vrot.slane %v5126_v48, 1 }
  0x4a   : > { %3883 = vmatmul.mubr.msk.f32.gmra.mrb[24].mxu1 %vm429_vm2, %v5076_v49  ;;  %4109 = vmatmul.mubr.msk.f32.gmra.mrb[8].mxu0 %vm429_vm2, %v5083_v37  ;;  %6033 = vst [vmem:[#allocation37_spill] sm:$0xff] %v5120_v14  ;;  %v1054_v49 = vrot.slane %v4844_v2, 2  ;;  %v424_v37 = vrot.slane %v5099_v40, 1  ;;  %v5140_v2 = vsel %vm348_vm1, %v420_v27, %v422_v62  ;;  %v1062_v27 = vrot.slane %v4893_v29, 2 }
  0x4b   : > { %3885 = vmatprep.mubr.msk.f32.mxu1 %vm429_vm2, %v5086_v0  ;;  %4111 = vmatprep.mubr.msk.f32.mxu0 %vm429_vm2, %v5094_v19  ;;  %v425_v0 = vrot.slane %v5102_v44, 1  ;;  %6034 = vst [vmem:[#allocation38_spill] sm:$0xff] %v5140_v2  ;;  %v1066_v62 = vrot.slane %v4918_v53, 2 }
  0x4c   : > { %v5146_v41 = vsel %vm1015_vm3, %v1052_v61, %v1054_v49  ;;  %v1064_v49 = vrot.slane %v4910_v45, 2 }
  0x4d   : > { %v5149_v57 = vsel %vm348_vm1, %v424_v37, %v425_v0  ;;  %v5164_v37 = vsel %vm348_vm1, %v425_v0, %v427_v23  ;;  %v5199_v23 = vld [vmem:[%s5921_s1 + $0xc] sm:$0xf] }
  0x4e   : > { %3886 = vmatmul.mubr.msk.f32.gmra.mrb[26].mxu1 %vm429_vm2, %v5111_v38  ;;  %4112 = vmatmul.mubr.msk.f32.gmra.mrb[10].mxu0 %vm429_vm2, %v5114_v13  ;;  %6035 = vst [vmem:[#allocation39_spill] sm:$0xff] %v5149_v57  ;;  %v1059_v38 = vrot.slane %v4870_v17, 2  ;;  %v5153_v13 = vsel %vm1015_vm3, %v1056_v34, %v1057_v33  ;;  %6036 = vst [vmem:[#allocation40_spill] sm:$0xff] %v5164_v37  ;;  %v1067_v34 = vrot.slane %v4921_v55, 2 }
  0x4f   : > { %3888 = vmatprep.mubr.msk.f32.mxu1 %vm429_vm2, %v5120_v14  ;;  %4114 = vmatprep.mubr.msk.f32.mxu0 %vm429_vm2, %v5129_v39  ;;  %v1061_v14 = vrot.slane %v4890_v28, 2  ;;  %v5186_v45 = vsel %vm1015_vm3, %v1062_v27, %v1064_v49 }
  0x50   : > { %v5169_v17 = vsel %vm1015_vm3, %v1057_v33, %v1059_v38  ;;  %v5190_v0 = vsel %vm1015_vm3, %v1066_v62, %v1067_v34  ;;  %v1071_v38 = vrot.slane %v4950_v22, 2  ;;  %v1072_v33 = vrot.slane %v4953_v24, 2 }
  0x51   : > { %v5173_v61 = vsel %vm1015_vm3, %v1061_v14, %v1062_v27  ;;  %v1069_v14 = vrot.slane %v4942_v16, 2  ;;  %v1074_v27 = vrot.slane %v4984_v56, 2  ;;  %v1076_v62 = vrot.slane %v4992_v8, 2 }
  0x52   : > { %3889 = vmatmul.mubr.msk.f32.gmra.mrb[28].mxu1 %vm429_vm2, %v5140_v2  ;;  %4115 = vmatmul.mubr.msk.f32.gmra.mrb[12].mxu0 %vm429_vm2, %v5146_v41  ;;  %v5214_v49 = vsel %vm1015_vm3, %v1071_v38, %v1072_v33  ;;  %v1081_v38 = vrot.slane %v5029_v46, 2  ;;  %v1092_v2 = vrot.slane %v5102_v44, 2 }
  0x53   : > { %3891 = vmatprep.mubr.msk.f32.mxu1 %vm429_vm2, %v5149_v57  ;;  %4117 = vmatprep.mubr.msk.f32.mxu0 %vm429_vm2, %v5153_v13  ;;  %v5210_v16 = vsel %vm1015_vm3, %v1067_v34, %v1069_v14  ;;  %6037 = vst [vmem:[#allocation41_spill] sm:$0xff] %v5214_v49  ;;  %v5229_v56 = vsel %vm1015_vm3, %v1072_v33, %v1074_v27  ;;  %v1079_v34 = vrot.slane %v5021_v52, 2  ;;  %v1084_v33 = vrot.slane %v5056_v36, 2 }
  0x54   : > { %v1087_v57 = vrot.slane %v5067_v54, 2 }
  0x56   : > { %3892 = vmatmul.mubr.msk.f32.gmra.mrb[30].mxu1 %vm429_vm2, %v5164_v37  ;;  %4118 = vmatmul.mubr.msk.f32.gmra.mrb[14].mxu0 %vm429_vm2, %v5169_v17  ;;  %v1082_v37 = vrot.slane %v5032_v12, 2 }
  0x57   : > { %3896 = vmatprep.mubr.msk.f32.mxu1 %vm429_vm2, %v4675_v4  ;;  %4120 = vmatprep.mubr.msk.f32.mxu0 %vm429_vm2, %v5173_v61 }
  0x58   : > { %v5250_v27 = vsel %vm1015_vm3, %v1081_v38, %v1082_v37  ;;  %v5263_v36 = vsel %vm1015_vm3, %v1082_v37, %v1084_v33  ;;  %v1091_v38 = vrot.slane %v5099_v40, 2  ;;  %v1094_v37 = vrot.slane %v5126_v48, 2 }
  0x59   : > { %6039 = vst [vmem:[#allocation43_spill] sm:$0xff] %v5250_v27  ;;  %6040 = vst [vmem:[#allocation44_spill] sm:$0xff] %v5263_v36 }
  0x5a   : > { %3897 = vmatmul.mubr.msk.f32.vlgmr.msra.gmra.mrb[0].mxu1 %vm429_vm2, %v4678_v5  ;;  %4121 = vmatmul.mubr.msk.f32.gmra.mrb[16].mxu0 %vm429_vm2, %v5186_v45  ;;  %v5290_v33 = vsel %vm1015_vm3, %v1091_v38, %v1092_v2  ;;  %v5306_v48 = vsel %vm1015_vm3, %v1092_v2, %v1094_v37  ;;  %v1017_v38 = vrot.slane %v4678_v5, 2  ;;  %v1019_v37 = vrot.slane %v4690_v11, 2  ;;  %v6047_v5 = vld [vmem:[#allocation20_spill] sm:$0xff]  ;;  %v6048_v11 = vld [vmem:[#allocation22_spill] sm:$0xff] }
  0x5b   : > { %3945 = vmatpush3.msk.msra.mxu1 %vm494_vm0, %v4747_v35  ;;  %3899 = vmatprep.mubr.msk.f32.mxu1 %vm429_vm2, %v4681_v6  ;;  %v1077_v35 = vrot.slane %v4995_v10, 2  ;;  %v5277_v6 = vld [vmem:[%s4672_s30 + $0x188] sm:$0xff]  ;;  %6043 = vst [vmem:[#allocation47_spill] sm:$0xff] %v5290_v33  ;;  %6044 = vst [vmem:[#allocation48_spill] sm:$0xff] %v5306_v48 }
  0x5c   : > { %4123 = vmatprep.mubr.msk.f32.mxu0 %vm429_vm2, %v5190_v0  ;;  %3994 = vmatprep.subr.msk.mxu1 %vm494_vm0, %v5199_v23 }
  0x5d   : > { %v5233_v14 = vsel %vm1015_vm3, %v1076_v62, %v1077_v35  ;;  %v5246_v52 = vsel %vm1015_vm3, %v1077_v35, %v1079_v34  ;;  %v1086_v62 = vrot.slane %v5064_v20, 2  ;;  %v1089_v35 = vrot.slane %v5091_v60, 2 }
  0x5e   : > { %3900 = vmatmul.mubr.msk.f32.gmra.mrb[2].mxu1 %vm429_vm2, %v4686_v9  ;;  %4124 = vmatmul.mubr.msk.f32.gmra.mrb[18].mxu0 %vm429_vm2, %v5210_v16  ;;  %6038 = vst [vmem:[#allocation42_spill] sm:$0xff] %v5246_v52  ;;  %v5274_v9 = vld [vmem:[%s4672_s30 + $0x180] sm:$0xff] }
  0x5f   : > { %3902 = vmatprep.mubr.msk.f32.mxu1 %vm429_vm2, %v4698_v15  ;;  %4126 = vmatprep.mubr.msk.f32.mxu0 %vm429_vm2, %v5214_v49  ;;  %v5267_v34 = vsel %vm1015_vm3, %v1086_v62, %v1087_v57  ;;  %v5286_v60 = vsel %vm1015_vm3, %v1087_v57, %v1089_v35  ;;  %v1956_v62 = vrot.slane %v5274_v9, 2 }
  0x60   : > { %6041 = vst [vmem:[#allocation45_spill] sm:$0xff] %v5267_v34  ;;  %6042 = vst [vmem:[#allocation46_spill] sm:$0xff] %v5286_v60 }
  0x62   : > { %3903 = vmatmul.mubr.msk.f32.gmra.mrb[4].mxu1 %vm429_vm2, %v4703_v18  ;;  %4127 = vmatmul.mubr.msk.f32.gmra.mrb[20].mxu0 %vm429_vm2, %v5229_v56 }
  0x63   : > { %3905 = vmatprep.mubr.msk.f32.mxu1 %vm429_vm2, %v4715_v25  ;;  %4129 = vmatprep.mubr.msk.f32.mxu0 %vm429_vm2, %v5233_v14 }
  0x66   : > { %3906 = vmatmul.mubr.msk.f32.gmra.mrb[6].mxu1 %vm429_vm2, %v4718_v26  ;;  %4130 = vmatmul.mubr.msk.f32.gmra.mrb[22].mxu0 %vm429_vm2, %v5246_v52  ;;  %v5295_v52 = vld [vmem:[%s4672_s30 + $0x190] sm:$0x3] }
  0x67   : > { %3908 = vmatprep.mubr.msk.f32.mxu1 %vm429_vm2, %v4729_v31  ;;  %4132 = vmatprep.mubr.msk.f32.mxu0 %vm429_vm2, %v5250_v27  ;;  %v1957_v27 = vrot.slane %v5277_v6, 2  ;;  %v1959_v57 = vrot.slane %v5295_v52, 2 }
  0x69   : > { %v5310_v35 = vsel %vm1015_vm3, %v1956_v62, %v1957_v27  ;;  %v5321_v2 = vsel %vm1015_vm3, %v1957_v27, %v1959_v57  ;;  %v5336_v27 = vld [vmem:[%s5921_s1 + $0x20] sm:$0xf] }
  0x6a   : > { %3909 = vmatmul.mubr.msk.f32.gmra.mrb[8].mxu1 %vm429_vm2, %v4732_v32  ;;  %4133 = vmatmul.mubr.msk.f32.gmra.mrb[24].mxu0 %vm429_vm2, %v5263_v36  ;;  %6045 = vst [vmem:[#allocation49_spill] sm:$0xff] %v5310_v35  ;;  %6046 = vst [vmem:[#allocation50_spill] sm:$0xff] %v5321_v2  ;;  %v6052_v57 = vld [vmem:[#allocation30_spill] sm:$0xff] }
  0x6b   : > { %3911 = vmatprep.mubr.msk.f32.mxu1 %vm429_vm2, %v4769_v42  ;;  %4135 = vmatprep.mubr.msk.f32.mxu0 %vm429_vm2, %v5267_v34 }
  0x6e   : > { %3912 = vmatmul.mubr.msk.f32.gmra.mrb[10].mxu1 %vm429_vm2, %v4772_v43  ;;  %4136 = vmatmul.mubr.msk.f32.gmra.mrb[26].mxu0 %vm429_vm2, %v5286_v60 }
  0x6f   : > { %3914 = vmatprep.mubr.msk.f32.mxu1 %vm429_vm2, %v4797_v50  ;;  %4138 = vmatprep.mubr.msk.f32.mxu0 %vm429_vm2, %v5290_v33 }
  0x72   : > { %3915 = vmatmul.mubr.msk.f32.gmra.mrb[12].mxu1 %vm429_vm2, %v4800_v51  ;;  %4139 = vmatmul.mubr.msk.f32.gmra.mrb[28].mxu0 %vm429_vm2, %v5306_v48 }
  0x73   : > { %3917 = vmatprep.mubr.msk.f32.mxu1 %vm429_vm2, %v4823_v58  ;;  %4141 = vmatprep.mubr.msk.f32.mxu0 %vm429_vm2, %v5310_v35  ;;  %v6057_v35 = vld [vmem:[#allocation6_spill] sm:$0xff] }
  0x76   : > { %3918 = vmatmul.mubr.msk.f32.gmra.mrb[14].mxu1 %vm429_vm2, %v4826_v59  ;;  %4142 = vmatmul.mubr.msk.f32.gmra.mrb[30].mxu0 %vm429_vm2, %v5321_v2  ;;  %v6056_v2 = vld [vmem:[#allocation5_spill] sm:$0xff] }
  0x77   : > { %3920 = vmatprep.mubr.msk.f32.mxu1 %vm429_vm2, %v4849_v3  ;;  %4146 = vmatprep.mubr.msk.f32.mxu0 %vm429_vm2, %v4698_v15 }
  0x7a   : > { %3921 = vmatmul.mubr.msk.f32.gmra.mrb[16].mxu1 %vm429_vm2, %v4852_v7  ;;  %4147 = vmatmul.mubr.msk.f32.vlgmr.msra.gmra.mrb[0].mxu0 %vm429_vm2, %v4703_v18 }
  0x7b   : > { %3923 = vmatprep.mubr.msk.f32.mxu1 %vm429_vm2, %v4890_v28  ;;  %4195 = vmatpush3.msk.msra.mxu0 %vm494_vm0, %v4960_v30  ;;  %v1016_v30 = vrot.slane %v4675_v4, 2  ;;  %v1020_v4 = vsel %vm1015_vm3, %v1017_v38, %v1019_v37  ;;  %v6054_v37 = vld [vmem:[#allocation36_spill] sm:$0xff] }
  0x7c   : > { %4149 = vmatprep.mubr.msk.f32.mxu0 %vm429_vm2, %v4715_v25  ;;  %4244 = vmatprep.subr.msk.mxu0 %vm494_vm0, %v5336_v27 }
  0x7d   : > { %v1018_v62 = vsel %vm1015_vm3, %v1016_v30, %v1017_v38  ;;  %v6053_v30 = vld [vmem:[#allocation32_spill] sm:$0xff]  ;;  %v5460_v38 = vld [vmem:[%s4672_s30 + $0x198] sm:$0xff] }
  0x7e   : > { %3924 = vmatmul.mubr.msk.f32.gmra.mrb[18].mxu1 %vm429_vm2, %v4893_v29  ;;  %4150 = vmatmul.mubr.msk.f32.gmra.mrb[2].mxu0 %vm429_vm2, %v4718_v26 }
  0x7f   : > { %3926 = vmatprep.mubr.msk.f32.mxu1 %vm429_vm2, %v4918_v53  ;;  %4152 = vmatprep.mubr.msk.f32.mxu0 %vm429_vm2, %v4729_v31 }
  0x82   : > { %3927 = vmatmul.mubr.msk.f32.gmra.mrb[20].mxu1 %vm429_vm2, %v4921_v55  ;;  %4153 = vmatmul.mubr.msk.f32.gmra.mrb[4].mxu0 %vm429_vm2, %v4732_v32 }
  0x83   : > { %3929 = vmatprep.mubr.msk.f32.mxu1 %vm429_vm2, %v4950_v22  ;;  %4155 = vmatprep.mubr.msk.f32.mxu0 %vm429_vm2, %v4769_v42 }
  0x86   : > { %3930 = vmatmul.mubr.msk.f32.gmra.mrb[22].mxu1 %vm429_vm2, %v4953_v24  ;;  %4156 = vmatmul.mubr.msk.f32.gmra.mrb[6].mxu0 %vm429_vm2, %v4772_v43 }
  0x87   : > { %3932 = vmatprep.mubr.msk.f32.mxu1 %vm429_vm2, %v4992_v8  ;;  %4158 = vmatprep.mubr.msk.f32.mxu0 %vm429_vm2, %v4797_v50 }
  0x8a   : > { %3933 = vmatmul.mubr.msk.f32.gmra.mrb[24].mxu1 %vm429_vm2, %v4995_v10  ;;  %4159 = vmatmul.mubr.msk.f32.gmra.mrb[8].mxu0 %vm429_vm2, %v4800_v51 }
  0x8b   : > { %3935 = vmatprep.mubr.msk.f32.mxu1 %vm429_vm2, %v5029_v46  ;;  %4161 = vmatprep.mubr.msk.f32.mxu0 %vm429_vm2, %v4823_v58 }
  0x8e   : > { %3936 = vmatmul.mubr.msk.f32.gmra.mrb[26].mxu1 %vm429_vm2, %v5032_v12  ;;  %4162 = vmatmul.mubr.msk.f32.gmra.mrb[10].mxu0 %vm429_vm2, %v4826_v59 }
  0x8f   : > { %3938 = vmatprep.mubr.msk.f32.mxu1 %vm429_vm2, %v5064_v20  ;;  %4164 = vmatprep.mubr.msk.f32.mxu0 %vm429_vm2, %v4849_v3 }
  0x92   : > { %3939 = vmatmul.mubr.msk.f32.gmra.mrb[28].mxu1 %vm429_vm2, %v5067_v54  ;;  %4165 = vmatmul.mubr.msk.f32.gmra.mrb[12].mxu0 %vm429_vm2, %v4852_v7 }
  0x93   : > { %3941 = vmatprep.mubr.msk.f32.mxu1 %vm429_vm2, %v5099_v40  ;;  %4167 = vmatprep.mubr.msk.f32.mxu0 %vm429_vm2, %v4890_v28 }
  0x96   : > { %3942 = vmatmul.mubr.msk.f32.gmra.mrb[30].mxu1 %vm429_vm2, %v5102_v44  ;;  %4168 = vmatmul.mubr.msk.f32.gmra.mrb[14].mxu0 %vm429_vm2, %v4893_v29 }
  0x97   : > { %3946 = vmatprep.mubr.msk.f32.mxu1 %vm429_vm2, %v1018_v62  ;;  %4170 = vmatprep.mubr.msk.f32.mxu0 %vm429_vm2, %v4918_v53  ;;  %v5471_v62 = vld [vmem:[%s4672_s30 + $0x1a0] sm:$0xff] }
  0x9a   : > { %3947 = vmatmul.mubr.msk.f32.vlgmr.msra.gmra.mrb[0].mxu1 %vm429_vm2, %v1020_v4  ;;  %4171 = vmatmul.mubr.msk.f32.gmra.mrb[16].mxu0 %vm429_vm2, %v4921_v55  ;;  %v6055_v4 = vld [vmem:[#allocation4_spill] sm:$0xff] }
  0x9b   : > { %3995 = vmatpush3.msk.msra.mxu1 %vm494_vm0, %v5199_v23  ;;  %3949 = vmatprep.mubr.msk.f32.mxu1 %vm429_vm2, %v4913_v47  ;;  %v6049_v47 = vld [vmem:[#allocation24_spill] sm:$0xff] }
  0x9c   : > { %4173 = vmatprep.mubr.msk.f32.mxu0 %vm429_vm2, %v4950_v22  ;;  %4294 = vmatprep.subr.msk.mxu1 %vm494_vm0, %v4650_v1  ;;  %v6051_v23 = vld [vmem:[#allocation28_spill] sm:$0xff] }
  0x9e   : > { %3950 = vmatmul.mubr.msk.f32.gmra.mrb[2].mxu1 %vm429_vm2, %v4934_v63  ;;  %4174 = vmatmul.mubr.msk.f32.gmra.mrb[18].mxu0 %vm429_vm2, %v4953_v24  ;;  %v6050_v63 = vld [vmem:[#allocation26_spill] sm:$0xff] }
  0x9f   : > { %3952 = vmatprep.mubr.msk.f32.mxu1 %vm429_vm2, %v4945_v21  ;;  %4176 = vmatprep.mubr.msk.f32.mxu0 %vm429_vm2, %v4992_v8 }
  0xa2   : > { %3953 = vmatmul.mubr.msk.f32.gmra.mrb[4].mxu1 %vm429_vm2, %v6047_v5  ;;  %4177 = vmatmul.mubr.msk.f32.gmra.mrb[20].mxu0 %vm429_vm2, %v4995_v10 }
  0xa3   : > { %3955 = vmatprep.mubr.msk.f32.mxu1 %vm429_vm2, %v6048_v11  ;;  %4179 = vmatprep.mubr.msk.f32.mxu0 %vm429_vm2, %v5029_v46 }
  0xa6   : > { %3956 = vmatmul.mubr.msk.f32.gmra.mrb[6].mxu1 %vm429_vm2, %v6049_v47  ;;  %4180 = vmatmul.mubr.msk.f32.gmra.mrb[22].mxu0 %vm429_vm2, %v5032_v12 }
  0xa7   : > { %3958 = vmatprep.mubr.msk.f32.mxu1 %vm429_vm2, %v6050_v63  ;;  %4182 = vmatprep.mubr.msk.f32.mxu0 %vm429_vm2, %v5064_v20 }
  0xaa   : > { %3959 = vmatmul.mubr.msk.f32.gmra.mrb[8].mxu1 %vm429_vm2, %v6051_v23  ;;  %4183 = vmatmul.mubr.msk.f32.gmra.mrb[24].mxu0 %vm429_vm2, %v5067_v54 }
  0xab   : > { %3961 = vmatprep.mubr.msk.f32.mxu1 %vm429_vm2, %v6052_v57  ;;  %4185 = vmatprep.mubr.msk.f32.mxu0 %vm429_vm2, %v5099_v40 }
  0xae   : > { %3962 = vmatmul.mubr.msk.f32.gmra.mrb[10].mxu1 %vm429_vm2, %v6053_v30  ;;  %4186 = vmatmul.mubr.msk.f32.gmra.mrb[26].mxu0 %vm429_vm2, %v5102_v44  ;;  %v6058_v44 = vld [vmem:[#allocation7_spill] sm:$0xff] }
  0xaf   : > { %3964 = vmatprep.mubr.msk.f32.mxu1 %vm429_vm2, %v5094_v19  ;;  %4188 = vmatprep.mubr.msk.f32.mxu0 %vm429_vm2, %v5274_v9 }
  0xb2   : > { %3965 = vmatmul.mubr.msk.f32.gmra.mrb[12].mxu1 %vm429_vm2, %v6054_v37  ;;  %4189 = vmatmul.mubr.msk.f32.gmra.mrb[28].mxu0 %vm429_vm2, %v5277_v6 }
  0xb3   : > { %3967 = vmatprep.mubr.msk.f32.mxu1 %vm429_vm2, %v5129_v39  ;;  %4191 = vmatprep.mubr.msk.f32.mxu0 %vm429_vm2, %v5460_v38 }
  0xb6   : > { %3968 = vmatmul.mubr.msk.f32.gmra.mrb[14].mxu1 %vm429_vm2, %v5146_v41  ;;  %4192 = vmatmul.mubr.msk.f32.gmra.mrb[30].mxu0 %vm429_vm2, %v5471_v62 }
  0xb7   : > { %3970 = vmatprep.mubr.msk.f32.mxu1 %vm429_vm2, %v5153_v13  ;;  %4196 = vmatprep.mubr.msk.f32.mxu0 %vm429_vm2, %v6055_v4  ;;  %v6059_v4 = vld [vmem:[#allocation8_spill] sm:$0xff] }
  0xba   : > { %3971 = vmatmul.mubr.msk.f32.gmra.mrb[16].mxu1 %vm429_vm2, %v5169_v17  ;;  %4197 = vmatmul.mubr.msk.f32.vlgmr.msra.gmra.mrb[0].mxu0 %vm429_vm2, %v6056_v2  ;;  %v6060_v2 = vld [vmem:[#allocation9_spill] sm:$0xff] }
  0xbb   : > { %3973 = vmatprep.mubr.msk.f32.mxu1 %vm429_vm2, %v5173_v61  ;;  %4245 = vmatpush3.msk.msra.mxu0 %vm494_vm0, %v5336_v27  ;;  %v6063_v27 = vld [vmem:[#allocation12_spill] sm:$0xff] }
  0xbc   : > { %4199 = vmatprep.mubr.msk.f32.mxu0 %vm429_vm2, %v6057_v35  ;;  %v6061_v35 = vld [vmem:[#allocation10_spill] sm:$0xff] }
  0xbe   : > { %3974 = vmatmul.mubr.msk.f32.gmra.mrb[18].mxu1 %vm429_vm2, %v5186_v45  ;;  %4200 = vmatmul.mubr.msk.f32.gmra.mrb[2].mxu0 %vm429_vm2, %v6058_v44  ;;  %v6062_v44 = vld [vmem:[#allocation11_spill] sm:$0xff] }
  0xbf   : > { %3976 = vmatprep.mubr.msk.f32.mxu1 %vm429_vm2, %v5190_v0  ;;  %4202 = vmatprep.mubr.msk.f32.mxu0 %vm429_vm2, %v6059_v4  ;;  %v6064_v4 = vld [vmem:[#allocation42_spill] sm:$0xff] }
  0xc2   : > { %3977 = vmatmul.mubr.msk.f32.gmra.mrb[20].mxu1 %vm429_vm2, %v5210_v16  ;;  %4203 = vmatmul.mubr.msk.f32.gmra.mrb[4].mxu0 %vm429_vm2, %v6060_v2  ;;  %v6065_v2 = vld [vmem:[#allocation13_spill] sm:$0xff] }
  0xc3   : > { %3979 = vmatprep.mubr.msk.f32.mxu1 %vm429_vm2, %v5214_v49  ;;  %4205 = vmatprep.mubr.msk.f32.mxu0 %vm429_vm2, %v6061_v35  ;;  %v6066_v49 = vld [vmem:[#allocation43_spill] sm:$0xff]  ;;  %v6067_v35 = vld [vmem:[#allocation14_spill] sm:$0xff] }
  0xc6   : > { %3980 = vmatmul.mubr.msk.f32.gmra.mrb[22].mxu1 %vm429_vm2, %v5229_v56  ;;  %4206 = vmatmul.mubr.msk.f32.gmra.mrb[6].mxu0 %vm429_vm2, %v6062_v44  ;;  %v6068_v44 = vld [vmem:[#allocation15_spill] sm:$0xff] }
  0xc7   : > { %3982 = vmatprep.mubr.msk.f32.mxu1 %vm429_vm2, %v5233_v14  ;;  %4208 = vmatprep.mubr.msk.f32.mxu0 %vm429_vm2, %v6063_v27  ;;  %v6069_v27 = vld [vmem:[#allocation16_spill] sm:$0xff] }
  0xca   : > { %3983 = vmatmul.mubr.msk.f32.gmra.mrb[24].mxu1 %vm429_vm2, %v6064_v4  ;;  %4209 = vmatmul.mubr.msk.f32.gmra.mrb[8].mxu0 %vm429_vm2, %v6065_v2  ;;  %v6070_v2 = vld [vmem:[#allocation17_spill] sm:$0xff] }
  0xcb   : > { %3985 = vmatprep.mubr.msk.f32.mxu1 %vm429_vm2, %v6066_v49  ;;  %4211 = vmatprep.mubr.msk.f32.mxu0 %vm429_vm2, %v6067_v35  ;;  %v6071_v35 = vld [vmem:[#allocation18_spill] sm:$0xff] }
  0xce   : > { %3986 = vmatmul.mubr.msk.f32.gmra.mrb[26].mxu1 %vm429_vm2, %v5263_v36  ;;  %4212 = vmatmul.mubr.msk.f32.gmra.mrb[10].mxu0 %vm429_vm2, %v6068_v44  ;;  %v6072_v44 = vld [vmem:[#allocation19_spill] sm:$0xff] }
  0xcf   : > { %3988 = vmatprep.mubr.msk.f32.mxu1 %vm429_vm2, %v5267_v34  ;;  %4214 = vmatprep.mubr.msk.f32.mxu0 %vm429_vm2, %v6069_v27  ;;  %v6073_v34 = vld [vmem:[#allocation2_spill] sm:$0xff]  ;;  %v6074_v27 = vld [vmem:[#allocation21_spill] sm:$0xff]  ;;  %v5598_v36 = vld [vmem:[%s4672_s30 + $0x1a8] sm:$0x3] }
  0xd2   : > { %3989 = vmatmul.mubr.msk.f32.gmra.mrb[28].mxu1 %vm429_vm2, %v5286_v60  ;;  %4215 = vmatmul.mubr.msk.f32.gmra.mrb[12].mxu0 %vm429_vm2, %v6070_v2  ;;  %v6075_v60 = vld [vmem:[#allocation3_spill] sm:$0xff] }
  0xd3   : > { %3991 = vmatprep.mubr.msk.f32.mxu1 %vm429_vm2, %v5290_v33  ;;  %4217 = vmatprep.mubr.msk.f32.mxu0 %vm429_vm2, %v6071_v35  ;;  %v6076_v2 = vld [vmem:[#allocation23_spill] sm:$0xff]  ;;  %v6084_v33 = vld [vmem:[#allocation38_spill] sm:$0xff] }
  0xd6   : > { %3992 = vmatmul.mubr.msk.f32.gmra.mrb[30].mxu1 %vm429_vm2, %v5306_v48  ;;  %4218 = vmatmul.mubr.msk.f32.gmra.mrb[14].mxu0 %vm429_vm2, %v6072_v44  ;;  %v6077_v48 = vld [vmem:[#allocation25_spill] sm:$0xff] }
  0xd7   : > { %3996 = vmatprep.mubr.msk.f32.mxu1 %vm429_vm2, %v6073_v34  ;;  %4220 = vmatprep.mubr.msk.f32.mxu0 %vm429_vm2, %v6074_v27  ;;  %v6078_v34 = vld [vmem:[#allocation27_spill] sm:$0xff] }
  0xda   : > { %3997 = vmatmul.mubr.msk.f32.vlgmr.msra.gmra.mrb[0].mxu1 %vm429_vm2, %v6075_v60  ;;  %4221 = vmatmul.mubr.msk.f32.gmra.mrb[16].mxu0 %vm429_vm2, %v6076_v2  ;;  %v6079_v60 = vld [vmem:[#allocation29_spill] sm:$0xff] }
  0xdb   : > { %4295 = vmatpush3.msk.msra.mxu1 %vm494_vm0, %v4650_v1  ;;  %3999 = vmatprep.mubr.msk.f32.mxu1 %vm429_vm2, %v4698_v15  ;;  %v6080_v1 = vld [vmem:[#allocation31_spill] sm:$0xff]  ;;  %v6081_v15 = vld [vmem:[#allocation33_spill] sm:$0xff] }
  0xdc   : > { %4223 = vmatprep.mubr.msk.f32.mxu0 %vm429_vm2, %v6077_v48 }
  0xde   : > { %4000 = vmatmul.mubr.msk.f32.gmra.mrb[2].mxu1 %vm429_vm2, %v4703_v18  ;;  %4224 = vmatmul.mubr.msk.f32.gmra.mrb[18].mxu0 %vm429_vm2, %v6078_v34  ;;  %v6082_v18 = vld [vmem:[#allocation35_spill] sm:$0xff] }
  0xdf   : > { %4002 = vmatprep.mubr.msk.f32.mxu1 %vm429_vm2, %v4715_v25  ;;  %4226 = vmatprep.mubr.msk.f32.mxu0 %vm429_vm2, %v6079_v60  ;;  %v6083_v25 = vld [vmem:[#allocation37_spill] sm:$0xff] }
  0xe2   : > { %4003 = vmatmul.mubr.msk.f32.gmra.mrb[4].mxu1 %vm429_vm2, %v4718_v26  ;;  %4227 = vmatmul.mubr.msk.f32.gmra.mrb[20].mxu0 %vm429_vm2, %v6080_v1  ;;  %v1687_v26 = vrot.slane %v5274_v9, 1 }
  0xe3   : > { %4005 = vmatprep.mubr.msk.f32.mxu1 %vm429_vm2, %v4729_v31  ;;  %4229 = vmatprep.mubr.msk.f32.mxu0 %vm429_vm2, %v6081_v15  ;;  %v1688_v31 = vrot.slane %v5277_v6, 1 }
  0xe5   : > { %v5595_v15 = vsel %vm348_vm1, %v1687_v26, %v1688_v31 }
  0xe6   : > { %4006 = vmatmul.mubr.msk.f32.gmra.mrb[6].mxu1 %vm429_vm2, %v4732_v32  ;;  %4230 = vmatmul.mubr.msk.f32.gmra.mrb[22].mxu0 %vm429_vm2, %v6082_v18  ;;  %v6085_v32 = vld [vmem:[#allocation39_spill] sm:$0xff]  ;;  %v2493_v18 = vrot.slane %v5471_v62, 1 }
  0xe7   : > { %4008 = vmatprep.mubr.msk.f32.mxu1 %vm429_vm2, %v4769_v42  ;;  %4232 = vmatprep.mubr.msk.f32.mxu0 %vm429_vm2, %v6083_v25  ;;  %v1690_v42 = vrot.slane %v5295_v52, 1  ;;  %v2492_v25 = vrot.slane %v5460_v38, 1  ;;  %v2495_v52 = vrot.slane %v5598_v36, 1 }
  0xe9   : > { %v2494_v26 = vsel %vm348_vm1, %v2492_v25, %v2493_v18 }
  0xea   : > { %4009 = vmatmul.mubr.msk.f32.gmra.mrb[8].mxu1 %vm429_vm2, %v4772_v43  ;;  %4233 = vmatmul.mubr.msk.f32.gmra.mrb[24].mxu0 %vm429_vm2, %v6084_v33  ;;  %v6086_v43 = vld [vmem:[#allocation40_spill] sm:$0xff] }
  0xeb   : > { %4011 = vmatprep.mubr.msk.f32.mxu1 %vm429_vm2, %v4797_v50  ;;  %4235 = vmatprep.mubr.msk.f32.mxu0 %vm429_vm2, %v6085_v32  ;;  %v5609_v50 = vsel %vm348_vm1, %v1688_v31, %v1690_v42 }
  0xee   : > { %4012 = vmatmul.mubr.msk.f32.gmra.mrb[10].mxu1 %vm429_vm2, %v4800_v51  ;;  %4236 = vmatmul.mubr.msk.f32.gmra.mrb[26].mxu0 %vm429_vm2, %v6086_v43  ;;  %v2496_v51 = vsel %vm348_vm1, %v2493_v18, %v2495_v52 }
  0xef   : > { %4014 = vmatprep.mubr.msk.f32.mxu1 %vm429_vm2, %v4823_v58  ;;  %4238 = vmatprep.mubr.msk.f32.mxu0 %vm429_vm2, %v5595_v15  ;;  %v6090_v58 = vld [vmem:[#allocation33_spill] sm:$0xff] }
  0xf2   : > { %4015 = vmatmul.mubr.msk.f32.gmra.mrb[12].mxu1 %vm429_vm2, %v4826_v59  ;;  %4239 = vmatmul.mubr.msk.f32.gmra.mrb[28].mxu0 %vm429_vm2, %v5609_v50  ;;  %v6091_v59 = vld [vmem:[#allocation45_spill] sm:$0xff] }
  0xf3   : > { %4017 = vmatprep.mubr.msk.f32.mxu1 %vm429_vm2, %v4849_v3  ;;  %4241 = vmatprep.mubr.msk.f32.mxu0 %vm429_vm2, %v2494_v26  ;;  %v6092_v3 = vld [vmem:[#allocation35_spill] sm:$0xff] }
  0xf6   : > { %4018 = vmatmul.mubr.msk.f32.gmra.mrb[14].mxu1 %vm429_vm2, %v4852_v7  ;;  %4242 = vmatmul.mubr.msk.f32.gmra.mrb[30].mxu0 %vm429_vm2, %v2496_v51  ;;  %v6093_v7 = vld [vmem:[#allocation46_spill] sm:$0xff] }
  0xf7   : > { %4020 = vmatprep.mubr.msk.f32.mxu1 %vm429_vm2, %v4890_v28  ;;  %4246 = vmatprep.mubr.msk.f32.mxu0 %vm429_vm2, %v4945_v21  ;;  %v2761_v28 = vrot.slane %v5460_v38, 2  ;;  %v2764_v21 = vrot.slane %v5598_v36, 2 }
  0xfa   : > { %4021 = vmatmul.mubr.msk.f32.gmra.mrb[16].mxu1 %vm429_vm2, %v4893_v29  ;;  %4247 = vmatmul.mubr.msk.f32.vlgmr.msra.gmra.mrb[0].mxu0 %vm429_vm2, %v6047_v5  ;;  %v2762_v29 = vrot.slane %v5471_v62, 2 }
  0xfb   : > { %4023 = vmatprep.mubr.msk.f32.mxu1 %vm429_vm2, %v4918_v53  ;;  %4249 = vmatprep.mubr.msk.f32.mxu0 %vm429_vm2, %v6048_v11  ;;  %v6096_v53 = vld [vmem:[#allocation48_spill] sm:$0xff] }
  0xfe   : > { %4024 = vmatmul.mubr.msk.f32.gmra.mrb[18].mxu1 %vm429_vm2, %v4921_v55  ;;  %4250 = vmatmul.mubr.msk.f32.gmra.mrb[2].mxu0 %vm429_vm2, %v6049_v47  ;;  %v6097_v55 = vld [vmem:[#allocation49_spill] sm:$0xff]  ;;  %v5772_v47 = vld [vmem:[%s5923_s3] ss:$0 sm:$0xff] }
  0xff   : > { %4026 = vmatprep.mubr.msk.f32.mxu1 %vm429_vm2, %v4950_v22  ;;  %4252 = vmatprep.mubr.msk.f32.mxu0 %vm429_vm2, %v6050_v63  ;;  %v6095_v22 = vld [vmem:[#allocation47_spill] sm:$0xff] }
 0x102   : > { %4027 = vmatmul.mubr.msk.f32.gmra.mrb[20].mxu1 %vm429_vm2, %v4953_v24  ;;  %4253 = vmatmul.mubr.msk.f32.gmra.mrb[4].mxu0 %vm429_vm2, %v6051_v23  ;;  %v2763_v24 = vsel %vm1015_vm3, %v2761_v28, %v2762_v29 }
 0x103   : > { %4029 = vmatprep.mubr.msk.f32.mxu1 %vm429_vm2, %v4992_v8  ;;  %4255 = vmatprep.mubr.msk.f32.mxu0 %vm429_vm2, %v6052_v57  ;;  %v6094_v8 = vld [vmem:[#allocation37_spill] sm:$0xff] }
 0x106   : > { %4030 = vmatmul.mubr.msk.f32.gmra.mrb[22].mxu1 %vm429_vm2, %v4995_v10  ;;  %4256 = vmatmul.mubr.msk.f32.gmra.mrb[6].mxu0 %vm429_vm2, %v6053_v30  ;;  %v6098_v10 = vld [vmem:[#allocation50_spill] sm:$0xff] }
 0x107   : > { %4032 = vmatprep.mubr.msk.f32.mxu1 %vm429_vm2, %v5029_v46  ;;  %4258 = vmatprep.mubr.msk.f32.mxu0 %vm429_vm2, %v5094_v19  ;;  %v6087_v46 = vld [vmem:[#allocation34_spill] sm:$0xff] }
 0x10a   : > { %4033 = vmatmul.mubr.msk.f32.gmra.mrb[24].mxu1 %vm429_vm2, %v5032_v12  ;;  %4259 = vmatmul.mubr.msk.f32.gmra.mrb[8].mxu0 %vm429_vm2, %v6054_v37  ;;  %v2765_v12 = vsel %vm1015_vm3, %v2762_v29, %v2764_v21 }
 0x10b   : > { %4035 = vmatprep.mubr.msk.f32.mxu1 %vm429_vm2, %v5064_v20  ;;  %4261 = vmatprep.mubr.msk.f32.mxu0 %vm429_vm2, %v5129_v39 }
 0x10e   : > { %4036 = vmatmul.mubr.msk.f32.gmra.mrb[26].mxu1 %vm429_vm2, %v5067_v54  ;;  %4262 = vmatmul.mubr.msk.f32.gmra.mrb[10].mxu0 %vm429_vm2, %v5146_v41 }
 0x10f   : > { %4038 = vmatprep.mubr.msk.f32.mxu1 %vm429_vm2, %v5099_v40  ;;  %4264 = vmatprep.mubr.msk.f32.mxu0 %vm429_vm2, %v5153_v13 }
 0x112   : > { %4039 = vmatmul.mubr.msk.f32.gmra.mrb[28].mxu1 %vm429_vm2, %v6087_v46  ;;  %4265 = vmatmul.mubr.msk.f32.gmra.mrb[12].mxu0 %vm429_vm2, %v5169_v17 }
 0x113   : > { %4041 = vmatprep.mubr.msk.f32.mxu1 %vm429_vm2, %v5274_v9  ;;  %4267 = vmatprep.mubr.msk.f32.mxu0 %vm429_vm2, %v5173_v61  ;;  %v6088_v9 = vld [vmem:[#allocation41_spill] sm:$0xff] }
 0x116   : > { %4042 = vmatmul.mubr.msk.f32.gmra.mrb[30].mxu1 %vm429_vm2, %v5277_v6  ;;  %4268 = vmatmul.mubr.msk.f32.gmra.mrb[14].mxu0 %vm429_vm2, %v5186_v45  ;;  %v6089_v6 = vld [vmem:[#allocation44_spill] sm:$0xff] }
 0x117   : > { %4070 = vmatprep.mubr.msk.f32.mxu1 %vm429_vm2, %v6071_v35  ;;  %4270 = vmatprep.mubr.msk.f32.mxu0 %vm429_vm2, %v5190_v0 }
 0x11a   : > { %4071 = vmatmul.mubr.msk.f32.vlgmr.msra.gmra.mrb[16].mxu1 %vm429_vm2, %v6072_v44  ;;  %4271 = vmatmul.mubr.msk.f32.gmra.mrb[16].mxu0 %vm429_vm2, %v5210_v16 }
 0x11b   : > { %4073 = vmatprep.mubr.msk.f32.mxu1 %vm429_vm2, %v6074_v27  ;;  %4273 = vmatprep.mubr.msk.f32.mxu0 %vm429_vm2, %v6088_v9 }
 0x11e   : > { %4074 = vmatmul.mubr.msk.f32.gmra.mrb[18].mxu1 %vm429_vm2, %v6076_v2  ;;  %4274 = vmatmul.mubr.msk.f32.gmra.mrb[18].mxu0 %vm429_vm2, %v5229_v56 }
 0x11f   : > { %4076 = vmatprep.mubr.msk.f32.mxu1 %vm429_vm2, %v6077_v48  ;;  %4276 = vmatprep.mubr.msk.f32.mxu0 %vm429_vm2, %v5233_v14  ;;  %v5766_v48 = vld [vmem:[%s5922_s2] ss:$0 sm:$0xff] }
 0x122   : > { %4077 = vmatmul.mubr.msk.f32.gmra.mrb[20].mxu1 %vm429_vm2, %v6078_v34  ;;  %4277 = vmatmul.mubr.msk.f32.gmra.mrb[20].mxu0 %vm429_vm2, %v6064_v4 }
 0x123   : > { %4079 = vmatprep.mubr.msk.f32.mxu1 %vm429_vm2, %v6079_v60  ;;  %4279 = vmatprep.mubr.msk.f32.mxu0 %vm429_vm2, %v6066_v49 }
 0x126   : > { %4080 = vmatmul.mubr.msk.f32.gmra.mrb[22].mxu1 %vm429_vm2, %v6080_v1  ;;  %4280 = vmatmul.mubr.msk.f32.gmra.mrb[22].mxu0 %vm429_vm2, %v6089_v6 }
 0x127   : > { %4082 = vmatprep.mubr.msk.f32.mxu1 %vm429_vm2, %v6090_v58  ;;  %4282 = vmatprep.mubr.msk.f32.mxu0 %vm429_vm2, %v6091_v59 }
 0x12a   : > { %4083 = vmatmul.mubr.msk.f32.gmra.mrb[24].mxu1 %vm429_vm2, %v6092_v3  ;;  %4283 = vmatmul.mubr.msk.f32.gmra.mrb[24].mxu0 %vm429_vm2, %v6093_v7 }
 0x12b   : > { %4085 = vmatprep.mubr.msk.f32.mxu1 %vm429_vm2, %v6094_v8  ;;  %4285 = vmatprep.mubr.msk.f32.mxu0 %vm429_vm2, %v6095_v22 }
 0x12e   : > { %4086 = vmatmul.mubr.msk.f32.gmra.mrb[26].mxu1 %vm429_vm2, %v6084_v33  ;;  %4286 = vmatmul.mubr.msk.f32.gmra.mrb[26].mxu0 %vm429_vm2, %v6096_v53 }
 0x12f   : > { %4088 = vmatprep.mubr.msk.f32.mxu1 %vm429_vm2, %v6085_v32  ;;  %4288 = vmatprep.mubr.msk.f32.mxu0 %vm429_vm2, %v6097_v55 }
 0x132   : > { %4089 = vmatmul.mubr.msk.f32.gmra.mrb[28].mxu1 %vm429_vm2, %v6086_v43  ;;  %4289 = vmatmul.mubr.msk.f32.gmra.mrb[28].mxu0 %vm429_vm2, %v6098_v10 }
 0x133   : > { %4091 = vmatprep.mubr.msk.f32.mxu1 %vm429_vm2, %v5595_v15  ;;  %4291 = vmatprep.mubr.msk.f32.mxu0 %vm429_vm2, %v2763_v24 }
 0x136   : > { %4092 = vmatmul.mubr.msk.f32.gmra.mrb[30].mxu1 %vm429_vm2, %v5609_v50  ;;  %4292 = vmatmul.mubr.msk.f32.gmra.mrb[30].mxu0 %vm429_vm2, %v2765_v12 }
 0x1ad   : > { %v3998_v40 = vpop.f32.mrb[0].mxu1 }
 0x1ae   : > { %v1495_v20 = vpop.f32.mrb[1].mxu1 }
 0x1b1   : > { %v4001_v54 = vpop.f32.mrb[2].mxu1 }
 0x1b2   : > { %v1505_v19 = vpop.f32.mrb[3].mxu1 }
 0x1b5   : > { %v4004_v13 = vpop.f32.mrb[4].mxu1 }
 0x1b6   : > { %v1515_v39 = vpop.f32.mrb[5].mxu1 }
 0x1b9   : > { %v4007_v41 = vpop.f32.mrb[6].mxu1 }
 0x1ba   : > { %v1525_v17 = vpop.f32.mrb[7].mxu1 }
 0x1bd   : > { %v4010_v61 = vpop.f32.mrb[8].mxu1 }
 0x1be   : > { %v1535_v45 = vpop.f32.mrb[9].mxu1 }
 0x1c1   : > { %v4013_v0 = vpop.f32.mrb[10].mxu1 }
 0x1c2   : > { %v1545_v16 = vpop.f32.mrb[11].mxu1 }
 0x1c5   : > { %v5755_v49 = vpop.f32.mrb[12].mxu1 }
 0x1c6   : > { %v5757_v56 = vpop.f32.mrb[13].mxu1 }
 0x1c9   : > { %v5759_v14 = vpop.f32.mrb[14].mxu1 }
 0x1ca   : > { %v5761_v36 = vpop.f32.mrb[15].mxu1 }
 0x1cd   : > { %v4248_v33 = vpop.f32.mrb[0].mxu0 }
 0x1ce   : > { %v4296_v5 = vadd.f32 %v4248_v33, %v3998_v40  ;;  %v2839_v11 = vpop.f32.mrb[1].mxu0 }
 0x1cf   : > { %v4297_v63 = vadd.f32 %v2839_v11, %v1495_v20 }
 0x1d0   : > { %v3038_v23 = vmul.f32 %v4296_v5, %v5766_v48 }
 0x1d1   : > { %v3037_v57 = vmul.f32 %v4297_v63, %v5766_v48  ;;  %v4251_v30 = vpop.f32.mrb[2].mxu0 }
 0x1d2   : > { %v3077_v38 = vadd.f32 %v5772_v47, %v3038_v23  ;;  %v4298_v37 = vadd.f32 %v4251_v30, %v4001_v54  ;;  %v2849_v62 = vpop.f32.mrb[3].mxu0 }
 0x1d3   : > { %v3076_v4 = vadd.f32 %v5772_v47, %v3037_v57  ;;  %v4299_v35 = vadd.f32 %v2849_v62, %v1505_v19 }
 0x1d4   : > { %3110 = vst.msk [vmem:[%s5778_s26 + $0x8] sm:$0xff] %vm3108_vm4, %v3077_v38  ;;  %v3040_v44 = vmul.f32 %v4298_v37, %v5766_v48 }
 0x1d5   : > { %3109 = vst.msk [vmem:[%s5778_s26] sm:$0xff] %vm3108_vm4, %v3076_v4  ;;  %v3039_v27 = vmul.f32 %v4299_v35, %v5766_v48  ;;  %v4254_v2 = vpop.f32.mrb[4].mxu0 }
 0x1d6   : > { %v3079_v34 = vadd.f32 %v5772_v47, %v3040_v44  ;;  %v4300_v60 = vadd.f32 %v4254_v2, %v4004_v13  ;;  %v2859_v1 = vpop.f32.mrb[5].mxu0 }
 0x1d7   : > { %v3078_v15 = vadd.f32 %v5772_v47, %v3039_v27  ;;  %v4301_v18 = vadd.f32 %v2859_v1, %v1515_v39 }
 0x1d8   : > { %3112 = vst.msk [vmem:[%s5778_s26 + $0x18] sm:$0xff] %vm3108_vm4, %v3079_v34  ;;  %v3042_v25 = vmul.f32 %v4300_v60, %v5766_v48 }
 0x1d9   : > { %3111 = vst.msk [vmem:[%s5778_s26 + $0x10] sm:$0xff] %vm3108_vm4, %v3078_v15  ;;  %v3041_v31 = vmul.f32 %v4301_v18, %v5766_v48  ;;  %v4257_v32 = vpop.f32.mrb[6].mxu0 }
 0x1da   : > { %v3081_v42 = vadd.f32 %v5772_v47, %v3042_v25  ;;  %v4302_v43 = vadd.f32 %v4257_v32, %v4007_v41  ;;  %v2869_v50 = vpop.f32.mrb[7].mxu0 }
 0x1db   : > { %v3080_v52 = vadd.f32 %v5772_v47, %v3041_v31  ;;  %v4303_v26 = vadd.f32 %v2869_v50, %v1525_v17 }
 0x1dc   : > { %3114 = vst.msk [vmem:[%s5778_s26 + $0x28] sm:$0xff] %vm3108_vm4, %v3081_v42  ;;  %v3044_v51 = vmul.f32 %v4302_v43, %v5766_v48 }
 0x1dd   : > { %3113 = vst.msk [vmem:[%s5778_s26 + $0x20] sm:$0xff] %vm3108_vm4, %v3080_v52  ;;  %v3043_v46 = vmul.f32 %v4303_v26, %v5766_v48  ;;  %v4260_v9 = vpop.f32.mrb[8].mxu0 }
 0x1de   : > { %v3083_v6 = vadd.f32 %v5772_v47, %v3044_v51  ;;  %v4304_v58 = vadd.f32 %v4260_v9, %v4010_v61  ;;  %v2879_v59 = vpop.f32.mrb[9].mxu0 }
 0x1df   : > { %v3082_v3 = vadd.f32 %v5772_v47, %v3043_v46  ;;  %v4305_v7 = vadd.f32 %v2879_v59, %v1535_v45 }
 0x1e0   : > { %3116 = vst.msk [vmem:[%s5778_s26 + $0x38] sm:$0xff] %vm3108_vm4, %v3083_v6  ;;  %v3046_v8 = vmul.f32 %v4304_v58, %v5766_v48 }
 0x1e1   : > { %3115 = vst.msk [vmem:[%s5778_s26 + $0x30] sm:$0xff] %vm3108_vm4, %v3082_v3  ;;  %v3045_v22 = vmul.f32 %v4305_v7, %v5766_v48  ;;  %v4263_v28 = vpop.f32.mrb[10].mxu0 }
 0x1e2   : > { %v3085_v29 = vadd.f32 %v5772_v47, %v3046_v8  ;;  %v4306_v53 = vadd.f32 %v4263_v28, %v4013_v0  ;;  %v2889_v55 = vpop.f32.mrb[11].mxu0 }
 0x1e3   : > { %v3084_v21 = vadd.f32 %v5772_v47, %v3045_v22  ;;  %v4307_v24 = vadd.f32 %v2889_v55, %v1545_v16 }
 0x1e4   : > { %3118 = vst.msk [vmem:[%s5778_s26 + $0x48] sm:$0xff] %vm3108_vm4, %v3085_v29  ;;  %v3048_v10 = vmul.f32 %v4306_v53, %v5766_v48 }
 0x1e5   : > { %3117 = vst.msk [vmem:[%s5778_s26 + $0x40] sm:$0xff] %vm3108_vm4, %v3084_v21  ;;  %v3047_v12 = vmul.f32 %v4307_v24, %v5766_v48  ;;  %v4266_v40 = vpop.f32.mrb[12].mxu0 }
 0x1e6   : > { %v3087_v20 = vadd.f32 %v5772_v47, %v3048_v10  ;;  %v4308_v54 = vadd.f32 %v4266_v40, %v5755_v49  ;;  %v2899_v19 = vpop.f32.mrb[13].mxu0 }
 0x1e7   : > { %v3086_v13 = vadd.f32 %v5772_v47, %v3047_v12  ;;  %v4309_v39 = vadd.f32 %v2899_v19, %v5757_v56 }
 0x1e8   : > { %3120 = vst.msk [vmem:[%s5778_s26 + $0x58] sm:$0xff] %vm3108_vm4, %v3087_v20  ;;  %v3050_v41 = vmul.f32 %v4308_v54, %v5766_v48 }
 0x1e9   : > { %3119 = vst.msk [vmem:[%s5778_s26 + $0x50] sm:$0xff] %vm3108_vm4, %v3086_v13  ;;  %v3049_v17 = vmul.f32 %v4309_v39, %v5766_v48  ;;  %v4269_v61 = vpop.f32.mrb[14].mxu0 }
 0x1ea   : > { %v3089_v45 = vadd.f32 %v5772_v47, %v3050_v41  ;;  %v4310_v0 = vadd.f32 %v4269_v61, %v5759_v14  ;;  %v2909_v16 = vpop.f32.mrb[15].mxu0 }
 0x1eb   : > { %v3088_v49 = vadd.f32 %v5772_v47, %v3049_v17  ;;  %v4311_v33 = vadd.f32 %v2909_v16, %v5761_v36 }
 0x1ec   : > { %3122 = vst.msk [vmem:[%s5778_s26 + $0x68] sm:$0xff] %vm3108_vm4, %v3089_v45  ;;  %v3052_v56 = vmul.f32 %v4310_v0, %v5766_v48 }
 0x1ed   : > { %v4072_v5 = vpop.f32.mrb[16].mxu1  ;;  %3121 = vst.msk [vmem:[%s5778_s26 + $0x60] sm:$0xff] %vm3108_vm4, %v3088_v49  ;;  %v3051_v11 = vmul.f32 %v4311_v33, %v5766_v48  ;;  %v4272_v63 = vpop.f32.mrb[16].mxu0 }
 0x1ee   : > { %v1845_v23 = vpop.f32.mrb[17].mxu1  ;;  %v3091_v14 = vadd.f32 %v5772_v47, %v3052_v56  ;;  %v4312_v57 = vadd.f32 %v4272_v63, %v4072_v5  ;;  %v2919_v30 = vpop.f32.mrb[17].mxu0 }
 0x1ef   : > { %v3090_v38 = vadd.f32 %v5772_v47, %v3051_v11  ;;  %v4313_v36 = vadd.f32 %v2919_v30, %v1845_v23 }
 0x1f0   : > { %3124 = vst.msk [vmem:[%s5778_s26 + $0x78] sm:$0xff] %vm3108_vm4, %v3091_v14  ;;  %v3054_v37 = vmul.f32 %v4312_v57, %v5766_v48 }
 0x1f1   : > { %v4075_v62 = vpop.f32.mrb[18].mxu1  ;;  %3123 = vst.msk [vmem:[%s5778_s26 + $0x70] sm:$0xff] %vm3108_vm4, %v3090_v38  ;;  %v3053_v4 = vmul.f32 %v4313_v36, %v5766_v48  ;;  %v4275_v35 = vpop.f32.mrb[18].mxu0 }
 0x1f2   : > { %v1855_v44 = vpop.f32.mrb[19].mxu1  ;;  %v3093_v27 = vadd.f32 %v5772_v47, %v3054_v37  ;;  %v4314_v2 = vadd.f32 %v4275_v35, %v4075_v62  ;;  %v2929_v34 = vpop.f32.mrb[19].mxu0 }
 0x1f3   : > { %v3092_v60 = vadd.f32 %v5772_v47, %v3053_v4  ;;  %v4315_v1 = vadd.f32 %v2929_v34, %v1855_v44 }
 0x1f4   : > { %3126 = vst.msk [vmem:[%s5778_s26 + $0x88] sm:$0xff] %vm3108_vm4, %v3093_v27  ;;  %v3056_v15 = vmul.f32 %v4314_v2, %v5766_v48 }
 0x1f5   : > { %v4078_v18 = vpop.f32.mrb[20].mxu1  ;;  %3125 = vst.msk [vmem:[%s5778_s26 + $0x80] sm:$0xff] %vm3108_vm4, %v3092_v60  ;;  %v3055_v25 = vmul.f32 %v4315_v1, %v5766_v48  ;;  %v4278_v31 = vpop.f32.mrb[20].mxu0 }
 0x1f6   : > { %v1865_v32 = vpop.f32.mrb[21].mxu1  ;;  %v3095_v42 = vadd.f32 %v5772_v47, %v3056_v15  ;;  %v4316_v43 = vadd.f32 %v4278_v31, %v4078_v18  ;;  %v2939_v50 = vpop.f32.mrb[21].mxu0 }
 0x1f7   : > { %v3094_v52 = vadd.f32 %v5772_v47, %v3055_v25  ;;  %v4317_v26 = vadd.f32 %v2939_v50, %v1865_v32 }
 0x1f8   : > { %3128 = vst.msk [vmem:[%s5778_s26 + $0x98] sm:$0xff] %vm3108_vm4, %v3095_v42  ;;  %v3058_v51 = vmul.f32 %v4316_v43, %v5766_v48 }
 0x1f9   : > { %v4081_v46 = vpop.f32.mrb[22].mxu1  ;;  %3127 = vst.msk [vmem:[%s5778_s26 + $0x90] sm:$0xff] %vm3108_vm4, %v3094_v52  ;;  %v3057_v9 = vmul.f32 %v4317_v26, %v5766_v48  ;;  %v4281_v6 = vpop.f32.mrb[22].mxu0 }
 0x1fa   : > { %v1875_v58 = vpop.f32.mrb[23].mxu1  ;;  %v3097_v59 = vadd.f32 %v5772_v47, %v3058_v51  ;;  %v4318_v3 = vadd.f32 %v4281_v6, %v4081_v46  ;;  %v2949_v7 = vpop.f32.mrb[23].mxu0 }
 0x1fb   : > { %v3096_v8 = vadd.f32 %v5772_v47, %v3057_v9  ;;  %v4319_v22 = vadd.f32 %v2949_v7, %v1875_v58 }
 0x1fc   : > { %3130 = vst.msk [vmem:[%s5778_s26 + $0xa8] sm:$0xff] %vm3108_vm4, %v3097_v59  ;;  %v3060_v28 = vmul.f32 %v4318_v3, %v5766_v48 }
 0x1fd   : > { %v4084_v29 = vpop.f32.mrb[24].mxu1  ;;  %3129 = vst.msk [vmem:[%s5778_s26 + $0xa0] sm:$0xff] %vm3108_vm4, %v3096_v8  ;;  %v3059_v53 = vmul.f32 %v4319_v22, %v5766_v48  ;;  %v4284_v55 = vpop.f32.mrb[24].mxu0 }
 0x1fe   : > { %v1885_v21 = vpop.f32.mrb[25].mxu1  ;;  %v3099_v24 = vadd.f32 %v5772_v47, %v3060_v28  ;;  %v4320_v10 = vadd.f32 %v4284_v55, %v4084_v29  ;;  %v2959_v12 = vpop.f32.mrb[25].mxu0 }
 0x1ff   : > { %v3098_v40 = vadd.f32 %v5772_v47, %v3059_v53  ;;  %v4321_v20 = vadd.f32 %v2959_v12, %v1885_v21 }
 0x200   : > { %3132 = vst.msk [vmem:[%s5778_s26 + $0xb8] sm:$0xff] %vm3108_vm4, %v3099_v24  ;;  %v3062_v54 = vmul.f32 %v4320_v10, %v5766_v48 }
 0x201   : > { %v4087_v19 = vpop.f32.mrb[26].mxu1  ;;  %3131 = vst.msk [vmem:[%s5778_s26 + $0xb0] sm:$0xff] %vm3108_vm4, %v3098_v40  ;;  %v3061_v13 = vmul.f32 %v4321_v20, %v5766_v48  ;;  %v4287_v39 = vpop.f32.mrb[26].mxu0 }
 0x202   : > { %v1895_v41 = vpop.f32.mrb[27].mxu1  ;;  %v3101_v17 = vadd.f32 %v5772_v47, %v3062_v54  ;;  %v4322_v61 = vadd.f32 %v4287_v39, %v4087_v19  ;;  %v2969_v45 = vpop.f32.mrb[27].mxu0 }
 0x203   : > { %v3100_v0 = vadd.f32 %v5772_v47, %v3061_v13  ;;  %v4323_v16 = vadd.f32 %v2969_v45, %v1895_v41 }
 0x204   : > { %3134 = vst.msk [vmem:[%s5778_s26 + $0xc8] sm:$0xff] %vm3108_vm4, %v3101_v17  ;;  %v3064_v49 = vmul.f32 %v4322_v61, %v5766_v48 }
 0x205   : > { %v4090_v33 = vpop.f32.mrb[28].mxu1  ;;  %3133 = vst.msk [vmem:[%s5778_s26 + $0xc0] sm:$0xff] %vm3108_vm4, %v3100_v0  ;;  %v3063_v56 = vmul.f32 %v4323_v16, %v5766_v48  ;;  %v4290_v5 = vpop.f32.mrb[28].mxu0 }
 0x206   : > { %v1905_v11 = vpop.f32.mrb[29].mxu1  ;;  %v3103_v63 = vadd.f32 %v5772_v47, %v3064_v49  ;;  %v4324_v23 = vadd.f32 %v4290_v5, %v4090_v33  ;;  %v2979_v14 = vpop.f32.mrb[29].mxu0 }
 0x207   : > { %v3102_v57 = vadd.f32 %v5772_v47, %v3063_v56  ;;  %v4325_v30 = vadd.f32 %v2979_v14, %v1905_v11 }
 0x208   : > { %3136 = vst.msk [vmem:[%s5778_s26 + $0xd8] sm:$0xff] %vm3108_vm4, %v3103_v63  ;;  %v3066_v38 = vmul.f32 %v4324_v23, %v5766_v48 }
 0x209   : > { %v4093_v36 = vpop.f32.mrb[30].mxu1  ;;  %3135 = vst.msk [vmem:[%s5778_s26 + $0xd0] sm:$0xff] %vm3108_vm4, %v3102_v57  ;;  %v3065_v37 = vmul.f32 %v4325_v30, %v5766_v48  ;;  %v4293_v62 = vpop.f32.mrb[30].mxu0 }
 0x20a   : > { %v1915_v4 = vpop.f32.mrb[31].mxu1  ;;  %v3105_v35 = vadd.f32 %v5772_v47, %v3066_v38  ;;  %v4326_v44 = vadd.f32 %v4293_v62, %v4093_v36  ;;  %v2989_v27 = vpop.f32.mrb[31].mxu0 }
 0x20b   : > { %v3104_v2 = vadd.f32 %v5772_v47, %v3065_v37  ;;  %v4327_v34 = vadd.f32 %v2989_v27, %v1915_v4 }
 0x20c   : > { %3138 = vst.msk [vmem:[%s5778_s26 + $0xe8] sm:$0xff] %vm3108_vm4, %v3105_v35  ;;  %v3068_v60 = vmul.f32 %v4326_v44, %v5766_v48 }
 0x20d   : > { %3137 = vst.msk [vmem:[%s5778_s26 + $0xe0] sm:$0xff] %vm3108_vm4, %v3104_v2  ;;  %v3067_v1 = vmul.f32 %v4327_v34, %v5766_v48 }
 0x20e   : > { %v3107_v15 = vadd.f32 %v5772_v47, %v3068_v60 }
 0x20f   : > { %v3106_v18 = vadd.f32 %v5772_v47, %v3067_v1 }
 0x210   : > { %3140 = vst.msk [vmem:[%s5778_s26 + $0xf8] sm:$0xff] %vm3108_vm4, %v3107_v15 }
 0x211   : > { %3139 = vst.msk [vmem:[%s5778_s26 + $0xf0] sm:$0xff] %vm3108_vm4, %v3106_v18 }
 0x212 PF: > { %s14_s17 = sadd.s32 1, %s4599_s17   ;;  %s6099_s15 = smov %s4595_s16 }
 0x213   : > { %p11_p5 = scmp.ge.s32.totalorder %s14_s17, 4   ;;  %s6100_s16 = smov %s6102_s18 }
 0x215   :  { %13 = sbr.rel (!%p11_p5) target bundleno = 2 (0x2), region = 66 }

</bundles_post_ra>
